<compile_context>
chip_gen: v7x
topology: tpu7x:2x2x1
jax: 0.10.0
libtpu: 0.0.40
codegen_flags: <defaults>
</compile_context>

<pallas_src>
import functools

import jax
import jax.numpy as jnp
from jax.experimental import pallas as pl
from jax.experimental.pallas import tpu as pltpu


# ----------------------------- Pallas kernel --------------------------------

def _conv_s2d_kernel(*refs, act, neg_slope, has_bias, bn, bn_eps,
                     n, toh, ow, cin, cout):
    """Fused (pre-activation -> 4x4/s2/p1 conv [-> bias] [-> BatchNorm2d]).

    refs = (x2_ref, w_ref, [bias_ref], [gamma_ref, beta_ref], o_ref)

      x2_ref : (N, OH+1, OW+1, 4*Cin) bf16 -- space-to-depth(2) of the
               zero-padded input, VMEM-resident across grid steps.
      w_ref  : (16*Cin, Cout) bf16 -- weights regrouped to the lane order of
               the in-VMEM im2col slab.
      o_ref  : (N, toh, OW, Cout) f32 -- one tile of output rows.

    The conv is ONE MXU matmul over a (M, 16*Cin) slab built in VMEM from
    four shifted views of the input window (no HBM im2col, no accumulator
    carried across dots).
    """
    x_ref, w_ref = refs[0], refs[1]
    idx = 2
    bias_ref = None
    gamma_ref = beta_ref = None
    if has_bias:
        bias_ref = refs[idx]
        idx += 1
    if bn:
        gamma_ref, beta_ref = refs[idx], refs[idx + 1]
        idx += 2
    o_ref = refs[idx]

    r0 = pl.program_id(0) * toh
    # One (toh+1, OW+1) window load; activation + bf16 cast applied ONCE.
    win = x_ref[:, pl.ds(r0, toh + 1), :, :]
    if act != "none":
        a = win.astype(jnp.float32)
        if act == "lrelu":
            a = jnp.where(a >= 0.0, a, neg_slope * a)
        else:  # "relu"
            a = jnp.maximum(a, 0.0)
        win = a.astype(jnp.bfloat16)

    # im2col slab built in VMEM: 4 shifted views concatenated along lanes.
    views = [win[:, dh:dh + toh, dw:dw + ow, :]
             for dh in range(2) for dw in range(2)]
    m = n * toh * ow
    slab = jnp.concatenate(views, axis=-1).reshape(m, 16 * cin)

    acc = jnp.dot(slab, w_ref[...], preferred_element_type=jnp.float32)
    if has_bias:
        acc = acc + bias_ref[...]
    if bn:
        # Training-mode batch statistics over all N*OH*OW rows; BN layers run
        # with grid == (1,), so every row is present in this step.
        mean = jnp.mean(acc, axis=0, keepdims=True)
        var = jnp.mean(jnp.square(acc - mean), axis=0, keepdims=True)
        acc = ((acc - mean) * jax.lax.rsqrt(var + bn_eps) * gamma_ref[...]
               + beta_ref[...])
    o_ref[...] = acc.reshape(n, toh, ow, cout).astype(o_ref.dtype)


# ------------------------- conv lowering (wrapper) ---------------------------

def _space_to_depth2_pad(x_nhwc):
    """pad(H, W by 1) + space-to-depth(2): pure layout, no data replication."""
    n, h, w, c = x_nhwc.shape
    xp = jnp.pad(x_nhwc, ((0, 0), (1, 1), (1, 1), (0, 0)))
    x2 = xp.reshape(n, (h + 2) // 2, 2, (w + 2) // 2, 2, c)
    x2 = jnp.transpose(x2, (0, 1, 3, 2, 4, 5))
    return x2.reshape(n, (h + 2) // 2, (w + 2) // 2, 4 * c)


def _regroup_weight(w_oihw):
    """(Cout, Cin, 4, 4) -> (4, 4*Cin, Cout), grouped by the 2x2 (dh, dw)
    kernel shift, inner channel order (a, b, ci) matching the s2d layout."""
    cout, cin = w_oihw.shape[0], w_oihw.shape[1]
    wt = jnp.transpose(w_oihw, (2, 3, 1, 0))        # (kh, kw, ci, co)
    wt = wt.reshape(2, 2, 2, 2, cin, cout)          # (dh, a, dw, b, ci, co)
    wt = jnp.transpose(wt, (0, 2, 1, 3, 4, 5))      # (dh, dw, a, b, ci, co)
    return wt.reshape(4, 4 * cin, cout)


def _conv4s2p1(x_nhwc, w_oihw, bias=None, act="none", neg_slope=0.2,
               gamma=None, beta=None, bn_eps=1e-5):
    """Conv2d(k=4, s=2, p=1) [+ fused training-mode BatchNorm2d].

    `act` is the pre-activation applied to the conv INPUT (the LeakyReLU /
    ReLU preceding the conv in the nn.Sequential), fused into the kernel.
    """
    n, h, w, cin = x_nhwc.shape
    cout = w_oihw.shape[0]
    oh, ow = h // 2, w // 2
    bn = gamma is not None
    has_bias = bias is not None

    # Layout-only XLA prologue (zero pad + space-to-depth(2)), stored bf16.
    x2 = _space_to_depth2_pad(x_nhwc.astype(jnp.bfloat16))   # (N,OH+1,OW+1,4Cin)
    w2 = _regroup_weight(w_oihw).reshape(16 * cin, cout).astype(jnp.bfloat16)

    # Row tiling: cap ~256 slab rows per grid step; BN keeps all rows in one
    # step (batch statistics).  Tiny late layers naturally get grid == (1,).
    toh = oh
    if not bn:
        while toh % 2 == 0 and n * toh * ow > 256:
            toh //= 2
    grid = (oh // toh,)

    inputs = [x2, w2]
    in_specs = [
        pl.BlockSpec(x2.shape, lambda i: (0, 0, 0, 0)),  # resident across steps
        pl.BlockSpec(w2.shape, lambda i: (0, 0)),
    ]
    if has_bias:
        inputs.append(bias.reshape(1, cout).astype(jnp.float32))
        in_specs.append(pl.BlockSpec((1, cout), lambda i: (0, 0)))
    if bn:
        inputs.append(gamma.reshape(1, cout).astype(jnp.float32))
        in_specs.append(pl.BlockSpec((1, cout), lambda i: (0, 0)))
        inputs.append(beta.reshape(1, cout).astype(jnp.float32))
        in_specs.append(pl.BlockSpec((1, cout), lambda i: (0, 0)))

    kern = functools.partial(
        _conv_s2d_kernel, act=act, neg_slope=neg_slope, has_bias=has_bias,
        bn=bn, bn_eps=bn_eps, n=n, toh=toh, ow=ow, cin=cin, cout=cout)

    return pl.pallas_call(
        kern,
        out_shape=jax.ShapeDtypeStruct((n, oh, ow, cout), jnp.float32),
        grid=grid,
        in_specs=in_specs,
        out_specs=pl.BlockSpec((n, toh, ow, cout), lambda i: (0, i, 0, 0)),
        compiler_params=pltpu.CompilerParams(
            dimension_semantics=(("parallel",) if (grid[0] > 1 and not bn)
                                 else ("arbitrary",))),
    )(*inputs)


# ------------------------------ parameters -----------------------------------

def vae_encoder_layer_config(max_n, len_n):
    """Static per-layer (pre-activation, has_bn) plan mirroring vae_encoder."""
    if len_n <= max_n + 1:
        raise ValueError("len_n must be larger than max_n + 1")
    cfg = [("none", False)]                       # first plain Conv2d
    for _ in range(max_n):
        cfg.append(("lrelu", True))               # down_block with BN
    for i in range(len_n - max_n - 2):
        cfg.append(("lrelu", i != len_n - max_n - 3))
    return tuple(cfg)


def init_vae_encoder_params(key, in_nc, nfg, max_n, len_n):
    cfg = vae_encoder_layer_config(max_n, len_n)

    def conv_w(k, cout, cin):
        scale = 1.0 / jnp.sqrt(jnp.float32(cin * 16))
        return scale * jax.random.normal(k, (cout, cin, 4, 4), jnp.float32)

    keys = iter(jax.random.split(key, 4 * len_n + 8))
    net = [dict(w=conv_w(next(keys), nfg, in_nc))]
    for i in range(max_n):
        cin_i, cout_i = nfg * 2 ** i, nfg * 2 ** (i + 1)
        net.append(dict(w=conv_w(next(keys), cout_i, cin_i),
                        gamma=jnp.ones((cout_i,), jnp.float32),
                        beta=jnp.zeros((cout_i,), jnp.float32)))
    c = nfg * 2 ** max_n
    for i in range(len_n - max_n - 2):
        layer = dict(w=conv_w(next(keys), c, c))
        if i != len_n - max_n - 3:
            layer["gamma"] = jnp.ones((c,), jnp.float32)
            layer["beta"] = jnp.zeros((c,), jnp.float32)
        net.append(layer)

    params = dict(
        net=net,
        mu_w=conv_w(next(keys), c, c),
        mu_b=0.01 * jax.random.normal(next(keys), (c,), jnp.float32),
        lv_w=conv_w(next(keys), c, c),
        lv_b=0.01 * jax.random.normal(next(keys), (c,), jnp.float32),
    )
    return params, cfg


# ------------------------------- forward --------------------------------------

def vae_encoder_forward(x_nchw, params, cfg, lelu_p=0.2, bn_eps=1e-5):
    """Matches vae_encoder.forward: ([per-layer outputs], mu, logvar), NCHW."""
    x = jnp.transpose(x_nchw, (0, 2, 3, 1)).astype(jnp.float32)   # NCHW -> NHWC
    outs = []
    for layer, (act, bn) in zip(params["net"], cfg):
        x = _conv4s2p1(x, layer["w"], act=act, neg_slope=lelu_p,
                       gamma=layer["gamma"] if bn else None,
                       beta=layer["beta"] if bn else None,
                       bn_eps=bn_eps)
        outs.append(x)
    # final ReLU + mu & logvar convs fused into ONE kernel ((K, 2*Cout) weight)
    w_ml = jnp.concatenate([params["mu_w"], params["lv_w"]], axis=0)
    b_ml = jnp.concatenate([params["mu_b"], params["lv_b"]], axis=0)
    ml = _conv4s2p1(x, w_ml, bias=b_ml, act="relu", neg_slope=lelu_p)
    c = params["mu_w"].shape[0]
    mu, logvar = ml[..., :c], ml[..., c:]
    to_nchw = lambda t: jnp.transpose(t, (0, 3, 1, 2))
    return [to_nchw(o) for o in outs], to_nchw(mu), to_nchw(logvar)


# ---------------------------- pure-JAX reference ------------------------------

def _ref_conv(x, w, bias=None):
    y = jax.lax.conv_general_dilated(
        x, w, window_strides=(2, 2), padding=((1, 1), (1, 1)),
        dimension_numbers=("NCHW", "OIHW", "NCHW"),
        precision=jax.lax.Precision.HIGHEST)
    if bias is not None:
        y = y + bias[None, :, None, None]
    return y


def _ref_forward(x, params, cfg, lelu_p=0.2, bn_eps=1e-5):
    outs = []
    y = x
    for layer, (act, bn) in zip(params["net"], cfg):
        if act == "lrelu":
            y = jnp.where(y >= 0, y, lelu_p * y)
        y = _ref_conv(y, layer["w"])
        if bn:
            mean = jnp.mean(y, axis=(0, 2, 3), keepdims=True)
            var = jnp.mean(jnp.square(y - mean), axis=(0, 2, 3), keepdims=True)
            y = (y - mean) / jnp.sqrt(var + bn_eps)
            y = (y * layer["gamma"][None, :, None, None]
                 + layer["beta"][None, :, None, None])
        outs.append(y)
    r = jnp.maximum(y, 0.0)
    mu = _ref_conv(r, params["mu_w"], params["mu_b"])
    lv = _ref_conv(r, params["lv_w"], params["lv_b"])
    return outs, mu, lv


# --------------------------------- main ----------------------------------------

if __name__ == "__main__":
    # vae_encoder(in_nc=3, nfg=8, max_n=2, len_n=5): net = 4 strided convs
    # (3->8->16->32->32, BN on the middle two), then ReLU + mu/logvar convs,
    # all kernel=4, stride=2, padding=1.
    in_nc, nfg, max_n, len_n = 3, 8, 2, 5
    N, H, W = 2, 64, 64

    key = jax.random.PRNGKey(0)
    kx, kp = jax.random.split(key)
    x = jax.random.normal(kx, (N, in_nc, H, W), jnp.float32)
    params, cfg = init_vae_encoder_params(kp, in_nc, nfg, max_n, len_n)

    fwd = jax.jit(vae_encoder_forward, static_argnums=(2,))
    outs, mu, logvar = fwd(x, params, cfg)
    jax.block_until_ready(mu)
    jax.block_until_ready(logvar)

    # Correctness check vs. a pure-JAX f32 (HIGHEST precision) reference.
    # Kernel matmuls run bf16 on the MXU with f32 accumulation and the
    # inter-layer s2d tensor is stored bf16, hence the relaxed tolerances
    # (errors are O(1e-2) on O(1) activations).
    ref_outs, ref_mu, ref_lv = _ref_forward(x, params, cfg)

    def check(name, got, want, atol=1e-1, mtol=2e-2):
        assert got.shape == want.shape, (name, got.shape, want.shape)
        d = jnp.abs(got - want)
        assert float(jnp.max(d)) < atol, (name, "max", float(jnp.max(d)))
        assert float(jnp.mean(d)) < mtol, (name, "mean", float(jnp.mean(d)))

    for i, (o, ro) in enumerate(zip(outs, ref_outs)):
        check(f"net[{i}]", o, ro)
    check("mu", mu, ref_mu)
    check("logvar", logvar, ref_lv)

    print("KERNEL_OK")
</pallas_src>

<mosaic_0001>
module attributes {stable_mosaic.version = 11 : i64} {
  func.func @_conv_s2d_kernel(%arg0: i32, %arg1: memref<2x33x33x12xbf16, #tpu.memory_space<vmem>>, %arg2: memref<48x8xbf16, #tpu.memory_space<vmem>>, %arg3: memref<2x4x32x8xf32, #tpu.memory_space<vmem>>) attributes {dimension_semantics = [#tpu.dimension_semantics<parallel>], iteration_bounds = array<i64: 8>, scalar_prefetch = 0 : i64, scratch_operands = 0 : i64, tpu.core_type = #tpu.core_type<tc>, window_params = [{pipeline_mode = #tpu.pipeline_mode<synchronous>, transform_indices = @transform_0, window_bounds = array<i64: 2, 33, 33, 12>}, {pipeline_mode = #tpu.pipeline_mode<synchronous>, transform_indices = @transform_1, window_bounds = array<i64: 48, 8>}, {transform_indices = @transform_2, window_bounds = array<i64: 2, 4, 32, 8>}]} {
    %c4_i32 = arith.constant 4 : i32
    %0 = arith.muli %arg0, %c4_i32 : i32
    %c0 = arith.constant 0 : index
    %1 = arith.index_cast %0 : i32 to index
    %c0_0 = arith.constant 0 : index
    %c0_1 = arith.constant 0 : index
    %2 = vector.load %arg1[%c0, %1, %c0_0, %c0_1] : memref<2x33x33x12xbf16, #tpu.memory_space<vmem>>, vector<2x5x33x12xbf16>
    %3 = vector.extract_strided_slice %2 {offsets = [0, 0, 0, 0], sizes = [2, 4, 32, 12], strides = [1, 1, 1, 1]} : vector<2x5x33x12xbf16> to vector<2x4x32x12xbf16>
    %4 = vector.extract_strided_slice %2 {offsets = [0, 0, 1, 0], sizes = [2, 4, 32, 12], strides = [1, 1, 1, 1]} : vector<2x5x33x12xbf16> to vector<2x4x32x12xbf16>
    %5 = vector.extract_strided_slice %2 {offsets = [0, 1, 0, 0], sizes = [2, 4, 32, 12], strides = [1, 1, 1, 1]} : vector<2x5x33x12xbf16> to vector<2x4x32x12xbf16>
    %6 = vector.extract_strided_slice %2 {offsets = [0, 1, 1, 0], sizes = [2, 4, 32, 12], strides = [1, 1, 1, 1]} : vector<2x5x33x12xbf16> to vector<2x4x32x12xbf16>
    %7 = tpu.concatenate %3, %4, %5, %6 in 3 : vector<2x4x32x12xbf16>, vector<2x4x32x12xbf16>, vector<2x4x32x12xbf16>, vector<2x4x32x12xbf16> -> vector<2x4x32x48xbf16>
    %8 = vector.shape_cast %7 : vector<2x4x32x48xbf16> to vector<256x48xbf16>
    %c0_2 = arith.constant 0 : index
    %c0_3 = arith.constant 0 : index
    %9 = vector.load %arg2[%c0_2, %c0_3] : memref<48x8xbf16, #tpu.memory_space<vmem>>, vector<48x8xbf16>
    %cst = arith.constant dense<0.000000e+00> : vector<256x8xf32>
    %10 = tpu.matmul %8, %9, %cst {dimension_numbers = #tpu.dot_dimension_numbers<[1], [0], [0], [1], [0, 0, 1, 1], [], []>} : vector<256x48xbf16>, vector<48x8xbf16>, vector<256x8xf32> -> vector<256x8xf32>
    %11 = vector.shape_cast %10 : vector<256x8xf32> to vector<2x4x32x8xf32>
    %c0_4 = arith.constant 0 : index
    %c0_5 = arith.constant 0 : index
    %c0_6 = arith.constant 0 : index
    %c0_7 = arith.constant 0 : index
    %12 = vector.load %arg3[%c0_4, %c0_5, %c0_6, %c0_7] : memref<2x4x32x8xf32, #tpu.memory_space<vmem>>, vector<2x4x32x8xf32>
    tpu.vector_store %arg3[%c0_4, %c0_5, %c0_6, %c0_7], %11 {strides = array<i32>} : memref<2x4x32x8xf32, #tpu.memory_space<vmem>>, vector<2x4x32x8xf32>,
    return
  }
  func.func @transform_0(%arg0: i32) -> (i32, i32, i32, i32) {
    %c0_i32 = arith.constant 0 : i32
    %c0_i32_0 = arith.constant 0 : i32
    %c0_i32_1 = arith.constant 0 : i32
    %c0_i32_2 = arith.constant 0 : i32
    %c0_i32_3 = arith.constant 0 : i32
    return %c0_i32, %c0_i32_0, %c0_i32_1, %c0_i32_2 : i32, i32, i32, i32
  }
  func.func @transform_1(%arg0: i32) -> (i32, i32) {
    %c0_i32 = arith.constant 0 : i32
    %c0_i32_0 = arith.constant 0 : i32
    %c0_i32_1 = arith.constant 0 : i32
    return %c0_i32, %c0_i32_0 : i32, i32
  }
  func.func @transform_2(%arg0: i32) -> (i32, i32, i32, i32) {
    %c0_i32 = arith.constant 0 : i32
    %c0_i32_0 = arith.constant 0 : i32
    %c0_i32_1 = arith.constant 0 : i32
    %c0_i32_2 = arith.constant 0 : i32
    return %c0_i32, %arg0, %c0_i32_0, %c0_i32_1 : i32, i32, i32, i32
  }
}

module attributes {stable_mosaic.version = 11 : i64} {
  func.func @_conv_s2d_kernel(%arg0: i32, %arg1: memref<2x17x17x32xbf16, #tpu.memory_space<vmem>>, %arg2: memref<128x16xbf16, #tpu.memory_space<vmem>>, %arg3: memref<1x16xf32, #tpu.memory_space<vmem>>, %arg4: memref<1x16xf32, #tpu.memory_space<vmem>>, %arg5: memref<2x16x16x16xf32, #tpu.memory_space<vmem>>) attributes {dimension_semantics = [#tpu.dimension_semantics<arbitrary>], iteration_bounds = array<i64: 1>, scalar_prefetch = 0 : i64, scratch_operands = 0 : i64, tpu.core_type = #tpu.core_type<tc>, window_params = [{pipeline_mode = #tpu.pipeline_mode<synchronous>, transform_indices = @transform_0, window_bounds = array<i64: 2, 17, 17, 32>}, {pipeline_mode = #tpu.pipeline_mode<synchronous>, transform_indices = @transform_1, window_bounds = array<i64: 128, 16>}, {pipeline_mode = #tpu.pipeline_mode<synchronous>, transform_indices = @transform_2, window_bounds = array<i64: 1, 16>}, {pipeline_mode = #tpu.pipeline_mode<synchronous>, transform_indices = @transform_3, window_bounds = array<i64: 1, 16>}, {transform_indices = @transform_4, window_bounds = array<i64: 2, 16, 16, 16>}]} {
    %c16_i32 = arith.constant 16 : i32
    %0 = arith.muli %arg0, %c16_i32 : i32
    %c0 = arith.constant 0 : index
    %1 = arith.index_cast %0 : i32 to index
    %c0_0 = arith.constant 0 : index
    %c0_1 = arith.constant 0 : index
    %2 = vector.load %arg1[%c0, %1, %c0_0, %c0_1] : memref<2x17x17x32xbf16, #tpu.memory_space<vmem>>, vector<2x17x17x32xbf16>
    %3 = arith.extf %2 : vector<2x17x17x32xbf16> to vector<2x17x17x32xf32>
    %cst = arith.constant 0.000000e+00 : f32
    %4 = vector.broadcast %cst : f32 to vector<2x17x17x32xf32>
    %5 = arith.cmpf oge, %3, %4 : vector<2x17x17x32xf32>
    %cst_2 = arith.constant 2.000000e-01 : f32
    %6 = vector.broadcast %cst_2 : f32 to vector<2x17x17x32xf32>
    %7 = arith.mulf %6, %3 : vector<2x17x17x32xf32>
    %8 = arith.select %5, %3, %7 : vector<2x17x17x32xi1>, vector<2x17x17x32xf32>
    %9 = arith.truncf %8 : vector<2x17x17x32xf32> to vector<2x17x17x32xbf16>
    %10 = vector.extract_strided_slice %9 {offsets = [0, 0, 0, 0], sizes = [2, 16, 16, 32], strides = [1, 1, 1, 1]} : vector<2x17x17x32xbf16> to vector<2x16x16x32xbf16>
    %11 = vector.extract_strided_slice %9 {offsets = [0, 0, 1, 0], sizes = [2, 16, 16, 32], strides = [1, 1, 1, 1]} : vector<2x17x17x32xbf16> to vector<2x16x16x32xbf16>
    %12 = vector.extract_strided_slice %9 {offsets = [0, 1, 0, 0], sizes = [2, 16, 16, 32], strides = [1, 1, 1, 1]} : vector<2x17x17x32xbf16> to vector<2x16x16x32xbf16>
    %13 = vector.extract_strided_slice %9 {offsets = [0, 1, 1, 0], sizes = [2, 16, 16, 32], strides = [1, 1, 1, 1]} : vector<2x17x17x32xbf16> to vector<2x16x16x32xbf16>
    %14 = tpu.concatenate %10, %11, %12, %13 in 3 : vector<2x16x16x32xbf16>, vector<2x16x16x32xbf16>, vector<2x16x16x32xbf16>, vector<2x16x16x32xbf16> -> vector<2x16x16x128xbf16>
    %15 = vector.shape_cast %14 : vector<2x16x16x128xbf16> to vector<512x128xbf16>
    %c0_3 = arith.constant 0 : index
    %c0_4 = arith.constant 0 : index
    %16 = vector.load %arg2[%c0_3, %c0_4] : memref<128x16xbf16, #tpu.memory_space<vmem>>, vector<128x16xbf16>
    %cst_5 = arith.constant dense<0.000000e+00> : vector<512x16xf32>
    %17 = tpu.matmul %15, %16, %cst_5 {dimension_numbers = #tpu.dot_dimension_numbers<[1], [0], [0], [1], [0, 0, 1, 1], [], []>} : vector<512x128xbf16>, vector<128x16xbf16>, vector<512x16xf32> -> vector<512x16xf32>
    %cst_6 = arith.constant dense<0.000000e+00> : vector<16xf32>
    %18 = vector.multi_reduction <add>, %17, %cst_6 [0] : vector<512x16xf32> to vector<16xf32>
    %19 = vector.shape_cast %18 : vector<16xf32> to vector<1x16xf32>
    %cst_7 = arith.constant 5.120000e+02 : f32
    %20 = vector.broadcast %cst_7 : f32 to vector<1x16xf32>
    %21 = arith.divf %19, %20 : vector<1x16xf32>
    %22 = vector.broadcast %21 : vector<1x16xf32> to vector<512x16xf32>
    %23 = arith.subf %17, %22 : vector<512x16xf32>
    %24 = arith.mulf %23, %23 : vector<512x16xf32>
    %cst_8 = arith.constant dense<0.000000e+00> : vector<16xf32>
    %25 = vector.multi_reduction <add>, %24, %cst_8 [0] : vector<512x16xf32> to vector<16xf32>
    %26 = vector.shape_cast %25 : vector<16xf32> to vector<1x16xf32>
    %cst_9 = arith.constant 5.120000e+02 : f32
    %27 = vector.broadcast %cst_9 : f32 to vector<1x16xf32>
    %28 = arith.divf %26, %27 : vector<1x16xf32>
    %29 = vector.broadcast %21 : vector<1x16xf32> to vector<512x16xf32>
    %30 = arith.subf %17, %29 : vector<512x16xf32>
    %cst_10 = arith.constant 9.99999974E-6 : f32
    %31 = vector.broadcast %cst_10 : f32 to vector<1x16xf32>
    %32 = arith.addf %28, %31 : vector<1x16xf32>
    %33 = math.rsqrt %32 : vector<1x16xf32>
    %34 = vector.broadcast %33 : vector<1x16xf32> to vector<512x16xf32>
    %35 = arith.mulf %30, %34 : vector<512x16xf32>
    %c0_11 = arith.constant 0 : index
    %c0_12 = arith.constant 0 : index
    %36 = vector.load %arg3[%c0_11, %c0_12] : memref<1x16xf32, #tpu.memory_space<vmem>>, vector<1x16xf32>
    %37 = vector.broadcast %36 : vector<1x16xf32> to vector<512x16xf32>
    %38 = arith.mulf %35, %37 : vector<512x16xf32>
    %c0_13 = arith.constant 0 : index
    %c0_14 = arith.constant 0 : index
    %39 = vector.load %arg4[%c0_13, %c0_14] : memref<1x16xf32, #tpu.memory_space<vmem>>, vector<1x16xf32>
    %40 = vector.broadcast %39 : vector<1x16xf32> to vector<512x16xf32>
    %41 = arith.addf %38, %40 : vector<512x16xf32>
    %42 = vector.shape_cast %41 : vector<512x16xf32> to vector<2x16x16x16xf32>
    %c0_15 = arith.constant 0 : index
    %c0_16 = arith.constant 0 : index
    %c0_17 = arith.constant 0 : index
    %c0_18 = arith.constant 0 : index
    %43 = vector.load %arg5[%c0_15, %c0_16, %c0_17, %c0_18] : memref<2x16x16x16xf32, #tpu.memory_space<vmem>>, vector<2x16x16x16xf32>
    tpu.vector_store %arg5[%c0_15, %c0_16, %c0_17, %c0_18], %42 {strides = array<i32>} : memref<2x16x16x16xf32, #tpu.memory_space<vmem>>, vector<2x16x16x16xf32>,
    return
  }
  func.func @transform_0(%arg0: i32) -> (i32, i32, i32, i32) {
    %c0_i32 = arith.constant 0 : i32
    %c0_i32_0 = arith.constant 0 : i32
    %c0_i32_1 = arith.constant 0 : i32
    %c0_i32_2 = arith.constant 0 : i32
    %c0_i32_3 = arith.constant 0 : i32
    return %c0_i32, %c0_i32_0, %c0_i32_1, %c0_i32_2 : i32, i32, i32, i32
  }
  func.func @transform_1(%arg0: i32) -> (i32, i32) {
    %c0_i32 = arith.constant 0 : i32
    %c0_i32_0 = arith.constant 0 : i32
    %c0_i32_1 = arith.constant 0 : i32
    return %c0_i32, %c0_i32_0 : i32, i32
  }
  func.func @transform_2(%arg0: i32) -> (i32, i32) {
    %c0_i32 = arith.constant 0 : i32
    %c0_i32_0 = arith.constant 0 : i32
    %c0_i32_1 = arith.constant 0 : i32
    return %c0_i32, %c0_i32_0 : i32, i32
  }
  func.func @transform_3(%arg0: i32) -> (i32, i32) {
    %c0_i32 = arith.constant 0 : i32
    %c0_i32_0 = arith.constant 0 : i32
    %c0_i32_1 = arith.constant 0 : i32
    return %c0_i32, %c0_i32_0 : i32, i32
  }
  func.func @transform_4(%arg0: i32) -> (i32, i32, i32, i32) {
    %c0_i32 = arith.constant 0 : i32
    %c0_i32_0 = arith.constant 0 : i32
    %c0_i32_1 = arith.constant 0 : i32
    %c0_i32_2 = arith.constant 0 : i32
    return %c0_i32, %arg0, %c0_i32_0, %c0_i32_1 : i32, i32, i32, i32
  }
}

module attributes {stable_mosaic.version = 11 : i64} {
  func.func @_conv_s2d_kernel(%arg0: i32, %arg1: memref<2x9x9x64xbf16, #tpu.memory_space<vmem>>, %arg2: memref<256x32xbf16, #tpu.memory_space<vmem>>, %arg3: memref<1x32xf32, #tpu.memory_space<vmem>>, %arg4: memref<1x32xf32, #tpu.memory_space<vmem>>, %arg5: memref<2x8x8x32xf32, #tpu.memory_space<vmem>>) attributes {dimension_semantics = [#tpu.dimension_semantics<arbitrary>], iteration_bounds = array<i64: 1>, scalar_prefetch = 0 : i64, scratch_operands = 0 : i64, tpu.core_type = #tpu.core_type<tc>, window_params = [{pipeline_mode = #tpu.pipeline_mode<synchronous>, transform_indices = @transform_0, window_bounds = array<i64: 2, 9, 9, 64>}, {pipeline_mode = #tpu.pipeline_mode<synchronous>, transform_indices = @transform_1, window_bounds = array<i64: 256, 32>}, {pipeline_mode = #tpu.pipeline_mode<synchronous>, transform_indices = @transform_2, window_bounds = array<i64: 1, 32>}, {pipeline_mode = #tpu.pipeline_mode<synchronous>, transform_indices = @transform_3, window_bounds = array<i64: 1, 32>}, {transform_indices = @transform_4, window_bounds = array<i64: 2, 8, 8, 32>}]} {
    %c8_i32 = arith.constant 8 : i32
    %0 = arith.muli %arg0, %c8_i32 : i32
    %c0 = arith.constant 0 : index
    %1 = arith.index_cast %0 : i32 to index
    %c0_0 = arith.constant 0 : index
    %c0_1 = arith.constant 0 : index
    %2 = vector.load %arg1[%c0, %1, %c0_0, %c0_1] : memref<2x9x9x64xbf16, #tpu.memory_space<vmem>>, vector<2x9x9x64xbf16>
    %3 = arith.extf %2 : vector<2x9x9x64xbf16> to vector<2x9x9x64xf32>
    %cst = arith.constant 0.000000e+00 : f32
    %4 = vector.broadcast %cst : f32 to vector<2x9x9x64xf32>
    %5 = arith.cmpf oge, %3, %4 : vector<2x9x9x64xf32>
    %cst_2 = arith.constant 2.000000e-01 : f32
    %6 = vector.broadcast %cst_2 : f32 to vector<2x9x9x64xf32>
    %7 = arith.mulf %6, %3 : vector<2x9x9x64xf32>
    %8 = arith.select %5, %3, %7 : vector<2x9x9x64xi1>, vector<2x9x9x64xf32>
    %9 = arith.truncf %8 : vector<2x9x9x64xf32> to vector<2x9x9x64xbf16>
    %10 = vector.extract_strided_slice %9 {offsets = [0, 0, 0, 0], sizes = [2, 8, 8, 64], strides = [1, 1, 1, 1]} : vector<2x9x9x64xbf16> to vector<2x8x8x64xbf16>
    %11 = vector.extract_strided_slice %9 {offsets = [0, 0, 1, 0], sizes = [2, 8, 8, 64], strides = [1, 1, 1, 1]} : vector<2x9x9x64xbf16> to vector<2x8x8x64xbf16>
    %12 = vector.extract_strided_slice %9 {offsets = [0, 1, 0, 0], sizes = [2, 8, 8, 64], strides = [1, 1, 1, 1]} : vector<2x9x9x64xbf16> to vector<2x8x8x64xbf16>
    %13 = vector.extract_strided_slice %9 {offsets = [0, 1, 1, 0], sizes = [2, 8, 8, 64], strides = [1, 1, 1, 1]} : vector<2x9x9x64xbf16> to vector<2x8x8x64xbf16>
    %14 = tpu.concatenate %10, %11, %12, %13 in 3 : vector<2x8x8x64xbf16>, vector<2x8x8x64xbf16>, vector<2x8x8x64xbf16>, vector<2x8x8x64xbf16> -> vector<2x8x8x256xbf16>
    %15 = vector.shape_cast %14 : vector<2x8x8x256xbf16> to vector<128x256xbf16>
    %c0_3 = arith.constant 0 : index
    %c0_4 = arith.constant 0 : index
    %16 = vector.load %arg2[%c0_3, %c0_4] : memref<256x32xbf16, #tpu.memory_space<vmem>>, vector<256x32xbf16>
    %cst_5 = arith.constant dense<0.000000e+00> : vector<128x32xf32>
    %17 = tpu.matmul %15, %16, %cst_5 {dimension_numbers = #tpu.dot_dimension_numbers<[1], [0], [0], [1], [0, 0, 1, 1], [], []>} : vector<128x256xbf16>, vector<256x32xbf16>, vector<128x32xf32> -> vector<128x32xf32>
    %cst_6 = arith.constant dense<0.000000e+00> : vector<32xf32>
    %18 = vector.multi_reduction <add>, %17, %cst_6 [0] : vector<128x32xf32> to vector<32xf32>
    %19 = vector.shape_cast %18 : vector<32xf32> to vector<1x32xf32>
    %cst_7 = arith.constant 1.280000e+02 : f32
    %20 = vector.broadcast %cst_7 : f32 to vector<1x32xf32>
    %21 = arith.divf %19, %20 : vector<1x32xf32>
    %22 = vector.broadcast %21 : vector<1x32xf32> to vector<128x32xf32>
    %23 = arith.subf %17, %22 : vector<128x32xf32>
    %24 = arith.mulf %23, %23 : vector<128x32xf32>
    %cst_8 = arith.constant dense<0.000000e+00> : vector<32xf32>
    %25 = vector.multi_reduction <add>, %24, %cst_8 [0] : vector<128x32xf32> to vector<32xf32>
    %26 = vector.shape_cast %25 : vector<32xf32> to vector<1x32xf32>
    %cst_9 = arith.constant 1.280000e+02 : f32
    %27 = vector.broadcast %cst_9 : f32 to vector<1x32xf32>
    %28 = arith.divf %26, %27 : vector<1x32xf32>
    %29 = vector.broadcast %21 : vector<1x32xf32> to vector<128x32xf32>
    %30 = arith.subf %17, %29 : vector<128x32xf32>
    %cst_10 = arith.constant 9.99999974E-6 : f32
    %31 = vector.broadcast %cst_10 : f32 to vector<1x32xf32>
    %32 = arith.addf %28, %31 : vector<1x32xf32>
    %33 = math.rsqrt %32 : vector<1x32xf32>
    %34 = vector.broadcast %33 : vector<1x32xf32> to vector<128x32xf32>
    %35 = arith.mulf %30, %34 : vector<128x32xf32>
    %c0_11 = arith.constant 0 : index
    %c0_12 = arith.constant 0 : index
    %36 = vector.load %arg3[%c0_11, %c0_12] : memref<1x32xf32, #tpu.memory_space<vmem>>, vector<1x32xf32>
    %37 = vector.broadcast %36 : vector<1x32xf32> to vector<128x32xf32>
    %38 = arith.mulf %35, %37 : vector<128x32xf32>
    %c0_13 = arith.constant 0 : index
    %c0_14 = arith.constant 0 : index
    %39 = vector.load %arg4[%c0_13, %c0_14] : memref<1x32xf32, #tpu.memory_space<vmem>>, vector<1x32xf32>
    %40 = vector.broadcast %39 : vector<1x32xf32> to vector<128x32xf32>
    %41 = arith.addf %38, %40 : vector<128x32xf32>
    %42 = vector.shape_cast %41 : vector<128x32xf32> to vector<2x8x8x32xf32>
    %c0_15 = arith.constant 0 : index
    %c0_16 = arith.constant 0 : index
    %c0_17 = arith.constant 0 : index
    %c0_18 = arith.constant 0 : index
    %43 = vector.load %arg5[%c0_15, %c0_16, %c0_17, %c0_18] : memref<2x8x8x32xf32, #tpu.memory_space<vmem>>, vector<2x8x8x32xf32>
    tpu.vector_store %arg5[%c0_15, %c0_16, %c0_17, %c0_18], %42 {strides = array<i32>} : memref<2x8x8x32xf32, #tpu.memory_space<vmem>>, vector<2x8x8x32xf32>,
    return
  }
  func.func @transform_0(%arg0: i32) -> (i32, i32, i32, i32) {
    %c0_i32 = arith.constant 0 : i32
    %c0_i32_0 = arith.constant 0 : i32
    %c0_i32_1 = arith.constant 0 : i32
    %c0_i32_2 = arith.constant 0 : i32
    %c0_i32_3 = arith.constant 0 : i32
    return %c0_i32, %c0_i32_0, %c0_i32_1, %c0_i32_2 : i32, i32, i32, i32
  }
  func.func @transform_1(%arg0: i32) -> (i32, i32) {
    %c0_i32 = arith.constant 0 : i32
    %c0_i32_0 = arith.constant 0 : i32
    %c0_i32_1 = arith.constant 0 : i32
    return %c0_i32, %c0_i32_0 : i32, i32
  }
  func.func @transform_2(%arg0: i32) -> (i32, i32) {
    %c0_i32 = arith.constant 0 : i32
    %c0_i32_0 = arith.constant 0 : i32
    %c0_i32_1 = arith.constant 0 : i32
    return %c0_i32, %c0_i32_0 : i32, i32
  }
  func.func @transform_3(%arg0: i32) -> (i32, i32) {
    %c0_i32 = arith.constant 0 : i32
    %c0_i32_0 = arith.constant 0 : i32
    %c0_i32_1 = arith.constant 0 : i32
    return %c0_i32, %c0_i32_0 : i32, i32
  }
  func.func @transform_4(%arg0: i32) -> (i32, i32, i32, i32) {
    %c0_i32 = arith.constant 0 : i32
    %c0_i32_0 = arith.constant 0 : i32
    %c0_i32_1 = arith.constant 0 : i32
    %c0_i32_2 = arith.constant 0 : i32
    return %c0_i32, %arg0, %c0_i32_0, %c0_i32_1 : i32, i32, i32, i32
  }
}

module attributes {stable_mosaic.version = 11 : i64} {
  func.func @_conv_s2d_kernel(%arg0: i32, %arg1: memref<2x5x5x128xbf16, #tpu.memory_space<vmem>>, %arg2: memref<512x32xbf16, #tpu.memory_space<vmem>>, %arg3: memref<2x4x4x32xf32, #tpu.memory_space<vmem>>) attributes {dimension_semantics = [#tpu.dimension_semantics<arbitrary>], iteration_bounds = array<i64: 1>, scalar_prefetch = 0 : i64, scratch_operands = 0 : i64, tpu.core_type = #tpu.core_type<tc>, window_params = [{pipeline_mode = #tpu.pipeline_mode<synchronous>, transform_indices = @transform_0, window_bounds = array<i64: 2, 5, 5, 128>}, {pipeline_mode = #tpu.pipeline_mode<synchronous>, transform_indices = @transform_1, window_bounds = array<i64: 512, 32>}, {transform_indices = @transform_2, window_bounds = array<i64: 2, 4, 4, 32>}]} {
    %c4_i32 = arith.constant 4 : i32
    %0 = arith.muli %arg0, %c4_i32 : i32
    %c0 = arith.constant 0 : index
    %1 = arith.index_cast %0 : i32 to index
    %c0_0 = arith.constant 0 : index
    %c0_1 = arith.constant 0 : index
    %2 = vector.load %arg1[%c0, %1, %c0_0, %c0_1] : memref<2x5x5x128xbf16, #tpu.memory_space<vmem>>, vector<2x5x5x128xbf16>
    %3 = arith.extf %2 : vector<2x5x5x128xbf16> to vector<2x5x5x128xf32>
    %cst = arith.constant 0.000000e+00 : f32
    %4 = vector.broadcast %cst : f32 to vector<2x5x5x128xf32>
    %5 = arith.cmpf oge, %3, %4 : vector<2x5x5x128xf32>
    %cst_2 = arith.constant 2.000000e-01 : f32
    %6 = vector.broadcast %cst_2 : f32 to vector<2x5x5x128xf32>
    %7 = arith.mulf %6, %3 : vector<2x5x5x128xf32>
    %8 = arith.select %5, %3, %7 : vector<2x5x5x128xi1>, vector<2x5x5x128xf32>
    %9 = arith.truncf %8 : vector<2x5x5x128xf32> to vector<2x5x5x128xbf16>
    %10 = vector.extract_strided_slice %9 {offsets = [0, 0, 0, 0], sizes = [2, 4, 4, 128], strides = [1, 1, 1, 1]} : vector<2x5x5x128xbf16> to vector<2x4x4x128xbf16>
    %11 = vector.extract_strided_slice %9 {offsets = [0, 0, 1, 0], sizes = [2, 4, 4, 128], strides = [1, 1, 1, 1]} : vector<2x5x5x128xbf16> to vector<2x4x4x128xbf16>
    %12 = vector.extract_strided_slice %9 {offsets = [0, 1, 0, 0], sizes = [2, 4, 4, 128], strides = [1, 1, 1, 1]} : vector<2x5x5x128xbf16> to vector<2x4x4x128xbf16>
    %13 = vector.extract_strided_slice %9 {offsets = [0, 1, 1, 0], sizes = [2, 4, 4, 128], strides = [1, 1, 1, 1]} : vector<2x5x5x128xbf16> to vector<2x4x4x128xbf16>
    %14 = tpu.concatenate %10, %11, %12, %13 in 3 : vector<2x4x4x128xbf16>, vector<2x4x4x128xbf16>, vector<2x4x4x128xbf16>, vector<2x4x4x128xbf16> -> vector<2x4x4x512xbf16>
    %15 = vector.shape_cast %14 : vector<2x4x4x512xbf16> to vector<32x512xbf16>
    %c0_3 = arith.constant 0 : index
    %c0_4 = arith.constant 0 : index
    %16 = vector.load %arg2[%c0_3, %c0_4] : memref<512x32xbf16, #tpu.memory_space<vmem>>, vector<512x32xbf16>
    %cst_5 = arith.constant dense<0.000000e+00> : vector<32x32xf32>
    %17 = tpu.matmul %15, %16, %cst_5 {dimension_numbers = #tpu.dot_dimension_numbers<[1], [0], [0], [1], [0, 0, 1, 1], [], []>} : vector<32x512xbf16>, vector<512x32xbf16>, vector<32x32xf32> -> vector<32x32xf32>
    %18 = vector.shape_cast %17 : vector<32x32xf32> to vector<2x4x4x32xf32>
    %c0_6 = arith.constant 0 : index
    %c0_7 = arith.constant 0 : index
    %c0_8 = arith.constant 0 : index
    %c0_9 = arith.constant 0 : index
    %19 = vector.load %arg3[%c0_6, %c0_7, %c0_8, %c0_9] : memref<2x4x4x32xf32, #tpu.memory_space<vmem>>, vector<2x4x4x32xf32>
    tpu.vector_store %arg3[%c0_6, %c0_7, %c0_8, %c0_9], %18 {strides = array<i32>} : memref<2x4x4x32xf32, #tpu.memory_space<vmem>>, vector<2x4x4x32xf32>,
    return
  }
  func.func @transform_0(%arg0: i32) -> (i32, i32, i32, i32) {
    %c0_i32 = arith.constant 0 : i32
    %c0_i32_0 = arith.constant 0 : i32
    %c0_i32_1 = arith.constant 0 : i32
    %c0_i32_2 = arith.constant 0 : i32
    %c0_i32_3 = arith.constant 0 : i32
    return %c0_i32, %c0_i32_0, %c0_i32_1, %c0_i32_2 : i32, i32, i32, i32
  }
  func.func @transform_1(%arg0: i32) -> (i32, i32) {
    %c0_i32 = arith.constant 0 : i32
    %c0_i32_0 = arith.constant 0 : i32
    %c0_i32_1 = arith.constant 0 : i32
    return %c0_i32, %c0_i32_0 : i32, i32
  }
  func.func @transform_2(%arg0: i32) -> (i32, i32, i32, i32) {
    %c0_i32 = arith.constant 0 : i32
    %c0_i32_0 = arith.constant 0 : i32
    %c0_i32_1 = arith.constant 0 : i32
    %c0_i32_2 = arith.constant 0 : i32
    return %c0_i32, %arg0, %c0_i32_0, %c0_i32_1 : i32, i32, i32, i32
  }
}

module attributes {stable_mosaic.version = 11 : i64} {
  func.func @_conv_s2d_kernel(%arg0: i32, %arg1: memref<2x3x3x128xbf16, #tpu.memory_space<vmem>>, %arg2: memref<512x64xbf16, #tpu.memory_space<vmem>>, %arg3: memref<1x64xf32, #tpu.memory_space<vmem>>, %arg4: memref<2x2x2x64xf32, #tpu.memory_space<vmem>>) attributes {dimension_semantics = [#tpu.dimension_semantics<arbitrary>], iteration_bounds = array<i64: 1>, scalar_prefetch = 0 : i64, scratch_operands = 0 : i64, tpu.core_type = #tpu.core_type<tc>, window_params = [{pipeline_mode = #tpu.pipeline_mode<synchronous>, transform_indices = @transform_0, window_bounds = array<i64: 2, 3, 3, 128>}, {pipeline_mode = #tpu.pipeline_mode<synchronous>, transform_indices = @transform_1, window_bounds = array<i64: 512, 64>}, {pipeline_mode = #tpu.pipeline_mode<synchronous>, transform_indices = @transform_2, window_bounds = array<i64: 1, 64>}, {transform_indices = @transform_3, window_bounds = array<i64: 2, 2, 2, 64>}]} {
    %c2_i32 = arith.constant 2 : i32
    %0 = arith.muli %arg0, %c2_i32 : i32
    %c0 = arith.constant 0 : index
    %1 = arith.index_cast %0 : i32 to index
    %c0_0 = arith.constant 0 : index
    %c0_1 = arith.constant 0 : index
    %2 = vector.load %arg1[%c0, %1, %c0_0, %c0_1] : memref<2x3x3x128xbf16, #tpu.memory_space<vmem>>, vector<2x3x3x128xbf16>
    %3 = arith.extf %2 : vector<2x3x3x128xbf16> to vector<2x3x3x128xf32>
    %cst = arith.constant 0.000000e+00 : f32
    %4 = vector.broadcast %cst : f32 to vector<2x3x3x128xf32>
    %5 = arith.maximumf %3, %4 : vector<2x3x3x128xf32>
    %6 = arith.truncf %5 : vector<2x3x3x128xf32> to vector<2x3x3x128xbf16>
    %7 = vector.extract_strided_slice %6 {offsets = [0, 0, 0, 0], sizes = [2, 2, 2, 128], strides = [1, 1, 1, 1]} : vector<2x3x3x128xbf16> to vector<2x2x2x128xbf16>
    %8 = vector.extract_strided_slice %6 {offsets = [0, 0, 1, 0], sizes = [2, 2, 2, 128], strides = [1, 1, 1, 1]} : vector<2x3x3x128xbf16> to vector<2x2x2x128xbf16>
    %9 = vector.extract_strided_slice %6 {offsets = [0, 1, 0, 0], sizes = [2, 2, 2, 128], strides = [1, 1, 1, 1]} : vector<2x3x3x128xbf16> to vector<2x2x2x128xbf16>
    %10 = vector.extract_strided_slice %6 {offsets = [0, 1, 1, 0], sizes = [2, 2, 2, 128], strides = [1, 1, 1, 1]} : vector<2x3x3x128xbf16> to vector<2x2x2x128xbf16>
    %11 = tpu.concatenate %7, %8, %9, %10 in 3 : vector<2x2x2x128xbf16>, vector<2x2x2x128xbf16>, vector<2x2x2x128xbf16>, vector<2x2x2x128xbf16> -> vector<2x2x2x512xbf16>
    %12 = vector.shape_cast %11 : vector<2x2x2x512xbf16> to vector<8x512xbf16>
    %c0_2 = arith.constant 0 : index
    %c0_3 = arith.constant 0 : index
    %13 = vector.load %arg2[%c0_2, %c0_3] : memref<512x64xbf16, #tpu.memory_space<vmem>>, vector<512x64xbf16>
    %cst_4 = arith.constant dense<0.000000e+00> : vector<8x64xf32>
    %14 = tpu.matmul %12, %13, %cst_4 {dimension_numbers = #tpu.dot_dimension_numbers<[1], [0], [0], [1], [0, 0, 1, 1], [], []>} : vector<8x512xbf16>, vector<512x64xbf16>, vector<8x64xf32> -> vector<8x64xf32>
    %c0_5 = arith.constant 0 : index
    %c0_6 = arith.constant 0 : index
    %15 = vector.load %arg3[%c0_5, %c0_6] : memref<1x64xf32, #tpu.memory_space<vmem>>, vector<1x64xf32>
    %16 = vector.broadcast %15 : vector<1x64xf32> to vector<8x64xf32>
    %17 = arith.addf %14, %16 : vector<8x64xf32>
    %18 = vector.shape_cast %17 : vector<8x64xf32> to vector<2x2x2x64xf32>
    %c0_7 = arith.constant 0 : index
    %c0_8 = arith.constant 0 : index
    %c0_9 = arith.constant 0 : index
    %c0_10 = arith.constant 0 : index
    %19 = vector.load %arg4[%c0_7, %c0_8, %c0_9, %c0_10] : memref<2x2x2x64xf32, #tpu.memory_space<vmem>>, vector<2x2x2x64xf32>
    tpu.vector_store %arg4[%c0_7, %c0_8, %c0_9, %c0_10], %18 {strides = array<i32>} : memref<2x2x2x64xf32, #tpu.memory_space<vmem>>, vector<2x2x2x64xf32>,
    return
  }
  func.func @transform_0(%arg0: i32) -> (i32, i32, i32, i32) {
    %c0_i32 = arith.constant 0 : i32
    %c0_i32_0 = arith.constant 0 : i32
    %c0_i32_1 = arith.constant 0 : i32
    %c0_i32_2 = arith.constant 0 : i32
    %c0_i32_3 = arith.constant 0 : i32
    return %c0_i32, %c0_i32_0, %c0_i32_1, %c0_i32_2 : i32, i32, i32, i32
  }
  func.func @transform_1(%arg0: i32) -> (i32, i32) {
    %c0_i32 = arith.constant 0 : i32
    %c0_i32_0 = arith.constant 0 : i32
    %c0_i32_1 = arith.constant 0 : i32
    return %c0_i32, %c0_i32_0 : i32, i32
  }
  func.func @transform_2(%arg0: i32) -> (i32, i32) {
    %c0_i32 = arith.constant 0 : i32
    %c0_i32_0 = arith.constant 0 : i32
    %c0_i32_1 = arith.constant 0 : i32
    return %c0_i32, %c0_i32_0 : i32, i32
  }
  func.func @transform_3(%arg0: i32) -> (i32, i32, i32, i32) {
    %c0_i32 = arith.constant 0 : i32
    %c0_i32_0 = arith.constant 0 : i32
    %c0_i32_1 = arith.constant 0 : i32
    %c0_i32_2 = arith.constant 0 : i32
    return %c0_i32, %arg0, %c0_i32_0, %c0_i32_1 : i32, i32, i32, i32
  }
}

</mosaic_0001>

<bundles_post_ra>
// kernel: vae_encoder_forward.5
= control target key start
LH: loop header
LB: loop body
LE: loop exit
PB: predicated region body
PF: predicated region fallthrough
CT: control target
= control target key end

     0   :  { %s1389_s9 = smov 0   ;;  %s1391_s10 = smov 0   ;;  %s1868_s0 = inlined_call_operand.vmem [shape: bf16[2,33,33,12], index: 0, kind: input, shape index: {}]   ;;  %s1869_s1 = inlined_call_operand.vmem [shape: bf16[48,8], index: 1, kind: input, shape index: {}]   ;;  %s1870_s2 = inlined_call_operand.vmem [shape: f32[2,32,32,8], index: 2, kind: output, shape index: {}]  }
   0x1   :  { %s1393_s11 = smov 0  }
   0x2 LB: > { %s1402_s12 = sadd.s32 4294967295, %s1369_s11   ;;  %s1404_s13 = sadd.s32 1, %s1369_s11   ;;  %s1369_s11 = sphi %s1393_s11, %s1874_s11   ;;  %s1365_s10 = sphi %s1391_s10, %s1873_s10   ;;  %s1361_s9 = sphi %s1389_s9, %s1872_s9  }
   0x3   : > { %s58_s14 = ssub.s32 %s1369_s11, %s1404_s13  ;;  %s61_s15 = sadd.s32 1, %s1365_s10 }
   0x4   : > { %p59_p0 = scmp.eq.s32.totalorder %s58_s14, 0  ;;  %p71_p1 = scmp.ne.s32.totalorder %s1365_s10, %s1361_s9 }
   0x5   : > { %p72_p2 = scmp.eq.s32.totalorder %s1402_s12, 7  ;;  %p1161_p3 = scmp.ge.s32.totalorder %s1369_s11, 1 }
   0x6   : > { %s1412_s16 = scalar_select %p59_p0, %s1365_s10, %s61_s15  }
   0x7   : > { %p1414_p4 = por %p72_p2, %p71_p1  ;;  %p102_p5 = scmp.lt.s32.totalorder %s1369_s11, 9 }
   0x9   : > { %p103_p6 = pnand %p1161_p3, %p102_p5 }
   0xa   : > { %s1221_s18 = smul.u32 (!%p103_p6), 80, %s1402_s12  ;;  %s1371_s22 = smov (!%p103_p6), 24   ;;  %vm278_vm0 = vsmask.f32 (!%p103_p6), 7424  ;;  %vm601_vm1 = vcmask (!%p103_p6), 97280   ;;  %vm634_vm2 = vcmask (!%p103_p6), 195584  }
   0xb   : > { %106 = sbr.rel (%p103_p6) target bundleno = 447 (0x1bf), region = 28  ;;  %s1372_s23 = smov (!%p103_p6), 12   ;;  %vm667_vm3 = vcmask (!%p103_p6), 293888   ;;  %vm724_vm4 = vcmask (!%p103_p6), 392192   ;;  %vm918_vm5 = vcmask (!%p103_p6), 64512  }
   0xc   : > { %s1422_s21 = scalar_lea.vmem (!%p103_p6), %s1868_s0, %s1221_s18  ;;  %s1373_s24 = smov (!%p103_p6), 36  }
   0xd   : > { %v1425_v0 = vld [vmem:[%s1422_s21 + $0x2a8] sm:$0xff] (!%p103_p6)   ;;  %v1428_v1 = vld [vmem:[%s1422_s21 + $0x14] sm:$0xff] (!%p103_p6)   ;;  %v1439_v4 = vld [vmem:[%s1422_s21 + $0x1c] sm:$0xff] (!%p103_p6)   ;;  %s115_s3 = sand.u32 (!%p103_p6), 1, %s1361_s9  }
   0xe   : > { %507 = vrot.lane.b32.xlu1 (!%p103_p6), %v1425_v0, %s1371_s22  ;;  %v1433_v2 = vld [vmem:[%s1422_s21 + $0x2b0] sm:$0xff] (!%p103_p6)   ;;  %v380_v3 = vshrl.u32 (!%p103_p6), %v1425_v0, 16  ;;  %491 = vrot.lane.b32.xlu0 (!%p103_p6), %v1428_v1, %s1371_s22  ;;  %v382_v5 = vshll.u32 (!%p103_p6), %v1425_v0, 16  ;;  %v1443_v6 = vld [vmem:[%s1422_s21 + $0x8] sm:$0xff] (!%p103_p6)   ;;  %v300_v31 = vshrl.u32 (!%p103_p6), %v1428_v1, 16  ;;  %v302_v36 = vshll.u32 (!%p103_p6), %v1428_v1, 16 }
   0xf   : > { %v1319_v7 = vld [vmem:[%s1422_s21 + $0x10] ss:$0 sps:$4 sm:$0x11] (!%p103_p6)   ;;  %v1449_v8 = vld [vmem:[%s1422_s21] sm:$0xff] (!%p103_p6)   ;;  %v287_v10 = vshll.u32 (!%p103_p6), %v1443_v6, 16  ;;  %v291_v11 = vshrl.u32 (!%p103_p6), %v1443_v6, 16 }
  0x10   : > { %v384_v9 = vrot.slane (!%p103_p6), %v382_v5, 1  ;;  %v295_v12 = vshll.u32 (!%p103_p6), %v1319_v7, 16  ;;  %v1456_v13 = vld [vmem:[%s1422_s21 + $0x29c] sm:$0xff] (!%p103_p6)   ;;  %v280_v14 = vshrl.u32 (!%p103_p6), %v1449_v8, 16  ;;  %v282_v15 = vshll.u32 (!%p103_p6), %v1449_v8, 16  ;;  %v1464_v22 = vld [vmem:[%s1422_s21 + $0x294] sm:$0xff] (!%p103_p6)  }
  0x11   : > { %v289_v16 = vrot.slane (!%p103_p6), %v287_v10, 1  ;;  %v1322_v18 = vld [vmem:[%s1422_s21 + $0x2a4] ss:$0 sps:$4 sm:$0x11] (!%p103_p6)   ;;  %v367_v19 = vshll.u32 (!%p103_p6), %v1456_v13, 16  ;;  %v371_v21 = vshrl.u32 (!%p103_p6), %v1456_v13, 16 }
  0x12   : > { %509 = vrot.lane.b32.xlu1 %v1433_v2, %s1371_s22  ;;  %493 = vrot.lane.b32.xlu0 %v1439_v4, %s1371_s22  ;;  %v297_v17 = vrot.slane %v295_v12, 1  ;;  %v284_v20 = vrot.slane %v282_v15, 1  ;;  %v387_v23 = vshll.u32 %v1433_v2, 16  ;;  %v375_v26 = vshll.u32 %v1322_v18, 16  ;;  %v1487_v58 = vld [vmem:[%s1422_s21 + $0x2bc] sm:$0xff]   ;;  %v1491_v59 = vld [vmem:[%s1422_s21 + $0x2c4] sm:$0xff]  }
  0x13   : > { %v293_v24 = vor.u32 %v291_v11, %v289_v16  ;;  %v369_v25 = vrot.slane %v367_v19, 1  ;;  %v385_v27 = vor.u32 %v384_v9, %v380_v3  ;;  %v360_v29 = vshrl.u32 %v1464_v22, 16  ;;  %v1324_v32 = vld [vmem:[%s1422_s21 + $0x2b8] ss:$0 sps:$4 sm:$0x11]   ;;  %v1497_v62 = vld [vmem:[%s1422_s21 + $0x28] sm:$0xff]  }
  0x14   : > { %v285_v28 = vor.u32 %v284_v20, %v280_v14  ;;  %v362_v30 = vshll.u32 %v1464_v22, 16  ;;  %v377_v35 = vrot.slane %v375_v26, 1  ;;  %v389_v39 = vrot.slane %v387_v23, 1  ;;  %v1325_v41 = vld [vmem:[%s1422_s21 + $0x24] ss:$0 sps:$4 sm:$0x11]  }
  0x15   : > { %v298_v33 = vsel %vm278_vm0, %v293_v24, %v297_v17  ;;  %v373_v34 = vor.u32 %v371_v21, %v369_v25  ;;  %v307_v40 = vshll.u32 %v1439_v4, 16  ;;  %v304_v43 = vrot.slane %v302_v36, 1  ;;  %v1502_v3 = vld [vmem:[%s1422_s21 + $0x30] sm:$0xff]   ;;  %v1506_v7 = vld [vmem:[%s1422_s21 + $0x2e4] sm:$0xff]   ;;  %s1162_s4 = sshll.u32 %s115_s3, 8  ;;  %s1223_s6 = sshll.u32 (%p1414_p4), %s1402_s12, 7 }
  0x16   : > { %441 = vrot.lane.b32.xlu1 %v298_v33, %s1372_s23  ;;  %v290_v37 = vsel %vm278_vm0, %v285_v28, %v289_v16  ;;  %v364_v38 = vrot.slane %v362_v30, 1  ;;  %v391_v44 = vshrl.u32 %v1433_v2, 16  ;;  %v395_v45 = vshll.u32 %v1324_v32, 16  ;;  %v1513_v14 = vld [vmem:[%s1422_s21 + $0x50] sm:$0xff]   ;;  %s1720_s5 = scalar_lea.vmem [#allocation2], %s1162_s4  ;;  %s1795_s9 = scalar_lea.vmem (%p1414_p4), %s1870_s2, %s1223_s6 }
  0x17   : > { %439 = vrot.lane.b32.xlu0 %v290_v37, %s1372_s23  ;;  %v378_v42 = vsel %vm278_vm0, %v373_v34, %v377_v35  ;;  %v309_v47 = vrot.slane %v307_v40, 1  ;;  %v311_v48 = vshrl.u32 %v1439_v4, 16  ;;  %v315_v49 = vshll.u32 %v1325_v41, 16  ;;  %v1330_v20 = vld [vmem:[%s1422_s21 + $0x2cc] ss:$0 sps:$4 sm:$0x11]  }
  0x18   : > { %v365_v46 = vor.u32 %v364_v38, %v360_v29  ;;  %v305_v50 = vor.u32 %v304_v43, %v300_v31  ;;  %v390_v52 = vsel %vm278_vm0, %v385_v27, %v389_v39  ;;  %v393_v53 = vor.u32 %v391_v44, %v389_v39  ;;  %v1524_v24 = vld [vmem:[%s1422_s21 + $0x2ec] sm:$0xff]   ;;  %v1331_v26 = vld [vmem:[%s1422_s21 + $0x38] ss:$0 sps:$4 sm:$0x11]   ;;  %v1344_v41 = vld [vmem:[%s1869_s1] sm:$0xff]  }
  0x19   : > { %v397_v54 = vrot.slane %v395_v45, 1  ;;  %v313_v56 = vor.u32 %v311_v48, %v309_v47  ;;  %v317_v57 = vrot.slane %v315_v49, 1  ;;  %v402_v63 = vshll.u32 %v1487_v58, 16  ;;  %v1529_v27 = vld [vmem:[%s1422_s21 + $0x58] sm:$0xff]   ;;  %1243 = vmatprep.subr.bf16.mxu0 %v1344_v41  ;;  %1281 = vmatprep.subr.bf16.mxu1 %v1344_v41 }
  0x1a   : > { %457 = vrot.lane.b32.xlu1 %v378_v42, %s1372_s23  ;;  %v370_v51 = vsel %vm278_vm0, %v365_v46, %v369_v25  ;;  %v310_v55 = vsel %vm278_vm0, %v305_v50, %v309_v47  ;;  %v407_v5 = vshll.u32 %v1491_v59, 16  ;;  %v322_v9 = vshll.u32 %v1497_v62, 16  ;;  %v1342_v36 = vld [vmem:[%s1422_s21 + $0x2f4] ss:$0 sps:$4 sm:$0x11]   ;;  %v1345_v46 = vld [vmem:[%s1869_s1 + $0x8] sm:$0xff]   ;;  %1244 = vmatpush3.bf16.msra.mxu0 %v1344_v41 }
  0x1b   : > { %455 = vrot.lane.b32.xlu0 %v370_v51, %s1372_s23  ;;  %v398_v60 = vsel %vm278_vm0, %v393_v53, %v397_v54  ;;  %v318_v61 = vsel %vm278_vm0, %v313_v56, %v317_v57  ;;  %v400_v10 = vshrl.u32 %v1487_v58, 16  ;;  %v404_v11 = vrot.slane %v402_v63, 1  ;;  %v1343_v39 = vld [vmem:[%s1422_s21 + $0x60] ss:$0 sps:$4 sm:$0x11]   ;;  %1284 = vmatpush3.bf16.msra.mxu1 %v1344_v41  ;;  %v1346_v56 = vld [vmem:[%s1869_s1 + $0x10] sm:$0xff]  }
  0x1c   : > { %v320_v12 = vshrl.u32 %v1497_v62, 16  ;;  %v409_v15 = vrot.slane %v407_v5, 1  ;;  %v327_v16 = vshll.u32 %v1502_v3, 16  ;;  %v411_v17 = vshrl.u32 %v1491_v59, 16  ;;  %1245 = vmatprep.subr.bf16.mxu0 %v1345_v46  ;;  %1282 = vmatprep.subr.bf16.mxu1 %v1345_v46 }
  0x1d   : > { %v552_v18 = vshll.u32 %v1506_v7, 16  ;;  %v324_v19 = vrot.slane %v322_v9, 1  ;;  %v331_v21 = vshrl.u32 %v1502_v3, 16  ;;  %v532_v23 = vshll.u32 %v1513_v14, 16 }
  0x1e   : > { %585 = vrot.lane.b32.xlu1 %v390_v52, %s1373_s24  ;;  %v329_v25 = vrot.slane %v327_v16, 1  ;;  %v550_v28 = vshrl.u32 %v1506_v7, 16  ;;  %v557_v30 = vshll.u32 %v1524_v24, 16  ;;  %v530_v31 = vshrl.u32 %v1513_v14, 16  ;;  %1246 = vmatpush3.bf16.msra.mxu0 %v1345_v46  ;;  %v1578_v16 = vld [vmem:[%s1422_s21 + $0x2d0] sm:$0xff]  }
  0x1f   : > { %569 = vrot.lane.b32.xlu0 %v310_v55, %s1373_s24  ;;  %v554_v29 = vrot.slane %v552_v18, 1  ;;  %v534_v32 = vrot.slane %v532_v23, 1  ;;  %v561_v33 = vshrl.u32 %v1524_v24, 16  ;;  %v537_v35 = vshll.u32 %v1529_v27, 16  ;;  %1285 = vmatpush3.bf16.msra.mxu1 %v1345_v46  ;;  %v1586_v18 = vld [vmem:[%s1422_s21 + $0x2d8] sm:$0xff]  }
  0x20   : > { %v559_v37 = vrot.slane %v557_v30, 1  ;;  %v541_v40 = vshrl.u32 %v1529_v27, 16  ;;  %v405_v42 = vor.u32 %v404_v11, %v400_v10  ;;  %v415_v43 = vshll.u32 %v1330_v20, 16  ;;  %1247 = vmatprep.subr.bf16.mxu0 %v1346_v56  ;;  %1283 = vmatprep.subr.bf16.mxu1 %v1346_v56  ;;  %v1590_v20 = vld [vmem:[%s1422_s21 + $0x44] sm:$0xff]  }
  0x21   : > { %v555_v34 = vor.u32 %v554_v29, %v550_v28  ;;  %v535_v38 = vor.u32 %v534_v32, %v530_v31  ;;  %v539_v44 = vrot.slane %v537_v35, 1  ;;  %v565_v45 = vshll.u32 %v1342_v36, 16  ;;  %v1336_v28 = vld [vmem:[%s1422_s21 + $0x2e0] ss:$0 sps:$4 sm:$0x11]  }
  0x22   : > { %587 = vrot.lane.b32.xlu1 %v398_v60, %s1373_s24  ;;  %v325_v47 = vor.u32 %v324_v19, %v320_v12  ;;  %v563_v49 = vor.u32 %v561_v33, %v559_v37  ;;  %v545_v50 = vshll.u32 %v1343_v39, 16  ;;  %v335_v51 = vshll.u32 %v1331_v26, 16  ;;  %1248 = vmatpush3.bf16.msra.mxu0 %v1346_v56  ;;  %v1337_v32 = vld [vmem:[%s1422_s21 + $0x4c] ss:$0 sps:$4 sm:$0x11]  }
  0x23   : > { %571 = vrot.lane.b32.xlu0 %v318_v61, %s1373_s24  ;;  %v1551_v48 = vsel %vm278_vm0, %v555_v34, %v559_v37  ;;  %v567_v53 = vrot.slane %v565_v45, 1  ;;  %v543_v54 = vor.u32 %v541_v40, %v539_v44  ;;  %v417_v63 = vrot.slane %v415_v43, 1  ;;  %1286 = vmatpush3.bf16.msra.mxu1 %v1346_v56 }
  0x24   : > { %v330_v9 = vsel %vm278_vm0, %v325_v47, %v329_v25  ;;  %v333_v10 = vor.u32 %v331_v21, %v329_v25  ;;  %v337_v11 = vrot.slane %v335_v51, 1  ;;  %v422_v19 = vshll.u32 %v1578_v16, 16 }
  0x25   : > { %v1562_v57 = vsel %vm278_vm0, %v563_v49, %v567_v53  ;;  %v420_v23 = vshrl.u32 %v1578_v16, 16  ;;  %v427_v26 = vshll.u32 %v1586_v18, 16  ;;  %v347_v31 = vshll.u32 %v1590_v20, 16 }
  0x26   : > { %459 = vrot.lane.b32.xlu1 %v390_v52, %s1372_s23  ;;  %v1554_v52 = vsel %vm278_vm0, %v535_v38, %v539_v44  ;;  %v424_v25 = vrot.slane %v422_v19, 1  ;;  %v431_v35 = vshrl.u32 %v1586_v18, 16  ;;  %v435_v36 = vshll.u32 %v1336_v28, 16 }
  0x27   : > { %443 = vrot.lane.b32.xlu0 %v310_v55, %s1372_s23  ;;  %v547_v55 = vrot.slane %v545_v50, 1  ;;  %v429_v34 = vrot.slane %v427_v26, 1  ;;  %v349_v38 = vrot.slane %v347_v31, 1  ;;  %v351_v39 = vshrl.u32 %v1590_v20, 16 }
  0x28   : > { %v425_v33 = vor.u32 %v424_v25, %v420_v23  ;;  %v355_v40 = vshll.u32 %v1337_v32, 16  ;;  %v437_v43 = vrot.slane %v435_v36, 1 }
  0x29   : > { %v1568_v5 = vsel %vm278_vm0, %v543_v54, %v547_v55  ;;  %v353_v45 = vor.u32 %v351_v39, %v349_v38 }
  0x2a   : > { %461 = vrot.lane.b32.xlu1 %v398_v60, %s1372_s23  ;;  %v410_v60 = vsel %vm278_vm0, %v405_v42, %v409_v15  ;;  %v430_v41 = vsel %vm278_vm0, %v425_v33, %v429_v34  ;;  %v433_v42 = vor.u32 %v431_v35, %v429_v34  ;;  %v357_v46 = vrot.slane %v355_v40, 1 }
  0x2b   : > { %445 = vrot.lane.b32.xlu0 %v318_v61, %s1372_s23  ;;  %v413_v61 = vor.u32 %v411_v17, %v409_v15  ;;  %v338_v15 = vsel %vm278_vm0, %v333_v10, %v337_v11  ;;  %v1581_v17 = vld [vmem:[%s1422_s21 + $0x3c] sm:$0xff]  }
  0x2c   : > { %v342_v21 = vshll.u32 %v1581_v17, 16  ;;  %v340_v29 = vshrl.u32 %v1581_v17, 16  ;;  %v438_v47 = vsel %vm278_vm0, %v433_v42, %v437_v43  ;;  %v358_v49 = vsel %vm278_vm0, %v353_v45, %v357_v46 }
  0x2d   : > { %v418_v12 = vsel %vm278_vm0, %v413_v61, %v417_v63 }
  0x2e   : > { %511 = vrot.lane.b32.xlu1 %v1487_v58, %s1371_s22  ;;  %v344_v30 = vrot.slane %v342_v21, 1 }
  0x2f   : > { %495 = vrot.lane.b32.xlu0 %v1497_v62, %s1371_s22 }
  0x30   : > { %v345_v37 = vor.u32 %v344_v30, %v340_v29 }
  0x32   : > { %513 = vrot.lane.b32.xlu1 %v1491_v59, %s1371_s22  ;;  %v350_v44 = vsel %vm278_vm0, %v345_v37, %v349_v38 }
  0x33   : > { %497 = vrot.lane.b32.xlu0 %v1502_v3, %s1371_s22 }
  0x36   : > { %589 = vrot.lane.b32.xlu1 %v410_v60, %s1373_s24 }
  0x37   : > { %573 = vrot.lane.b32.xlu0 %v330_v9, %s1373_s24 }
  0x3a   : > { %591 = vrot.lane.b32.xlu1 %v418_v12, %s1373_s24 }
  0x3b   : > { %575 = vrot.lane.b32.xlu0 %v338_v15, %s1373_s24 }
  0x3e   : > { %463 = vrot.lane.b32.xlu1 %v410_v60, %s1372_s23 }
  0x3f   : > { %447 = vrot.lane.b32.xlu0 %v330_v9, %s1372_s23 }
  0x42   : > { %465 = vrot.lane.b32.xlu1 %v418_v12, %s1372_s23 }
  0x43   : > { %449 = vrot.lane.b32.xlu0 %v338_v15, %s1372_s23 }
  0x46   : > { %515 = vrot.lane.b32.xlu1 %v1578_v16, %s1371_s22 }
  0x47   : > { %499 = vrot.lane.b32.xlu0 %v1581_v17, %s1371_s22 }
  0x4a   : > { %517 = vrot.lane.b32.xlu1 %v1586_v18, %s1371_s22 }
  0x4b   : > { %501 = vrot.lane.b32.xlu0 %v1590_v20, %s1371_s22 }
  0x4e   : > { %593 = vrot.lane.b32.xlu1 %v430_v41, %s1373_s24 }
  0x4f   : > { %577 = vrot.lane.b32.xlu0 %v350_v44, %s1373_s24 }
  0x52   : > { %595 = vrot.lane.b32.xlu1 %v438_v47, %s1373_s24 }
  0x53   : > { %579 = vrot.lane.b32.xlu0 %v358_v49, %s1373_s24 }
  0x56   : > { %467 = vrot.lane.b32.xlu1 %v430_v41, %s1372_s23 }
  0x57   : > { %451 = vrot.lane.b32.xlu0 %v350_v44, %s1372_s23 }
  0x5a   : > { %469 = vrot.lane.b32.xlu1 %v438_v47, %s1372_s23 }
  0x5b   : > { %453 = vrot.lane.b32.xlu0 %v358_v49, %s1372_s23 }
  0x5e   : > { %519 = vrot.lane.b32.xlu1 %v1506_v7, %s1371_s22 }
  0x5f   : > { %503 = vrot.lane.b32.xlu0 %v1513_v14, %s1371_s22 }
  0x62   : > { %521 = vrot.lane.b32.xlu1 %v1524_v24, %s1371_s22 }
  0x63   : > { %505 = vrot.lane.b32.xlu0 %v1529_v27, %s1371_s22 }
  0x66   : > { %597 = vrot.lane.b32.xlu1 %v1551_v48, %s1373_s24 }
  0x67   : > { %581 = vrot.lane.b32.xlu0 %v1554_v52, %s1373_s24 }
  0x6a   : > { %599 = vrot.lane.b32.xlu1 %v1562_v57, %s1373_s24 }
  0x6b   : > { %583 = vrot.lane.b32.xlu0 %v1568_v5, %s1373_s24 }
  0x80   : > { %v508_v7 = vpop.permute.xlu1 %507  ;;  %v492_v14 = vpop.permute.xlu0 %491 }
  0x84   : > { %v510_v50 = vpop.permute.xlu1 %509  ;;  %v494_v51 = vpop.permute.xlu0 %493 }
  0x88   : > { %v442_v24 = vpop.permute.xlu1 %441 }
  0x89   : > { %v440_v53 = vpop.permute.xlu0 %439 }
  0x8a   : > { %v603_v48 = vsel %vm601_vm1, %v1449_v8, %v440_v53  ;;  %v605_v8 = vsel %vm601_vm1, %v1443_v6, %v442_v24 }
  0x8b   : > { %v636_v61 = vsel %vm634_vm2, %v603_v48, %v492_v14 }
  0x8c   : > { %v458_v27 = vpop.permute.xlu1 %457 }
  0x8d   : > { %v456_v54 = vpop.permute.xlu0 %455  ;;  %v621_v57 = vsel %vm601_vm1, %v1456_v13, %v458_v27  ;;  %v638_v13 = vsel %vm634_vm2, %v605_v8, %v494_v51 }
  0x8e   : > { %v619_v52 = vsel %vm601_vm1, %v1464_v22, %v456_v54  ;;  %v654_v22 = vsel %vm634_vm2, %v621_v57, %v510_v50 }
  0x8f   : > { %v652_v56 = vsel %vm634_vm2, %v619_v52, %v508_v7 }
  0x90   : > { %v586_v55 = vpop.permute.xlu1 %585 }
  0x91   : > { %v570_v60 = vpop.permute.xlu0 %569  ;;  %v685_v63 = vsel %vm667_vm3, %v652_v56, %v586_v55 }
  0x92   : > { %v669_v5 = vsel %vm667_vm3, %v636_v61, %v570_v60  ;;  %1265 = vmatprep.mubr.msk.bf16.mxu1 %vm724_vm4, %v685_v63 }
  0x93   : > { %1249 = vmatprep.mubr.msk.bf16.mxu0 %vm724_vm4, %v669_v5 }
  0x94   : > { %v588_v9 = vpop.permute.xlu1 %587 }
  0x95   : > { %v687_v10 = vsel %vm667_vm3, %v654_v22, %v588_v9  ;;  %v572_v11 = vpop.permute.xlu0 %571 }
  0x96   : > { %v671_v12 = vsel %vm667_vm3, %v638_v13, %v572_v11  ;;  %1266 = vmatmul.mubr.msk.bf16.vlgmr.msra.gmra.mrb[0].mxu1 %vm724_vm4, %v687_v10 }
  0x97   : > { %1250 = vmatmul.mubr.msk.bf16.vlgmr.msra.gmra.mrb[0].mxu0 %vm724_vm4, %v671_v12 }
  0x98   : > { %v460_v6 = vpop.permute.xlu1 %459 }
  0x99   : > { %v444_v15 = vpop.permute.xlu0 %443  ;;  %v623_v29 = vsel %vm601_vm1, %v1425_v0, %v460_v6 }
  0x9a   : > { %v607_v30 = vsel %vm601_vm1, %v1428_v1, %v444_v15 }
  0x9c   : > { %v462_v19 = vpop.permute.xlu1 %461 }
  0x9d   : > { %v446_v21 = vpop.permute.xlu0 %445  ;;  %v625_v37 = vsel %vm601_vm1, %v1433_v2, %v462_v19 }
  0x9e   : > { %v609_v0 = vsel %vm601_vm1, %v1439_v4, %v446_v21 }
  0xa0   : > { %v512_v23 = vpop.permute.xlu1 %511 }
  0xa1   : > { %v496_v25 = vpop.permute.xlu0 %495  ;;  %v656_v31 = vsel %vm634_vm2, %v623_v29, %v512_v23 }
  0xa2   : > { %v640_v33 = vsel %vm634_vm2, %v607_v30, %v496_v25 }
  0xa4   : > { %v514_v26 = vpop.permute.xlu1 %513 }
  0xa5   : > { %v498_v28 = vpop.permute.xlu0 %497  ;;  %v658_v1 = vsel %vm634_vm2, %v625_v37, %v514_v26 }
  0xa6   : > { %v642_v39 = vsel %vm634_vm2, %v609_v0, %v498_v28 }
  0xa8   : > { %v590_v32 = vpop.permute.xlu1 %589 }
  0xa9   : > { %v689_v34 = vsel %vm667_vm3, %v656_v31, %v590_v32  ;;  %v574_v35 = vpop.permute.xlu0 %573 }
  0xaa   : > { %v673_v36 = vsel %vm667_vm3, %v640_v33, %v574_v35  ;;  %1269 = vmatprep.mubr.msk.bf16.mxu1 %vm724_vm4, %v689_v34 }
  0xab   : > { %1253 = vmatprep.mubr.msk.bf16.mxu0 %vm724_vm4, %v673_v36 }
  0xac   : > { %v592_v38 = vpop.permute.xlu1 %591 }
  0xad   : > { %v691_v40 = vsel %vm667_vm3, %v658_v1, %v592_v38  ;;  %v576_v41 = vpop.permute.xlu0 %575 }
  0xae   : > { %v675_v42 = vsel %vm667_vm3, %v642_v39, %v576_v41  ;;  %1270 = vmatmul.mubr.msk.bf16.gmra.mrb[4].mxu1 %vm724_vm4, %v691_v40 }
  0xaf   : > { %1254 = vmatmul.mubr.msk.bf16.gmra.mrb[4].mxu0 %vm724_vm4, %v675_v42 }
  0xb0   : > { %v464_v2 = vpop.permute.xlu1 %463 }
  0xb1   : > { %v448_v43 = vpop.permute.xlu0 %447  ;;  %v627_v7 = vsel %vm601_vm1, %v1487_v58, %v464_v2 }
  0xb2   : > { %v611_v14 = vsel %vm601_vm1, %v1497_v62, %v448_v43 }
  0xb4   : > { %v466_v44 = vpop.permute.xlu1 %465 }
  0xb5   : > { %v450_v45 = vpop.permute.xlu0 %449  ;;  %v629_v48 = vsel %vm601_vm1, %v1491_v59, %v466_v44 }
  0xb6   : > { %v613_v58 = vsel %vm601_vm1, %v1502_v3, %v450_v45 }
  0xb8   : > { %v516_v46 = vpop.permute.xlu1 %515 }
  0xb9   : > { %v500_v4 = vpop.permute.xlu0 %499  ;;  %v660_v50 = vsel %vm634_vm2, %v627_v7, %v516_v46 }
  0xba   : > { %v644_v24 = vsel %vm634_vm2, %v611_v14, %v500_v4 }
  0xbc   : > { %v518_v47 = vpop.permute.xlu1 %517 }
  0xbd   : > { %v502_v49 = vpop.permute.xlu0 %501  ;;  %v662_v62 = vsel %vm634_vm2, %v629_v48, %v518_v47 }
  0xbe   : > { %v646_v55 = vsel %vm634_vm2, %v613_v58, %v502_v49 }
  0xc0   : > { %v594_v51 = vpop.permute.xlu1 %593 }
  0xc1   : > { %v693_v53 = vsel %vm667_vm3, %v660_v50, %v594_v51  ;;  %v578_v27 = vpop.permute.xlu0 %577 }
  0xc2   : > { %v677_v54 = vsel %vm667_vm3, %v644_v24, %v578_v27  ;;  %1273 = vmatprep.mubr.msk.bf16.mxu1 %vm724_vm4, %v693_v53 }
  0xc3   : > { %1257 = vmatprep.mubr.msk.bf16.mxu0 %vm724_vm4, %v677_v54 }
  0xc4   : > { %v596_v52 = vpop.permute.xlu1 %595 }
  0xc5   : > { %v695_v56 = vsel %vm667_vm3, %v662_v62, %v596_v52  ;;  %v580_v57 = vpop.permute.xlu0 %579 }
  0xc6   : > { %v679_v60 = vsel %vm667_vm3, %v646_v55, %v580_v57  ;;  %1274 = vmatmul.mubr.msk.bf16.gmra.mrb[8].mxu1 %vm724_vm4, %v695_v56 }
  0xc7   : > { %1258 = vmatmul.mubr.msk.bf16.gmra.mrb[8].mxu0 %vm724_vm4, %v679_v60 }
  0xc8   : > { %v468_v59 = vpop.permute.xlu1 %467 }
  0xc9   : > { %v452_v61 = vpop.permute.xlu0 %451  ;;  %v631_v10 = vsel %vm601_vm1, %v1578_v16, %v468_v59 }
  0xca   : > { %v615_v13 = vsel %vm601_vm1, %v1581_v17, %v452_v61 }
  0xcc   : > { %v470_v63 = vpop.permute.xlu1 %469 }
  0xcd   : > { %v454_v8 = vpop.permute.xlu0 %453  ;;  %v633_v23 = vsel %vm601_vm1, %v1586_v18, %v470_v63 }
  0xce   : > { %v617_v16 = vsel %vm601_vm1, %v1590_v20, %v454_v8 }
  0xd0   : > { %v520_v5 = vpop.permute.xlu1 %519 }
  0xd1   : > { %v504_v3 = vpop.permute.xlu0 %503  ;;  %v664_v11 = vsel %vm634_vm2, %v631_v10, %v520_v5 }
  0xd2   : > { %v648_v6 = vsel %vm634_vm2, %v615_v13, %v504_v3 }
  0xd4   : > { %v522_v22 = vpop.permute.xlu1 %521 }
  0xd5   : > { %v506_v9 = vpop.permute.xlu0 %505  ;;  %v666_v17 = vsel %vm634_vm2, %v633_v23, %v522_v22 }
  0xd6   : > { %v650_v26 = vsel %vm634_vm2, %v617_v16, %v506_v9 }
  0xd8   : > { %v598_v12 = vpop.permute.xlu1 %597 }
  0xd9   : > { %v697_v15 = vsel %vm667_vm3, %v664_v11, %v598_v12  ;;  %v582_v19 = vpop.permute.xlu0 %581 }
  0xda   : > { %v681_v21 = vsel %vm667_vm3, %v648_v6, %v582_v19  ;;  %1277 = vmatprep.mubr.msk.bf16.mxu1 %vm724_vm4, %v697_v15 }
  0xdb   : > { %1261 = vmatprep.mubr.msk.bf16.mxu0 %vm724_vm4, %v681_v21 }
  0xdc   : > { %v600_v25 = vpop.permute.xlu1 %599 }
  0xdd   : > { %v699_v28 = vsel %vm667_vm3, %v666_v17, %v600_v25  ;;  %v584_v29 = vpop.permute.xlu0 %583 }
  0xde   : > { %v683_v30 = vsel %vm667_vm3, %v650_v26, %v584_v29  ;;  %1278 = vmatmul.mubr.msk.bf16.gmra.mrb[12].mxu1 %vm724_vm4, %v699_v28 }
  0xdf   : > { %1262 = vmatmul.mubr.msk.bf16.gmra.mrb[12].mxu0 %vm724_vm4, %v683_v30 }
 0x169   : > { %v1267_v18 = vpop.f32.mrb[0].mxu1 }
 0x16a   : > { %v1251_v31 = vpop.f32.mrb[0].mxu0  ;;  %937 = vst.msk [vmem:[%s1720_s5 + $0x90] sm:$0xff] %vm918_vm5, %v1267_v18  ;;  %v855_v20 = vpop.f32.mrb[1].mxu1 }
 0x16b   : > { %921 = vst.msk [vmem:[%s1720_s5 + $0x10] sm:$0xff] %vm918_vm5, %v1251_v31  ;;  %v791_v32 = vpop.f32.mrb[1].mxu0  ;;  %935 = vst.msk [vmem:[%s1720_s5 + $0x80] sm:$0xff] %vm918_vm5, %v855_v20  ;;  %v1268_v33 = vpop.f32.mrb[2].mxu1 }
 0x16c   : > { %919 = vst.msk [vmem:[%s1720_s5] sm:$0xff] %vm918_vm5, %v791_v32  ;;  %v1252_v34 = vpop.f32.mrb[2].mxu0  ;;  %938 = vst.msk [vmem:[%s1720_s5 + $0x98] sm:$0xff] %vm918_vm5, %v1268_v33  ;;  %v858_v35 = vpop.f32.mrb[3].mxu1 }
 0x16d   : > { %922 = vst.msk [vmem:[%s1720_s5 + $0x18] sm:$0xff] %vm918_vm5, %v1252_v34  ;;  %v794_v36 = vpop.f32.mrb[3].mxu0  ;;  %936 = vst.msk [vmem:[%s1720_s5 + $0x88] sm:$0xff] %vm918_vm5, %v858_v35 }
 0x16e   : > { %920 = vst.msk [vmem:[%s1720_s5 + $0x8] sm:$0xff] %vm918_vm5, %v794_v36 }
 0x171   : > { %v1087_v11 = vld [vmem:[%s1720_s5 + $0x90] sm:$0xff] (%p1414_p4) }
 0x172   : > { %v1055_v62 = vld [vmem:[%s1720_s5 + $0x10] sm:$0xff] (%p1414_p4)  ;;  %v1083_v10 = vld [vmem:[%s1720_s5 + $0x80] sm:$0xff] (%p1414_p4)  ;;  %1088 = vst [vmem:[%s1795_s9 + $0x410] sm:$0xff] (%p1414_p4), %v1087_v11 }
 0x173   : > { %v1051_v48 = vld [vmem:[%s1720_s5] sm:$0xff] (%p1414_p4)  ;;  %1056 = vst [vmem:[%s1795_s9 + $0x10] sm:$0xff] (%p1414_p4), %v1055_v62  ;;  %1084 = vst [vmem:[%s1795_s9 + $0x400] sm:$0xff] (%p1414_p4), %v1083_v10  ;;  %v1089_v12 = vld [vmem:[%s1720_s5 + $0x98] sm:$0xff] (%p1414_p4) }
 0x174   : > { %v1057_v52 = vld [vmem:[%s1720_s5 + $0x18] sm:$0xff] (%p1414_p4)  ;;  %1052 = vst [vmem:[%s1795_s9] sm:$0xff] (%p1414_p4), %v1051_v48  ;;  %v1085_v13 = vld [vmem:[%s1720_s5 + $0x88] sm:$0xff] (%p1414_p4)  ;;  %1090 = vst [vmem:[%s1795_s9 + $0x418] sm:$0xff] (%p1414_p4), %v1089_v12 }
 0x175   : > { %v1053_v58 = vld [vmem:[%s1720_s5 + $0x8] sm:$0xff] (%p1414_p4)  ;;  %1058 = vst [vmem:[%s1795_s9 + $0x18] sm:$0xff] (%p1414_p4), %v1057_v52  ;;  %1086 = vst [vmem:[%s1795_s9 + $0x408] sm:$0xff] (%p1414_p4), %v1085_v13 }
 0x176   : > { %1054 = vst [vmem:[%s1795_s9 + $0x8] sm:$0xff] (%p1414_p4), %v1053_v58 }
 0x181   : > { %v1271_v37 = vpop.f32.mrb[4].mxu1 }
 0x182   : > { %v1255_v0 = vpop.f32.mrb[4].mxu0  ;;  %941 = vst.msk [vmem:[%s1720_s5 + $0xb0] sm:$0xff] %vm918_vm5, %v1271_v37  ;;  %v871_v1 = vpop.f32.mrb[5].mxu1 }
 0x183   : > { %925 = vst.msk [vmem:[%s1720_s5 + $0x30] sm:$0xff] %vm918_vm5, %v1255_v0  ;;  %v807_v38 = vpop.f32.mrb[5].mxu0  ;;  %939 = vst.msk [vmem:[%s1720_s5 + $0xa0] sm:$0xff] %vm918_vm5, %v871_v1  ;;  %v1272_v39 = vpop.f32.mrb[6].mxu1 }
 0x184   : > { %923 = vst.msk [vmem:[%s1720_s5 + $0x20] sm:$0xff] %vm918_vm5, %v807_v38  ;;  %v1256_v40 = vpop.f32.mrb[6].mxu0  ;;  %942 = vst.msk [vmem:[%s1720_s5 + $0xb8] sm:$0xff] %vm918_vm5, %v1272_v39  ;;  %v874_v41 = vpop.f32.mrb[7].mxu1 }
 0x185   : > { %926 = vst.msk [vmem:[%s1720_s5 + $0x38] sm:$0xff] %vm918_vm5, %v1256_v40  ;;  %v810_v42 = vpop.f32.mrb[7].mxu0  ;;  %940 = vst.msk [vmem:[%s1720_s5 + $0xa8] sm:$0xff] %vm918_vm5, %v874_v41 }
 0x186   : > { %924 = vst.msk [vmem:[%s1720_s5 + $0x28] sm:$0xff] %vm918_vm5, %v810_v42 }
 0x189   : > { %v1095_v19 = vld [vmem:[%s1720_s5 + $0xb0] sm:$0xff] (%p1414_p4) }
 0x18a   : > { %v1063_v57 = vld [vmem:[%s1720_s5 + $0x30] sm:$0xff] (%p1414_p4)  ;;  %v1091_v6 = vld [vmem:[%s1720_s5 + $0xa0] sm:$0xff] (%p1414_p4)  ;;  %1096 = vst [vmem:[%s1795_s9 + $0x430] sm:$0xff] (%p1414_p4), %v1095_v19 }
 0x18b   : > { %v1059_v55 = vld [vmem:[%s1720_s5 + $0x20] sm:$0xff] (%p1414_p4)  ;;  %1064 = vst [vmem:[%s1795_s9 + $0x30] sm:$0xff] (%p1414_p4), %v1063_v57  ;;  %1092 = vst [vmem:[%s1795_s9 + $0x420] sm:$0xff] (%p1414_p4), %v1091_v6  ;;  %v1097_v21 = vld [vmem:[%s1720_s5 + $0xb8] sm:$0xff] (%p1414_p4) }
 0x18c   : > { %1060 = vst [vmem:[%s1795_s9 + $0x20] sm:$0xff] (%p1414_p4), %v1059_v55  ;;  %v1065_v60 = vld [vmem:[%s1720_s5 + $0x38] sm:$0xff] (%p1414_p4)  ;;  %v1093_v15 = vld [vmem:[%s1720_s5 + $0xa8] sm:$0xff] (%p1414_p4)  ;;  %1098 = vst [vmem:[%s1795_s9 + $0x438] sm:$0xff] (%p1414_p4), %v1097_v21 }
 0x18d   : > { %v1061_v56 = vld [vmem:[%s1720_s5 + $0x28] sm:$0xff] (%p1414_p4)  ;;  %1066 = vst [vmem:[%s1795_s9 + $0x38] sm:$0xff] (%p1414_p4), %v1065_v60  ;;  %1094 = vst [vmem:[%s1795_s9 + $0x428] sm:$0xff] (%p1414_p4), %v1093_v15 }
 0x18e   : > { %1062 = vst [vmem:[%s1795_s9 + $0x28] sm:$0xff] (%p1414_p4), %v1061_v56 }
 0x199   : > { %v1275_v2 = vpop.f32.mrb[8].mxu1 }
 0x19a   : > { %v1259_v43 = vpop.f32.mrb[8].mxu0  ;;  %945 = vst.msk [vmem:[%s1720_s5 + $0xd0] sm:$0xff] %vm918_vm5, %v1275_v2  ;;  %v887_v44 = vpop.f32.mrb[9].mxu1 }
 0x19b   : > { %929 = vst.msk [vmem:[%s1720_s5 + $0x50] sm:$0xff] %vm918_vm5, %v1259_v43  ;;  %v823_v45 = vpop.f32.mrb[9].mxu0  ;;  %943 = vst.msk [vmem:[%s1720_s5 + $0xc0] sm:$0xff] %vm918_vm5, %v887_v44  ;;  %v1276_v46 = vpop.f32.mrb[10].mxu1 }
 0x19c   : > { %927 = vst.msk [vmem:[%s1720_s5 + $0x40] sm:$0xff] %vm918_vm5, %v823_v45  ;;  %v1260_v4 = vpop.f32.mrb[10].mxu0  ;;  %946 = vst.msk [vmem:[%s1720_s5 + $0xd8] sm:$0xff] %vm918_vm5, %v1276_v46  ;;  %v890_v47 = vpop.f32.mrb[11].mxu1 }
 0x19d   : > { %930 = vst.msk [vmem:[%s1720_s5 + $0x58] sm:$0xff] %vm918_vm5, %v1260_v4  ;;  %v826_v49 = vpop.f32.mrb[11].mxu0  ;;  %944 = vst.msk [vmem:[%s1720_s5 + $0xc8] sm:$0xff] %vm918_vm5, %v890_v47 }
 0x19e   : > { %928 = vst.msk [vmem:[%s1720_s5 + $0x48] sm:$0xff] %vm918_vm5, %v826_v49 }
 0x1a1   : > { %v1103_v17 = vld [vmem:[%s1720_s5 + $0xd0] sm:$0xff] (%p1414_p4) }
 0x1a2   : > { %v1071_v63 = vld [vmem:[%s1720_s5 + $0x50] sm:$0xff] (%p1414_p4)  ;;  %v1099_v23 = vld [vmem:[%s1720_s5 + $0xc0] sm:$0xff] (%p1414_p4)  ;;  %1104 = vst [vmem:[%s1795_s9 + $0x450] sm:$0xff] (%p1414_p4), %v1103_v17 }
 0x1a3   : > { %v1067_v59 = vld [vmem:[%s1720_s5 + $0x40] sm:$0xff] (%p1414_p4)  ;;  %1072 = vst [vmem:[%s1795_s9 + $0x50] sm:$0xff] (%p1414_p4), %v1071_v63  ;;  %1100 = vst [vmem:[%s1795_s9 + $0x440] sm:$0xff] (%p1414_p4), %v1099_v23  ;;  %v1105_v25 = vld [vmem:[%s1720_s5 + $0xd8] sm:$0xff] (%p1414_p4) }
 0x1a4   : > { %1068 = vst [vmem:[%s1795_s9 + $0x40] sm:$0xff] (%p1414_p4), %v1067_v59  ;;  %v1073_v8 = vld [vmem:[%s1720_s5 + $0x58] sm:$0xff] (%p1414_p4)  ;;  %v1101_v16 = vld [vmem:[%s1720_s5 + $0xc8] sm:$0xff] (%p1414_p4)  ;;  %1106 = vst [vmem:[%s1795_s9 + $0x458] sm:$0xff] (%p1414_p4), %v1105_v25 }
 0x1a5   : > { %v1069_v61 = vld [vmem:[%s1720_s5 + $0x48] sm:$0xff] (%p1414_p4)  ;;  %1074 = vst [vmem:[%s1795_s9 + $0x58] sm:$0xff] (%p1414_p4), %v1073_v8  ;;  %1102 = vst [vmem:[%s1795_s9 + $0x448] sm:$0xff] (%p1414_p4), %v1101_v16 }
 0x1a6   : > { %1070 = vst [vmem:[%s1795_s9 + $0x48] sm:$0xff] (%p1414_p4), %v1069_v61 }
 0x1b0   : > { %957 = sbr.rel (!%p1414_p4) target bundleno = 447 (0x1bf), region = 32 }
 0x1b1   : > { %v1279_v7 = vpop.f32.mrb[12].mxu1 }
 0x1b2   : > { %v1263_v14 = vpop.f32.mrb[12].mxu0  ;;  %949 = vst.msk [vmem:[%s1720_s5 + $0xf0] sm:$0xff] %vm918_vm5, %v1279_v7  ;;  %v903_v50 = vpop.f32.mrb[13].mxu1 }
 0x1b3   : > { %933 = vst.msk [vmem:[%s1720_s5 + $0x70] sm:$0xff] %vm918_vm5, %v1263_v14  ;;  %v839_v51 = vpop.f32.mrb[13].mxu0  ;;  %947 = vst.msk [vmem:[%s1720_s5 + $0xe0] sm:$0xff] %vm918_vm5, %v903_v50  ;;  %v1280_v24 = vpop.f32.mrb[14].mxu1 }
 0x1b4   : > { %931 = vst.msk [vmem:[%s1720_s5 + $0x60] sm:$0xff] %vm918_vm5, %v839_v51  ;;  %v1264_v53 = vpop.f32.mrb[14].mxu0  ;;  %950 = vst.msk [vmem:[%s1720_s5 + $0xf8] sm:$0xff] %vm918_vm5, %v1280_v24  ;;  %v906_v27 = vpop.f32.mrb[15].mxu1 }
 0x1b5   : > { %934 = vst.msk [vmem:[%s1720_s5 + $0x78] sm:$0xff] %vm918_vm5, %v1264_v53  ;;  %v842_v54 = vpop.f32.mrb[15].mxu0  ;;  %948 = vst.msk [vmem:[%s1720_s5 + $0xe8] sm:$0xff] %vm918_vm5, %v906_v27 }
 0x1b6   : > { %932 = vst.msk [vmem:[%s1720_s5 + $0x68] sm:$0xff] %vm918_vm5, %v842_v54 }
 0x1b9   : > { %v1111_v29 = vld [vmem:[%s1720_s5 + $0xf0] sm:$0xff] }
 0x1ba   : > { %v1079_v22 = vld [vmem:[%s1720_s5 + $0x70] sm:$0xff]  ;;  %v1107_v26 = vld [vmem:[%s1720_s5 + $0xe0] sm:$0xff]  ;;  %1112 = vst [vmem:[%s1795_s9 + $0x470] sm:$0xff] %v1111_v29 }
 0x1bb   : > { %v1075_v5 = vld [vmem:[%s1720_s5 + $0x60] sm:$0xff]  ;;  %1080 = vst [vmem:[%s1795_s9 + $0x70] sm:$0xff] %v1079_v22  ;;  %1108 = vst [vmem:[%s1795_s9 + $0x460] sm:$0xff] %v1107_v26  ;;  %v1113_v30 = vld [vmem:[%s1720_s5 + $0xf8] sm:$0xff] }
 0x1bc   : > { %1076 = vst [vmem:[%s1795_s9 + $0x60] sm:$0xff] %v1075_v5  ;;  %v1081_v9 = vld [vmem:[%s1720_s5 + $0x78] sm:$0xff]  ;;  %v1109_v28 = vld [vmem:[%s1720_s5 + $0xe8] sm:$0xff]  ;;  %1114 = vst [vmem:[%s1795_s9 + $0x478] sm:$0xff] %v1113_v30 }
 0x1bd   : > { %v1077_v3 = vld [vmem:[%s1720_s5 + $0x68] sm:$0xff]  ;;  %1082 = vst [vmem:[%s1795_s9 + $0x78] sm:$0xff] %v1081_v9  ;;  %1110 = vst [vmem:[%s1795_s9 + $0x468] sm:$0xff] %v1109_v28 }
 0x1be   : > { %1078 = vst [vmem:[%s1795_s9 + $0x68] sm:$0xff] %v1077_v3 }
 0x1bf PF: > { %p9_p7 = scmp.ge.s32.totalorder %s1404_s13, 10   ;;  %s1872_s9 = smov %s1365_s10 }
 0x1c0   : > { %s1873_s10 = smov %s1412_s16  ;;  %s1874_s11 = smov %s1404_s13 }
 0x1c1   :  { %11 = sbr.rel (!%p9_p7) target bundleno = 2 (0x2), region = 94 }

// kernel: vae_encoder_forward.6
= control target key start
LH: loop header
LB: loop body
LE: loop exit
PB: predicated region body
PF: predicated region fallthrough
CT: control target
= control target key end

     0   :  { %s2730_s27 = smov 64   ;;  %vm600_vm8 = vsmask.f32 7424  ;;  %s2731_s12 = smov 32   ;;  %s5121_s0 = inlined_call_operand.vmem [shape: bf16[2,17,17,32], index: 0, kind: input, shape index: {}]   ;;  %s5122_s1 = inlined_call_operand.vmem [shape: bf16[128,16], index: 1, kind: input, shape index: {}]   ;;  %s5123_s2 = inlined_call_operand.vmem [shape: f32[1,16], index: 2, kind: input, shape index: {}]   ;;  %s5124_s3 = inlined_call_operand.vmem [shape: f32[1,16], index: 3, kind: input, shape index: {}]   ;;  %s5125_s4 = inlined_call_operand.vmem [shape: f32[2,16,16,16], index: 4, kind: output, shape index: {}]  }
   0x1   :  { %v25_v0 = vld [vmem:[%s5121_s0 + $0xc] sm:$0xff]   ;;  %v31_v1 = vld [vmem:[%s5121_s0 + $0x24] sm:$0xff]   ;;  %v2565_v2 = vld [vmem:[%s5121_s0 + $0x18] sm:$0xff]   ;;  %s2732_s25 = smov 96  }
   0x2   :  { %v127_v3 = vunpack.c.l.bf16 %v25_v0  ;;  %v128_v4 = vunpack.c.h.bf16 %v25_v0  ;;  %v133_v5 = vunpack.c.l.bf16 %v31_v1  ;;  %v134_v6 = vunpack.c.h.bf16 %v31_v1  ;;  %v2498_v7 = vld [vmem:[%s5121_s0] sm:$0xff]   ;;  %v24_v12 = vld [vmem:[%s5121_s0 + $0x8] sm:$0x1]  ;;  %v2566_v23 = vld [vmem:[%s5121_s0 + $0x30] sm:$0xff]  }
   0x3   :  { %v2503_v8 = vunpack.c.l.bf16 %v2565_v2  ;;  %v2504_v9 = vunpack.c.h.bf16 %v2565_v2  ;;  %v2499_v10 = vunpack.c.l.bf16 %v2498_v7  ;;  %v2500_v11 = vunpack.c.h.bf16 %v2498_v7  ;;  %v27_v33 = vld [vmem:[%s5121_s0 + $0x14] sm:$0x1]  ;;  %v30_v44 = vld [vmem:[%s5121_s0 + $0x20] sm:$0x1]  ;;  %v33_v56 = vld [vmem:[%s5121_s0 + $0x2c] sm:$0x1] }
   0x4   :  { %vm229_vm0 = vcmp.ge.f32.partialorder %v127_v3, 0.0  ;;  %vm230_vm1 = vcmp.ge.f32.partialorder %v128_v4, 0.0  ;;  %v331_v13 = vmul.f32 0.2, %v127_v3  ;;  %v332_v14 = vmul.f32 0.2, %v128_v4 }
   0x5   :  { %vm235_vm2 = vcmp.ge.f32.partialorder %v133_v5, 0.0  ;;  %vm236_vm3 = vcmp.ge.f32.partialorder %v134_v6, 0.0  ;;  %v337_v15 = vmul.f32 0.2, %v133_v5  ;;  %v338_v16 = vmul.f32 0.2, %v134_v6 }
   0x6   :  { %v433_v17 = vsel %vm229_vm0, %v127_v3, %v331_v13  ;;  %v434_v18 = vsel %vm230_vm1, %v128_v4, %v332_v14  ;;  %vm232_vm4 = vcmp.ge.f32.partialorder %v2503_v8, 0.0  ;;  %vm233_vm5 = vcmp.ge.f32.partialorder %v2504_v9, 0.0  ;;  %v36_v0 = vld [vmem:[%s5121_s0 + $0x38] sm:$0x1]  ;;  %v2720_v13 = vld [vmem:[%s5122_s1] sm:$0xff]   ;;  %v2721_v14 = vld [vmem:[%s5122_s1 + $0x8] sm:$0xff]  }
   0x7   :  { %v2773_v19 = vpack.c.bf16 %v434_v18, %v433_v17  ;;  %v439_v20 = vsel %vm235_vm2, %v133_v5, %v337_v15  ;;  %v440_v21 = vsel %vm236_vm3, %v134_v6, %v338_v16  ;;  %v334_v22 = vmul.f32 0.2, %v2503_v8  ;;  %v37_v5 = vld [vmem:[%s5121_s0 + $0x3c] sm:$0xff]   ;;  %2621 = vmatprep.subr.bf16.mxu0 %v2720_v13  ;;  %2701 = vmatprep.subr.bf16.mxu1 %v2720_v13 }
   0x8   :  { %v2778_v24 = vpack.c.bf16 %v440_v21, %v439_v20  ;;  %v335_v25 = vmul.f32 0.2, %v2504_v9  ;;  %v126_v26 = vunpack.c.l.bf16 %v24_v12  ;;  %vm226_vm6 = vcmp.ge.f32.partialorder %v2499_v10, 0.0  ;;  %2622 = vmatpush3.bf16.msra.mxu0 %v2720_v13  ;;  %2709 = vmatpush3.bf16.msra.mxu1 %v2720_v13 }
   0x9   :  { %1081 = vrot.lane.b32.xlu1 %v2773_v19, %s2730_s27  ;;  %v436_v27 = vsel %vm232_vm4, %v2503_v8, %v334_v22  ;;  %vm227_vm7 = vcmp.ge.f32.partialorder %v2500_v11, 0.0  ;;  %v328_v28 = vmul.f32 0.2, %v2499_v10  ;;  %v329_v29 = vmul.f32 0.2, %v2500_v11  ;;  %2623 = vmatprep.subr.bf16.mxu0 %v2721_v14 }
   0xa   :  { %1085 = vrot.lane.b32.xlu0 %v2778_v24, %s2730_s27  ;;  %v437_v30 = vsel %vm233_vm5, %v2504_v9, %v335_v25  ;;  %vm228_vm9 = vcmp.ge.f32.partialorder %v126_v26, 0.0  ;;  %v330_v31 = vmul.f32 0.2, %v126_v26  ;;  %v2507_v32 = vunpack.c.l.bf16 %v2566_v23  ;;  %2702 = vmatprep.subr.bf16.mxu1 %v2721_v14 }
   0xb   :  { %v2788_v34 = vpack.c.bf16 %v437_v30, %v436_v27  ;;  %v430_v35 = vsel %vm226_vm6, %v2499_v10, %v328_v28  ;;  %v431_v36 = vsel %vm227_vm7, %v2500_v11, %v329_v29  ;;  %v2508_v37 = vunpack.c.h.bf16 %v2566_v23  ;;  %v39_v23 = vld [vmem:[%s5121_s0 + $0x44] sm:$0x1]  ;;  %v2567_v30 = vld [vmem:[%s5121_s0 + $0x48] sm:$0xff]  }
   0xc   :  { %v432_v38 = vsel %vm228_vm9, %v126_v26, %v330_v31  ;;  %v2790_v39 = vpack.c.bf16 %v431_v36, %v430_v35  ;;  %vm238_vm10 = vcmp.ge.f32.partialorder %v2507_v32, 0.0  ;;  %v340_v40 = vmul.f32 0.2, %v2507_v32  ;;  %v42_v35 = vld [vmem:[%s5121_s0 + $0x50] sm:$0x1]  ;;  %2624 = vmatpush3.bf16.msra.mxu0 %v2721_v14  ;;  %2710 = vmatpush3.bf16.msra.mxu1 %v2721_v14 }
   0xd   :  { %1083 = vrot.lane.b32.xlu1 %v2788_v34, %s2730_s27  ;;  %v533_v41 = vpack.c.bf16 %v432_v38, %v432_v38  ;;  %vm239_vm11 = vcmp.ge.f32.partialorder %v2508_v37, 0.0  ;;  %v341_v42 = vmul.f32 0.2, %v2508_v37  ;;  %v129_v43 = vunpack.c.l.bf16 %v27_v33 }
   0xe   :  { %v602_v45 = vshrl.u32 %v2790_v39, 16  ;;  %v604_v46 = vshll.u32 %v2790_v39, 16  ;;  %v442_v47 = vsel %vm238_vm10, %v2507_v32, %v340_v40  ;;  %v614_v48 = vshrl.u32 %v2773_v19, 16  ;;  %v2722_v40 = vld [vmem:[%s5122_s1 + $0x10] sm:$0xff]  }
   0xf   :  { %v609_v49 = vshll.u32 %v533_v41, 16  ;;  %v443_v50 = vsel %vm239_vm11, %v2508_v37, %v341_v42  ;;  %vm231_vm12 = vcmp.ge.f32.partialorder %v129_v43, 0.0  ;;  %v333_v51 = vmul.f32 0.2, %v129_v43  ;;  %2625 = vmatprep.subr.bf16.mxu0 %v2722_v40  ;;  %2703 = vmatprep.subr.bf16.mxu1 %v2722_v40 }
  0x10   :  { %v606_v52 = vrot.slane %v604_v46, 1  ;;  %v2800_v53 = vpack.c.bf16 %v443_v50, %v442_v47  ;;  %v616_v54 = vshll.u32 %v2773_v19, 16  ;;  %v132_v55 = vunpack.c.l.bf16 %v30_v44  ;;  %2626 = vmatpush3.bf16.msra.mxu0 %v2722_v40  ;;  %2711 = vmatpush3.bf16.msra.mxu1 %v2722_v40 }
  0x11   :  { %v611_v57 = vrot.slane %v609_v49, 1  ;;  %v435_v58 = vsel %vm231_vm12, %v129_v43, %v333_v51  ;;  %v626_v59 = vshrl.u32 %v2788_v34, 16  ;;  %v628_v60 = vshll.u32 %v2788_v34, 16 }
  0x12   :  { %v607_v61 = vor.u32 %v606_v52, %v602_v45  ;;  %1087 = vrot.lane.b32.xlu1 %v2800_v53, %s2730_s27  ;;  %v535_v62 = vpack.c.bf16 %v435_v58, %v435_v58  ;;  %v618_v63 = vrot.slane %v616_v54, 1  ;;  %vm234_vm13 = vcmp.ge.f32.partialorder %v132_v55, 0.0 }
  0x13   :  { %v336_v1 = vmul.f32 0.2, %v132_v55  ;;  %v630_v2 = vrot.slane %v628_v60, 1  ;;  %v135_v3 = vunpack.c.l.bf16 %v33_v56  ;;  %v638_v4 = vshrl.u32 %v2778_v24, 16  ;;  %v2723_v56 = vld [vmem:[%s5122_s1 + $0x18] sm:$0xff]  }
  0x14   :  { %v612_v6 = vsel %vm600_vm8, %v607_v61, %v611_v57  ;;  %v619_v7 = vor.u32 %v618_v63, %v614_v48  ;;  %v621_v8 = vshll.u32 %v535_v62, 16  ;;  %v640_v9 = vshll.u32 %v2778_v24, 16  ;;  %v43_v60 = vld [vmem:[%s5121_s0 + $0x54] sm:$0xff]   ;;  %2627 = vmatprep.subr.bf16.mxu0 %v2723_v56  ;;  %2704 = vmatprep.subr.bf16.mxu1 %v2723_v56 }
  0x15   :  { %985 = vrot.lane.b32.xlu0 %v612_v6, %s2731_s12  ;;  %v438_v10 = vsel %vm234_vm13, %v132_v55, %v336_v1  ;;  %v631_v11 = vor.u32 %v630_v2, %v626_v59  ;;  %vm237_vm14 = vcmp.ge.f32.partialorder %v135_v3, 0.0  ;;  %v339_v12 = vmul.f32 0.2, %v135_v3  ;;  %2628 = vmatpush3.bf16.msra.mxu0 %v2723_v56 }
  0x16   :  { %v623_v15 = vrot.slane %v621_v8, 1  ;;  %v537_v16 = vpack.c.bf16 %v438_v10, %v438_v10  ;;  %v642_v17 = vrot.slane %v640_v9, 1  ;;  %v138_v18 = vunpack.c.l.bf16 %v36_v0  ;;  %v45_v0 = vld [vmem:[%s5121_s0 + $0x5c] sm:$0x1]  ;;  %v2724_v8 = vld [vmem:[%s5122_s1 + $0x20] sm:$0xff]   ;;  %2712 = vmatpush3.bf16.msra.mxu1 %v2723_v56 }
  0x17   :  { %v441_v20 = vsel %vm237_vm14, %v135_v3, %v339_v12  ;;  %v650_v21 = vshrl.u32 %v2800_v53, 16  ;;  %v652_v22 = vshll.u32 %v2800_v53, 16  ;;  %v139_v25 = vunpack.c.l.bf16 %v37_v5  ;;  %2629 = vmatprep.subr.bf16.mxu0 %v2724_v8  ;;  %2705 = vmatprep.subr.bf16.mxu1 %v2724_v8 }
  0x18   :  { %v624_v26 = vsel %vm600_vm8, %v619_v7, %v623_v15  ;;  %v633_v27 = vshll.u32 %v537_v16, 16  ;;  %v539_v28 = vpack.c.bf16 %v441_v20, %v441_v20  ;;  %v643_v29 = vor.u32 %v642_v17, %v638_v4  ;;  %v2568_v20 = vld [vmem:[%s5121_s0 + $0x60] sm:$0xff]  }
  0x19   :  { %987 = vrot.lane.b32.xlu0 %v624_v26, %s2731_s12  ;;  %vm240_vm15 = vcmp.ge.f32.partialorder %v138_v18, 0.0  ;;  %v342_v31 = vmul.f32 0.2, %v138_v18  ;;  %v654_v32 = vrot.slane %v652_v22, 1  ;;  %v140_v33 = vunpack.c.h.bf16 %v37_v5  ;;  %2630 = vmatpush3.bf16.msra.mxu0 %v2724_v8 }
  0x1a   :  { %v635_v36 = vrot.slane %v633_v27, 1  ;;  %v645_v37 = vshll.u32 %v539_v28, 16  ;;  %v141_v38 = vunpack.c.l.bf16 %v39_v23  ;;  %vm241_vm0 = vcmp.ge.f32.partialorder %v139_v25, 0.0  ;;  %v2725_v27 = vld [vmem:[%s5122_s1 + $0x28] sm:$0xff]   ;;  %2713 = vmatpush3.bf16.msra.mxu1 %v2724_v8 }
  0x1b   :  { %v444_v41 = vsel %vm240_vm15, %v138_v18, %v342_v31  ;;  %v655_v42 = vor.u32 %v654_v32, %v650_v21  ;;  %vm242_vm1 = vcmp.ge.f32.partialorder %v140_v33, 0.0  ;;  %v343_v43 = vmul.f32 0.2, %v139_v25  ;;  %2631 = vmatprep.subr.bf16.mxu0 %v2725_v27  ;;  %2706 = vmatprep.subr.bf16.mxu1 %v2725_v27 }
  0x1c   :  { %v636_v44 = vsel %vm600_vm8, %v631_v11, %v635_v36  ;;  %v647_v45 = vrot.slane %v645_v37, 1  ;;  %v541_v46 = vpack.c.bf16 %v444_v41, %v444_v41  ;;  %vm243_vm2 = vcmp.ge.f32.partialorder %v141_v38, 0.0 }
  0x1d   :  { %1171 = vrot.lane.b32.xlu1 %v636_v44, %s2732_s25  ;;  %1169 = vrot.lane.b32.xlu0 %v624_v26, %s2732_s25  ;;  %v344_v47 = vmul.f32 0.2, %v140_v33  ;;  %v345_v48 = vmul.f32 0.2, %v141_v38  ;;  %v445_v49 = vsel %vm241_vm0, %v139_v25, %v343_v43  ;;  %v2511_v50 = vunpack.c.l.bf16 %v2567_v30  ;;  %v48_v26 = vld [vmem:[%s5121_s0 + $0x68] sm:$0x1] }
  0x1e   :  { %v648_v51 = vsel %vm600_vm8, %v643_v29, %v647_v45  ;;  %v657_v52 = vshll.u32 %v541_v46, 16  ;;  %v2512_v54 = vunpack.c.h.bf16 %v2567_v30  ;;  %v144_v55 = vunpack.c.l.bf16 %v42_v35  ;;  %v2726_v45 = vld [vmem:[%s5122_s1 + $0x30] sm:$0xff]   ;;  %2632 = vmatpush3.bf16.msra.mxu0 %v2725_v27  ;;  %2714 = vmatpush3.bf16.msra.mxu1 %v2725_v27 }
  0x1f   :  { %v446_v57 = vsel %vm242_vm1, %v140_v33, %v344_v47  ;;  %v447_v58 = vsel %vm243_vm2, %v141_v38, %v345_v48  ;;  %vm244_vm3 = vcmp.ge.f32.partialorder %v2511_v50, 0.0  ;;  %v346_v59 = vmul.f32 0.2, %v2511_v50  ;;  %2633 = vmatprep.subr.bf16.mxu0 %v2726_v45  ;;  %2707 = vmatprep.subr.bf16.mxu1 %v2726_v45 }
  0x20   :  { %v659_v61 = vrot.slane %v657_v52, 1  ;;  %v2855_v62 = vpack.c.bf16 %v446_v57, %v445_v49  ;;  %v543_v63 = vpack.c.bf16 %v447_v58, %v447_v58  ;;  %vm245_vm4 = vcmp.ge.f32.partialorder %v2512_v54, 0.0  ;;  %v51_v52 = vld [vmem:[%s5121_s0 + $0x74] sm:$0x1] }
  0x21   :  { %991 = vrot.lane.b32.xlu1 %v648_v51, %s2731_s12  ;;  %989 = vrot.lane.b32.xlu0 %v636_v44, %s2731_s12  ;;  %v347_v1 = vmul.f32 0.2, %v2512_v54  ;;  %v448_v2 = vsel %vm244_vm3, %v2511_v50, %v346_v59  ;;  %vm246_vm5 = vcmp.ge.f32.partialorder %v144_v55, 0.0  ;;  %v348_v3 = vmul.f32 0.2, %v144_v55  ;;  %v49_v44 = vld [vmem:[%s5121_s0 + $0x6c] sm:$0xff]  }
  0x22   :  { %v660_v4 = vsel %vm600_vm8, %v655_v42, %v659_v61  ;;  %v662_v5 = vshrl.u32 %v2855_v62, 16  ;;  %v664_v6 = vshll.u32 %v2855_v62, 16  ;;  %v669_v7 = vshll.u32 %v543_v63, 16  ;;  %v2727_v63 = vld [vmem:[%s5122_s1 + $0x38] sm:$0xff]   ;;  %2634 = vmatpush3.bf16.msra.mxu0 %v2726_v45  ;;  %2715 = vmatpush3.bf16.msra.mxu1 %v2726_v45 }
  0x23   :  { %v449_v9 = vsel %vm245_vm4, %v2512_v54, %v347_v1  ;;  %v450_v10 = vsel %vm246_vm5, %v144_v55, %v348_v3  ;;  %v145_v11 = vunpack.c.l.bf16 %v43_v60  ;;  %v146_v12 = vunpack.c.h.bf16 %v43_v60  ;;  %2635 = vmatprep.subr.bf16.mxu0 %v2727_v63  ;;  %2708 = vmatprep.subr.bf16.mxu1 %v2727_v63 }
  0x24   :  { %v666_v13 = vrot.slane %v664_v6, 1  ;;  %v671_v14 = vrot.slane %v669_v7, 1  ;;  %v2869_v15 = vpack.c.bf16 %v449_v9, %v448_v2  ;;  %v545_v16 = vpack.c.bf16 %v450_v10, %v450_v10  ;;  %v2569_v7 = vld [vmem:[%s5121_s0 + $0x78] sm:$0xff]  }
  0x25   :  { %1175 = vrot.lane.b32.xlu1 %v660_v4, %s2732_s25  ;;  %1173 = vrot.lane.b32.xlu0 %v648_v51, %s2732_s25  ;;  %v147_v17 = vunpack.c.l.bf16 %v45_v0  ;;  %vm247_vm6 = vcmp.ge.f32.partialorder %v145_v11, 0.0  ;;  %vm248_vm7 = vcmp.ge.f32.partialorder %v146_v12, 0.0  ;;  %v349_v18 = vmul.f32 0.2, %v145_v11 }
  0x26   :  { %v667_v21 = vor.u32 %v666_v13, %v662_v5  ;;  %v674_v22 = vshrl.u32 %v2869_v15, 16  ;;  %v676_v23 = vshll.u32 %v2869_v15, 16  ;;  %v681_v25 = vshll.u32 %v545_v16, 16  ;;  %2636 = vmatpush3.bf16.msra.mxu0 %v2727_v63  ;;  %2716 = vmatpush3.bf16.msra.mxu1 %v2727_v63 }
  0x27   :  { %vm249_vm9 = vcmp.ge.f32.partialorder %v147_v17, 0.0  ;;  %v350_v28 = vmul.f32 0.2, %v146_v12  ;;  %v351_v29 = vmul.f32 0.2, %v147_v17  ;;  %v451_v30 = vsel %vm247_vm6, %v145_v11, %v349_v18 }
  0x28   :  { %v672_v31 = vsel %vm600_vm8, %v667_v21, %v671_v14  ;;  %v678_v32 = vrot.slane %v676_v23, 1  ;;  %v683_v33 = vrot.slane %v681_v25, 1  ;;  %v2515_v35 = vunpack.c.l.bf16 %v2568_v20  ;;  %v54_v25 = vld [vmem:[%s5121_s0 + $0x80] sm:$0x1] }
  0x29   :  { %995 = vrot.lane.b32.xlu1 %v672_v31, %s2731_s12  ;;  %993 = vrot.lane.b32.xlu0 %v660_v4, %s2731_s12  ;;  %v452_v36 = vsel %vm248_vm7, %v146_v12, %v350_v28  ;;  %v453_v37 = vsel %vm249_vm9, %v147_v17, %v351_v29  ;;  %v2516_v38 = vunpack.c.h.bf16 %v2568_v20  ;;  %v150_v40 = vunpack.c.l.bf16 %v48_v26  ;;  %v55_v26 = vld [vmem:[%s5121_s0 + $0x84] sm:$0xff]  }
  0x2a   :  { %v679_v41 = vor.u32 %v678_v32, %v674_v22  ;;  %v2888_v42 = vpack.c.bf16 %v452_v36, %v451_v30  ;;  %v547_v43 = vpack.c.bf16 %v453_v37, %v453_v37  ;;  %vm250_vm10 = vcmp.ge.f32.partialorder %v2515_v35, 0.0 }
  0x2b   :  { %vm251_vm11 = vcmp.ge.f32.partialorder %v2516_v38, 0.0  ;;  %v352_v46 = vmul.f32 0.2, %v2515_v35  ;;  %v353_v47 = vmul.f32 0.2, %v2516_v38  ;;  %vm252_vm12 = vcmp.ge.f32.partialorder %v150_v40, 0.0 }
  0x2c   :  { %v684_v48 = vsel %vm600_vm8, %v679_v41, %v683_v33  ;;  %v686_v49 = vshrl.u32 %v2888_v42, 16  ;;  %v688_v50 = vshll.u32 %v2888_v42, 16  ;;  %v693_v51 = vshll.u32 %v547_v43, 16  ;;  %v57_v33 = vld [vmem:[%s5121_s0 + $0x8c] sm:$0x1] }
  0x2d   :  { %1091 = vrot.lane.b32.xlu1 %v2869_v15, %s2730_s27  ;;  %1089 = vrot.lane.b32.xlu0 %v2855_v62, %s2730_s27  ;;  %v454_v54 = vsel %vm250_vm10, %v2515_v35, %v352_v46  ;;  %v455_v55 = vsel %vm251_vm11, %v2516_v38, %v353_v47  ;;  %v354_v56 = vmul.f32 0.2, %v150_v40  ;;  %v151_v57 = vunpack.c.l.bf16 %v49_v44 }
  0x2e   :  { %v690_v58 = vrot.slane %v688_v50, 1  ;;  %v695_v59 = vrot.slane %v693_v51, 1  ;;  %v2907_v60 = vpack.c.bf16 %v455_v55, %v454_v54  ;;  %v152_v61 = vunpack.c.h.bf16 %v49_v44  ;;  %v2570_v50 = vld [vmem:[%s5121_s0 + $0x90] sm:$0xff]  }
  0x2f   :  { %v456_v0 = vsel %vm252_vm12, %v150_v40, %v354_v56  ;;  %v153_v1 = vunpack.c.l.bf16 %v51_v52  ;;  %vm253_vm13 = vcmp.ge.f32.partialorder %v151_v57, 0.0  ;;  %v355_v2 = vmul.f32 0.2, %v151_v57 }
  0x30   :  { %v691_v3 = vor.u32 %v690_v58, %v686_v49  ;;  %v549_v4 = vpack.c.bf16 %v456_v0, %v456_v0  ;;  %v698_v5 = vshrl.u32 %v2907_v60, 16  ;;  %v700_v6 = vshll.u32 %v2907_v60, 16 }
  0x31   :  { %1179 = vrot.lane.b32.xlu1 %v684_v48, %s2732_s25  ;;  %1177 = vrot.lane.b32.xlu0 %v672_v31, %s2732_s25  ;;  %vm254_vm14 = vcmp.ge.f32.partialorder %v152_v61, 0.0  ;;  %vm255_vm15 = vcmp.ge.f32.partialorder %v153_v1, 0.0  ;;  %v356_v8 = vmul.f32 0.2, %v152_v61  ;;  %v357_v9 = vmul.f32 0.2, %v153_v1 }
  0x32   :  { %v696_v10 = vsel %vm600_vm8, %v691_v3, %v695_v59  ;;  %v702_v11 = vrot.slane %v700_v6, 1  ;;  %v705_v12 = vshll.u32 %v549_v4, 16  ;;  %v457_v13 = vsel %vm253_vm13, %v151_v57, %v355_v2  ;;  %v61_v6 = vld [vmem:[%s5121_s0 + $0x9c] sm:$0xff]  }
  0x33   :  { %v458_v14 = vsel %vm254_vm14, %v152_v61, %v356_v8  ;;  %v459_v16 = vsel %vm255_vm15, %v153_v1, %v357_v9  ;;  %v2519_v17 = vunpack.c.l.bf16 %v2569_v7  ;;  %v2520_v18 = vunpack.c.h.bf16 %v2569_v7 }
  0x34   :  { %v703_v20 = vor.u32 %v702_v11, %v698_v5  ;;  %v707_v21 = vrot.slane %v705_v12, 1  ;;  %v2922_v22 = vpack.c.bf16 %v458_v14, %v457_v13  ;;  %v551_v23 = vpack.c.bf16 %v459_v16, %v459_v16  ;;  %v60_v5 = vld [vmem:[%s5121_s0 + $0x98] sm:$0x1] }
  0x35   :  { %999 = vrot.lane.b32.xlu1 %v696_v10, %s2731_s12  ;;  %997 = vrot.lane.b32.xlu0 %v684_v48, %s2731_s12  ;;  %vm256_vm0 = vcmp.ge.f32.partialorder %v2519_v17, 0.0  ;;  %vm257_vm1 = vcmp.ge.f32.partialorder %v2520_v18, 0.0  ;;  %v358_v27 = vmul.f32 0.2, %v2519_v17  ;;  %v359_v28 = vmul.f32 0.2, %v2520_v18 }
  0x36   :  { %v708_v29 = vsel %vm600_vm8, %v703_v20, %v707_v21  ;;  %v710_v30 = vshrl.u32 %v2922_v22, 16  ;;  %v712_v31 = vshll.u32 %v2922_v22, 16  ;;  %v717_v32 = vshll.u32 %v551_v23, 16 }
  0x37   :  { %v460_v35 = vsel %vm256_vm0, %v2519_v17, %v358_v27  ;;  %v461_v36 = vsel %vm257_vm1, %v2520_v18, %v359_v28  ;;  %v156_v37 = vunpack.c.l.bf16 %v54_v25  ;;  %v157_v38 = vunpack.c.l.bf16 %v55_v26  ;;  %v63_v17 = vld [vmem:[%s5121_s0 + $0xa4] sm:$0x1] }
  0x38   :  { %v714_v40 = vrot.slane %v712_v31, 1  ;;  %v719_v41 = vrot.slane %v717_v32, 1  ;;  %v2938_v43 = vpack.c.bf16 %v461_v36, %v460_v35  ;;  %v158_v44 = vunpack.c.h.bf16 %v55_v26  ;;  %v2571_v31 = vld [vmem:[%s5121_s0 + $0xa8] sm:$0xff]  }
  0x39   :  { %1095 = vrot.lane.b32.xlu1 %v2907_v60, %s2730_s27  ;;  %1093 = vrot.lane.b32.xlu0 %v2888_v42, %s2730_s27  ;;  %vm258_vm2 = vcmp.ge.f32.partialorder %v156_v37, 0.0  ;;  %v360_v45 = vmul.f32 0.2, %v156_v37  ;;  %v159_v46 = vunpack.c.l.bf16 %v57_v33  ;;  %vm259_vm3 = vcmp.ge.f32.partialorder %v157_v38, 0.0 }
  0x3a   :  { %v715_v47 = vor.u32 %v714_v40, %v710_v30  ;;  %v722_v48 = vshrl.u32 %v2938_v43, 16  ;;  %v724_v49 = vshll.u32 %v2938_v43, 16  ;;  %vm260_vm4 = vcmp.ge.f32.partialorder %v158_v44, 0.0 }
  0x3b   :  { %v462_v51 = vsel %vm258_vm2, %v156_v37, %v360_v45  ;;  %vm261_vm5 = vcmp.ge.f32.partialorder %v159_v46, 0.0  ;;  %v361_v52 = vmul.f32 0.2, %v157_v38  ;;  %v362_v54 = vmul.f32 0.2, %v158_v44 }
  0x3c   :  { %v2950_v55 = vsel %vm600_vm8, %v715_v47, %v719_v41  ;;  %v553_v56 = vpack.c.bf16 %v462_v51, %v462_v51  ;;  %v726_v57 = vrot.slane %v724_v49, 1  ;;  %v363_v58 = vmul.f32 0.2, %v159_v46  ;;  %v66_v37 = vld [vmem:[%s5121_s0 + $0xb0] sm:$0x1] }
  0x3d   :  { %1183 = vrot.lane.b32.xlu1 %v708_v29, %s2732_s25  ;;  %1181 = vrot.lane.b32.xlu0 %v696_v10, %s2732_s25  ;;  %v463_v59 = vsel %vm259_vm3, %v157_v38, %v361_v52  ;;  %v464_v61 = vsel %vm260_vm4, %v158_v44, %v362_v54  ;;  %v2523_v63 = vunpack.c.l.bf16 %v2570_v50  ;;  %v2524_v0 = vunpack.c.h.bf16 %v2570_v50 }
  0x3e   :  { %v727_v1 = vor.u32 %v726_v57, %v722_v48  ;;  %v729_v2 = vshll.u32 %v553_v56, 16  ;;  %v465_v3 = vsel %vm261_vm5, %v159_v46, %v363_v58  ;;  %v2955_v4 = vpack.c.bf16 %v464_v61, %v463_v59  ;;  %v67_v57 = vld [vmem:[%s5121_s0 + $0xb4] sm:$0xff]  }
  0x3f   :  { %v555_v7 = vpack.c.bf16 %v465_v3, %v465_v3  ;;  %vm262_vm6 = vcmp.ge.f32.partialorder %v2523_v63, 0.0  ;;  %vm263_vm7 = vcmp.ge.f32.partialorder %v2524_v0, 0.0  ;;  %v364_v8 = vmul.f32 0.2, %v2523_v63 }
  0x40   :  { %v731_v9 = vrot.slane %v729_v2, 1  ;;  %v734_v10 = vshrl.u32 %v2955_v4, 16  ;;  %v736_v11 = vshll.u32 %v2955_v4, 16  ;;  %v365_v12 = vmul.f32 0.2, %v2524_v0 }
  0x41   :  { %1003 = vrot.lane.b32.xlu1 %v2950_v55, %s2731_s12  ;;  %1001 = vrot.lane.b32.xlu0 %v708_v29, %s2731_s12  ;;  %v741_v13 = vshll.u32 %v555_v7, 16  ;;  %v466_v14 = vsel %vm262_vm6, %v2523_v63, %v364_v8  ;;  %v162_v16 = vunpack.c.l.bf16 %v60_v5  ;;  %v163_v18 = vunpack.c.l.bf16 %v61_v6  ;;  %v69_v63 = vld [vmem:[%s5121_s0 + $0xbc] sm:$0x1] }
  0x42   :  { %v732_v20 = vsel %vm600_vm8, %v727_v1, %v731_v9  ;;  %v738_v21 = vrot.slane %v736_v11, 1  ;;  %v467_v23 = vsel %vm263_vm7, %v2524_v0, %v365_v12  ;;  %v164_v25 = vunpack.c.h.bf16 %v61_v6 }
  0x43   :  { %v743_v26 = vrot.slane %v741_v13, 1  ;;  %v2972_v27 = vpack.c.bf16 %v467_v23, %v466_v14  ;;  %vm264_vm9 = vcmp.ge.f32.partialorder %v162_v16, 0.0  ;;  %v366_v28 = vmul.f32 0.2, %v162_v16 }
  0x44   :  { %v739_v30 = vor.u32 %v738_v21, %v734_v10  ;;  %v165_v29 = vunpack.c.l.bf16 %v63_v17  ;;  %vm265_vm10 = vcmp.ge.f32.partialorder %v163_v18, 0.0  ;;  %vm266_vm11 = vcmp.ge.f32.partialorder %v164_v25, 0.0 }
  0x45   :  { %1099 = vrot.lane.b32.xlu1 %v2938_v43, %s2730_s27  ;;  %1097 = vrot.lane.b32.xlu0 %v2922_v22, %s2730_s27  ;;  %v468_v32 = vsel %vm264_vm9, %v162_v16, %v366_v28  ;;  %v746_v33 = vshrl.u32 %v2972_v27, 16  ;;  %v748_v35 = vshll.u32 %v2972_v27, 16  ;;  %v367_v36 = vmul.f32 0.2, %v163_v18 }
  0x46   :  { %v2987_v38 = vsel %vm600_vm8, %v739_v30, %v743_v26  ;;  %v557_v40 = vpack.c.bf16 %v468_v32, %v468_v32  ;;  %vm267_vm12 = vcmp.ge.f32.partialorder %v165_v29, 0.0  ;;  %v368_v41 = vmul.f32 0.2, %v164_v25 }
  0x47   :  { %v750_v44 = vrot.slane %v748_v35, 1  ;;  %v369_v45 = vmul.f32 0.2, %v165_v29  ;;  %v469_v46 = vsel %vm265_vm10, %v163_v18, %v367_v36  ;;  %v2527_v47 = vunpack.c.l.bf16 %v2571_v31  ;;  %v2572_v18 = vld [vmem:[%s5121_s0 + $0xc0] sm:$0xff]  }
  0x48   :  { %v753_v48 = vshll.u32 %v557_v40, 16  ;;  %v470_v49 = vsel %vm266_vm11, %v164_v25, %v368_v41  ;;  %v2528_v50 = vunpack.c.h.bf16 %v2571_v31  ;;  %v168_v51 = vunpack.c.l.bf16 %v66_v37 }
  0x49   :  { %1187 = vrot.lane.b32.xlu1 %v732_v20, %s2732_s25  ;;  %1185 = vrot.lane.b32.xlu0 %v2950_v55, %s2732_s25  ;;  %v751_v52 = vor.u32 %v750_v44, %v746_v33  ;;  %v471_v54 = vsel %vm267_vm12, %v165_v29, %v369_v45  ;;  %v2994_v56 = vpack.c.bf16 %v470_v49, %v469_v46  ;;  %vm268_vm13 = vcmp.ge.f32.partialorder %v2527_v47, 0.0 }
  0x4a   :  { %v755_v58 = vrot.slane %v753_v48, 1  ;;  %v559_v59 = vpack.c.bf16 %v471_v54, %v471_v54  ;;  %vm269_vm14 = vcmp.ge.f32.partialorder %v2528_v50, 0.0  ;;  %v370_v61 = vmul.f32 0.2, %v2527_v47 }
  0x4b   :  { %v758_v0 = vshrl.u32 %v2994_v56, 16  ;;  %v760_v55 = vshll.u32 %v2994_v56, 16  ;;  %v371_v1 = vmul.f32 0.2, %v2528_v50  ;;  %vm270_vm15 = vcmp.ge.f32.partialorder %v168_v51, 0.0 }
  0x4c   :  { %v756_v2 = vsel %vm600_vm8, %v751_v52, %v755_v58  ;;  %v765_v3 = vshll.u32 %v559_v59, 16  ;;  %v472_v5 = vsel %vm268_vm13, %v2527_v47, %v370_v61  ;;  %v372_v6 = vmul.f32 0.2, %v168_v51  ;;  %v2573_v47 = vld [vmem:[%s5121_s0 + $0xd8] sm:$0xff]  }
  0x4d   :  { %1007 = vrot.lane.b32.xlu1 %v2987_v38, %s2731_s12  ;;  %1005 = vrot.lane.b32.xlu0 %v732_v20, %s2731_s12  ;;  %v762_v7 = vrot.slane %v760_v55, 1  ;;  %v473_v8 = vsel %vm269_vm14, %v2528_v50, %v371_v1  ;;  %v169_v9 = vunpack.c.l.bf16 %v67_v57  ;;  %v170_v10 = vunpack.c.h.bf16 %v67_v57  ;;  %v72_v20 = vld [vmem:[%s5121_s0 + $0xc8] sm:$0x1]  ;;  %v78_v57 = vld [vmem:[%s5121_s0 + $0xe0] sm:$0x1] }
  0x4e   :  { %v767_v11 = vrot.slane %v765_v3, 1  ;;  %v3008_v12 = vpack.c.bf16 %v473_v8, %v472_v5  ;;  %v474_v13 = vsel %vm270_vm15, %v168_v51, %v372_v6  ;;  %v171_v14 = vunpack.c.l.bf16 %v69_v63 }
  0x4f   :  { %v763_v16 = vor.u32 %v762_v7, %v758_v0  ;;  %v561_v17 = vpack.c.bf16 %v474_v13, %v474_v13  ;;  %vm271_vm0 = vcmp.ge.f32.partialorder %v169_v9, 0.0  ;;  %vm272_vm1 = vcmp.ge.f32.partialorder %v170_v10, 0.0 }
  0x50   :  { %v770_v21 = vshrl.u32 %v3008_v12, 16  ;;  %v772_v23 = vshll.u32 %v3008_v12, 16  ;;  %vm273_vm2 = vcmp.ge.f32.partialorder %v171_v14, 0.0  ;;  %v373_v25 = vmul.f32 0.2, %v169_v9 }
  0x51   :  { %1103 = vrot.lane.b32.xlu1 %v2972_v27, %s2730_s27  ;;  %1101 = vrot.lane.b32.xlu0 %v2955_v4, %s2730_s27  ;;  %v3023_v26 = vsel %vm600_vm8, %v763_v16, %v767_v11  ;;  %v777_v28 = vshll.u32 %v561_v17, 16  ;;  %v374_v30 = vmul.f32 0.2, %v170_v10  ;;  %v375_v29 = vmul.f32 0.2, %v171_v14  ;;  %v73_v11 = vld [vmem:[%s5121_s0 + $0xcc] sm:$0xff]  }
  0x52   :  { %v774_v31 = vrot.slane %v772_v23, 1  ;;  %v475_v32 = vsel %vm271_vm0, %v169_v9, %v373_v25  ;;  %v2531_v33 = vunpack.c.l.bf16 %v2572_v18  ;;  %v2532_v35 = vunpack.c.h.bf16 %v2572_v18 }
  0x53   :  { %v779_v36 = vrot.slane %v777_v28, 1  ;;  %v476_v37 = vsel %vm272_vm1, %v170_v10, %v374_v30  ;;  %v477_v40 = vsel %vm273_vm2, %v171_v14, %v375_v29  ;;  %v174_v41 = vunpack.c.l.bf16 %v72_v20  ;;  %v75_v20 = vld [vmem:[%s5121_s0 + $0xd4] sm:$0x1] }
  0x54   :  { %v775_v44 = vor.u32 %v774_v31, %v770_v21  ;;  %v3026_v45 = vpack.c.bf16 %v476_v37, %v475_v32  ;;  %v563_v46 = vpack.c.bf16 %v477_v40, %v477_v40  ;;  %vm274_vm3 = vcmp.ge.f32.partialorder %v2531_v33, 0.0 }
  0x55   :  { %1191 = vrot.lane.b32.xlu1 %v756_v2, %s2732_s25  ;;  %1189 = vrot.lane.b32.xlu0 %v2987_v38, %s2732_s25  ;;  %vm275_vm4 = vcmp.ge.f32.partialorder %v2532_v35, 0.0  ;;  %v376_v48 = vmul.f32 0.2, %v2531_v33  ;;  %v377_v49 = vmul.f32 0.2, %v2532_v35  ;;  %vm276_vm5 = vcmp.ge.f32.partialorder %v174_v41, 0.0 }
  0x56   :  { %v3035_v50 = vsel %vm600_vm8, %v775_v44, %v779_v36  ;;  %v782_v51 = vshrl.u32 %v3026_v45, 16  ;;  %v784_v52 = vshll.u32 %v3026_v45, 16  ;;  %v789_v54 = vshll.u32 %v563_v46, 16  ;;  %v79_v36 = vld [vmem:[%s5121_s0 + $0xe4] sm:$0xff]   ;;  %v81_v46 = vld [vmem:[%s5121_s0 + $0xec] sm:$0x1] }
  0x57   :  { %v478_v58 = vsel %vm274_vm3, %v2531_v33, %v376_v48  ;;  %v479_v59 = vsel %vm275_vm4, %v2532_v35, %v377_v49  ;;  %v378_v61 = vmul.f32 0.2, %v174_v41  ;;  %v2535_v38 = vunpack.c.l.bf16 %v2573_v47 }
  0x58   :  { %v786_v63 = vrot.slane %v784_v52, 1  ;;  %v791_v0 = vrot.slane %v789_v54, 1  ;;  %v3042_v55 = vpack.c.bf16 %v479_v59, %v478_v58  ;;  %v2536_v1 = vunpack.c.h.bf16 %v2573_v47  ;;  %v2574_v47 = vld [vmem:[%s5121_s0 + $0xf0] sm:$0xff]  }
  0x59   :  { %1011 = vrot.lane.b32.xlu1 %v3023_v26, %s2731_s12  ;;  %1009 = vrot.lane.b32.xlu0 %v756_v2, %s2731_s12  ;;  %v480_v3 = vsel %vm276_vm5, %v174_v41, %v378_v61  ;;  %v180_v5 = vunpack.c.l.bf16 %v78_v57  ;;  %vm280_vm6 = vcmp.ge.f32.partialorder %v2535_v38, 0.0  ;;  %v382_v6 = vmul.f32 0.2, %v2535_v38 }
  0x5a   :  { %v787_v7 = vor.u32 %v786_v63, %v782_v51  ;;  %v1148_v8 = vshll.u32 %v3042_v55, 16  ;;  %v565_v9 = vpack.c.bf16 %v480_v3, %v480_v3  ;;  %v1146_v10 = vshrl.u32 %v3042_v55, 16 }
  0x5b   :  { %vm281_vm7 = vcmp.ge.f32.partialorder %v2536_v1, 0.0  ;;  %vm282_vm9 = vcmp.ge.f32.partialorder %v180_v5, 0.0  ;;  %v383_v13 = vmul.f32 0.2, %v2536_v1  ;;  %v384_v14 = vmul.f32 0.2, %v180_v5 }
  0x5c   :  { %v3054_v2 = vsel %vm600_vm8, %v787_v7, %v791_v0  ;;  %v1150_v16 = vrot.slane %v1148_v8, 1  ;;  %v1153_v17 = vshll.u32 %v565_v9, 16  ;;  %v484_v18 = vsel %vm280_vm6, %v2535_v38, %v382_v6 }
  0x5d   :  { %1107 = vrot.lane.b32.xlu1 %v3008_v12, %s2730_s27  ;;  %1105 = vrot.lane.b32.xlu0 %v2994_v56, %s2730_s27  ;;  %v485_v21 = vsel %vm281_vm7, %v2536_v1, %v383_v13  ;;  %v486_v23 = vsel %vm282_vm9, %v180_v5, %v384_v14  ;;  %v175_v25 = vunpack.c.l.bf16 %v73_v11  ;;  %v176_v28 = vunpack.c.h.bf16 %v73_v11 }
  0x5e   :  { %v1151_v30 = vor.u32 %v1150_v16, %v1146_v10  ;;  %v1155_v29 = vrot.slane %v1153_v17, 1  ;;  %v3063_v31 = vpack.c.bf16 %v485_v21, %v484_v18  ;;  %v569_v32 = vpack.c.bf16 %v486_v23, %v486_v23 }
  0x5f   :  { %v177_v33 = vunpack.c.l.bf16 %v75_v20  ;;  %vm277_vm10 = vcmp.ge.f32.partialorder %v175_v25, 0.0  ;;  %vm278_vm11 = vcmp.ge.f32.partialorder %v176_v28, 0.0  ;;  %v379_v35 = vmul.f32 0.2, %v175_v25 }
  0x60   :  { %v1156_v37 = vsel %vm600_vm8, %v1151_v30, %v1155_v29  ;;  %v806_v40 = vshrl.u32 %v3063_v31, 16  ;;  %v808_v41 = vshll.u32 %v3063_v31, 16  ;;  %v813_v44 = vshll.u32 %v569_v32, 16 }
  0x61   :  { %1195 = vrot.lane.b32.xlu1 %v3035_v50, %s2732_s25  ;;  %1193 = vrot.lane.b32.xlu0 %v3023_v26, %s2732_s25  ;;  %vm279_vm12 = vcmp.ge.f32.partialorder %v177_v33, 0.0  ;;  %v380_v48 = vmul.f32 0.2, %v176_v28  ;;  %v381_v49 = vmul.f32 0.2, %v177_v33  ;;  %v481_v51 = vsel %vm277_vm10, %v175_v25, %v379_v35  ;;  %v85_v25 = vld [vmem:[%s5121_s0 + $0xfc] sm:$0xff]  }
  0x62   :  { %v810_v52 = vrot.slane %v808_v41, 1  ;;  %v815_v54 = vrot.slane %v813_v44, 1  ;;  %v181_v57 = vunpack.c.l.bf16 %v79_v36  ;;  %v182_v58 = vunpack.c.h.bf16 %v79_v36  ;;  %v84_v26 = vld [vmem:[%s5121_s0 + $0xf8] sm:$0x1] }
  0x63   :  { %v482_v59 = vsel %vm278_vm11, %v176_v28, %v380_v48  ;;  %v483_v61 = vsel %vm279_vm12, %v177_v33, %v381_v49  ;;  %v183_v38 = vunpack.c.l.bf16 %v81_v46  ;;  %v2539_v63 = vunpack.c.l.bf16 %v2574_v47 }
  0x64   :  { %v811_v0 = vor.u32 %v810_v52, %v806_v40  ;;  %v3082_v1 = vpack.c.bf16 %v482_v59, %v481_v51  ;;  %v567_v3 = vpack.c.bf16 %v483_v61, %v483_v61  ;;  %vm283_vm13 = vcmp.ge.f32.partialorder %v181_v57, 0.0  ;;  %v2575_v59 = vld [vmem:[%s5121_s0 + $0x108] sm:$0xff]  }
  0x65   :  { %1015 = vrot.lane.b32.xlu1 %v3054_v2, %s2731_s12  ;;  %1013 = vrot.lane.b32.xlu0 %v3035_v50, %s2731_s12  ;;  %vm284_vm14 = vcmp.ge.f32.partialorder %v182_v58, 0.0  ;;  %v385_v5 = vmul.f32 0.2, %v181_v57  ;;  %v386_v6 = vmul.f32 0.2, %v182_v58  ;;  %vm285_vm15 = vcmp.ge.f32.partialorder %v183_v38, 0.0 }
  0x66   :  { %v3092_v7 = vsel %vm600_vm8, %v811_v0, %v815_v54  ;;  %v794_v8 = vshrl.u32 %v3082_v1, 16  ;;  %v796_v9 = vshll.u32 %v3082_v1, 16  ;;  %v801_v10 = vshll.u32 %v567_v3, 16  ;;  %v90_v0 = vld [vmem:[%s5121_s0 + $0x110] sm:$0x1] }
  0x67   :  { %v487_v11 = vsel %vm283_vm13, %v181_v57, %v385_v5  ;;  %v488_v13 = vsel %vm284_vm14, %v182_v58, %v386_v6  ;;  %v387_v14 = vmul.f32 0.2, %v183_v38  ;;  %v2540_v16 = vunpack.c.h.bf16 %v2574_v47 }
  0x68   :  { %v798_v17 = vrot.slane %v796_v9, 1  ;;  %v803_v18 = vrot.slane %v801_v10, 1  ;;  %v3096_v20 = vpack.c.bf16 %v488_v13, %v487_v11  ;;  %v186_v50 = vunpack.c.l.bf16 %v84_v26 }
  0x69   :  { %1111 = vrot.lane.b32.xlu1 %v3042_v55, %s2730_s27  ;;  %1109 = vrot.lane.b32.xlu0 %v3026_v45, %s2730_s27  ;;  %v489_v21 = vsel %vm285_vm15, %v183_v38, %v387_v14  ;;  %vm286_vm0 = vcmp.ge.f32.partialorder %v2539_v63, 0.0  ;;  %vm287_vm1 = vcmp.ge.f32.partialorder %v2540_v16, 0.0  ;;  %v388_v23 = vmul.f32 0.2, %v2539_v63  ;;  %v87_v55 = vld [vmem:[%s5121_s0 + $0x104] sm:$0x1] }
  0x6a   :  { %v799_v28 = vor.u32 %v798_v17, %v794_v8  ;;  %v571_v30 = vpack.c.bf16 %v489_v21, %v489_v21  ;;  %v818_v29 = vshrl.u32 %v3096_v20, 16  ;;  %v820_v32 = vshll.u32 %v3096_v20, 16  ;;  %v91_v21 = vld [vmem:[%s5121_s0 + $0x114] sm:$0xff]  }
  0x6b   :  { %vm288_vm2 = vcmp.ge.f32.partialorder %v186_v50, 0.0  ;;  %v389_v33 = vmul.f32 0.2, %v2540_v16  ;;  %v390_v35 = vmul.f32 0.2, %v186_v50  ;;  %v490_v36 = vsel %vm286_vm0, %v2539_v63, %v388_v23 }
  0x6c   :  { %v804_v40 = vsel %vm600_vm8, %v799_v28, %v803_v18  ;;  %v822_v41 = vrot.slane %v820_v32, 1  ;;  %v825_v44 = vshll.u32 %v571_v30, 16  ;;  %v187_v46 = vunpack.c.l.bf16 %v85_v25  ;;  %v93_v28 = vld [vmem:[%s5121_s0 + $0x11c] sm:$0x1] }
  0x6d   :  { %1199 = vrot.lane.b32.xlu1 %v1156_v37, %s2732_s25  ;;  %1197 = vrot.lane.b32.xlu0 %v3054_v2, %s2732_s25  ;;  %v491_v47 = vsel %vm287_vm1, %v2540_v16, %v389_v33  ;;  %v492_v48 = vsel %vm288_vm2, %v186_v50, %v390_v35  ;;  %v188_v49 = vunpack.c.h.bf16 %v85_v25  ;;  %v189_v51 = vunpack.c.l.bf16 %v87_v55 }
  0x6e   :  { %v823_v52 = vor.u32 %v822_v41, %v818_v29  ;;  %v827_v54 = vrot.slane %v825_v44, 1  ;;  %v3115_v57 = vpack.c.bf16 %v491_v47, %v490_v36  ;;  %v573_v58 = vpack.c.bf16 %v492_v48, %v492_v48 }
  0x6f   :  { %vm289_vm3 = vcmp.ge.f32.partialorder %v187_v46, 0.0  ;;  %vm290_vm4 = vcmp.ge.f32.partialorder %v188_v49, 0.0  ;;  %v391_v37 = vmul.f32 0.2, %v187_v46  ;;  %v392_v61 = vmul.f32 0.2, %v188_v49 }
  0x70   :  { %v830_v2 = vshrl.u32 %v3115_v57, 16  ;;  %v832_v38 = vshll.u32 %v3115_v57, 16  ;;  %v837_v63 = vshll.u32 %v573_v58, 16  ;;  %vm291_vm5 = vcmp.ge.f32.partialorder %v189_v51, 0.0 }
  0x71   :  { %1019 = vrot.lane.b32.xlu1 %v3092_v7, %s2731_s12  ;;  %1017 = vrot.lane.b32.xlu0 %v804_v40, %s2731_s12  ;;  %v493_v3 = vsel %vm289_vm3, %v187_v46, %v391_v37  ;;  %v494_v26 = vsel %vm290_vm4, %v188_v49, %v392_v61  ;;  %v393_v5 = vmul.f32 0.2, %v189_v51  ;;  %v2543_v9 = vunpack.c.l.bf16 %v2575_v59 }
  0x72   :  { %v834_v6 = vrot.slane %v832_v38, 1  ;;  %v3128_v8 = vpack.c.bf16 %v494_v26, %v493_v3  ;;  %v828_v10 = vsel %vm600_vm8, %v823_v52, %v827_v54  ;;  %v2544_v13 = vunpack.c.h.bf16 %v2575_v59 }
  0x73   :  { %v495_v11 = vsel %vm291_vm5, %v189_v51, %v393_v5  ;;  %v192_v14 = vunpack.c.l.bf16 %v90_v0  ;;  %v839_v16 = vrot.slane %v837_v63, 1  ;;  %vm292_vm6 = vcmp.ge.f32.partialorder %v2543_v9, 0.0  ;;  %v96_v63 = vld [vmem:[%s5121_s0 + $0x128] sm:$0x1] }
  0x74   :  { %v575_v17 = vpack.c.bf16 %v495_v11, %v495_v11  ;;  %v842_v18 = vshrl.u32 %v3128_v8, 16  ;;  %v844_v50 = vshll.u32 %v3128_v8, 16  ;;  %v835_v23 = vor.u32 %v834_v6, %v830_v2 }
  0x75   :  { %1115 = vrot.lane.b32.xlu1 %v3096_v20, %s2730_s27  ;;  %1113 = vrot.lane.b32.xlu0 %v3063_v31, %s2730_s27  ;;  %vm293_vm7 = vcmp.ge.f32.partialorder %v2544_v13, 0.0  ;;  %v394_v25 = vmul.f32 0.2, %v2543_v9  ;;  %vm294_vm9 = vcmp.ge.f32.partialorder %v192_v14, 0.0  ;;  %v395_v32 = vmul.f32 0.2, %v2544_v13 }
  0x76   :  { %v846_v30 = vrot.slane %v844_v50, 1  ;;  %v849_v29 = vshll.u32 %v575_v17, 16  ;;  %v396_v55 = vmul.f32 0.2, %v192_v14  ;;  %v193_v35 = vunpack.c.l.bf16 %v91_v21  ;;  %v97_v50 = vld [vmem:[%s5121_s0 + $0x12c] sm:$0xff]  }
  0x77   :  { %v496_v33 = vsel %vm292_vm6, %v2543_v9, %v394_v25  ;;  %v194_v36 = vunpack.c.h.bf16 %v91_v21  ;;  %v497_v44 = vsel %vm293_vm7, %v2544_v13, %v395_v32  ;;  %v195_v46 = vunpack.c.l.bf16 %v93_v28  ;;  %v99_v21 = vld [vmem:[%s5121_s0 + $0x134] sm:$0x1] }
  0x78   :  { %v847_v40 = vor.u32 %v846_v30, %v842_v18  ;;  %v851_v41 = vrot.slane %v849_v29, 1  ;;  %v498_v47 = vsel %vm294_vm9, %v192_v14, %v396_v55  ;;  %v3146_v48 = vpack.c.bf16 %v497_v44, %v496_v33 }
  0x79   :  { %1203 = vrot.lane.b32.xlu1 %v828_v10, %s2732_s25  ;;  %1201 = vrot.lane.b32.xlu0 %v3092_v7, %s2732_s25  ;;  %vm295_vm10 = vcmp.ge.f32.partialorder %v193_v35, 0.0  ;;  %vm296_vm11 = vcmp.ge.f32.partialorder %v194_v36, 0.0  ;;  %v840_v49 = vsel %vm600_vm8, %v835_v23, %v839_v16  ;;  %v577_v51 = vpack.c.bf16 %v498_v47, %v498_v47  ;;  %v2576_v7 = vld [vmem:[%s5121_s0 + $0x120] sm:$0xff]  }
  0x7a   :  { %v397_v52 = vmul.f32 0.2, %v193_v35  ;;  %v398_v54 = vmul.f32 0.2, %v194_v36  ;;  %v854_v58 = vshrl.u32 %v3146_v48, 16  ;;  %v856_v59 = vshll.u32 %v3146_v48, 16 }
  0x7b   :  { %vm297_vm12 = vcmp.ge.f32.partialorder %v195_v46, 0.0  ;;  %v399_v37 = vmul.f32 0.2, %v195_v46  ;;  %v861_v61 = vshll.u32 %v577_v51, 16  ;;  %v3159_v0 = vpop.permute.xlu1 %1081  ;;  %v3162_v3 = vsel %vm600_vm8, %v847_v40, %v851_v41 }
  0x7c   :  { %v499_v2 = vsel %vm295_vm10, %v193_v35, %v397_v52  ;;  %v500_v38 = vsel %vm296_vm11, %v194_v36, %v398_v54  ;;  %v858_v26 = vrot.slane %v856_v59, 1  ;;  %vm1233_vm13 = vcmask 261120   ;;  %v3178_v28 = vpop.permute.xlu0 %1085 }
  0x7d   :  { %1023 = vrot.lane.b32.xlu1 %v840_v49, %s2731_s12  ;;  %1021 = vrot.lane.b32.xlu0 %v828_v10, %s2731_s12  ;;  %v3164_v5 = vpack.c.bf16 %v500_v38, %v499_v2  ;;  %v501_v6 = vsel %vm297_vm12, %v195_v46, %v399_v37  ;;  %v863_v9 = vrot.slane %v861_v61, 1  ;;  %vm1298_vm14 = vcmask 523264  }
  0x7e   :  { %v579_v11 = vpack.c.bf16 %v501_v6, %v501_v6  ;;  %v2547_v13 = vunpack.c.l.bf16 %v2576_v7  ;;  %v2548_v14 = vunpack.c.h.bf16 %v2576_v7  ;;  %v859_v16 = vor.u32 %v858_v26, %v854_v58  ;;  %v2577_v58 = vld [vmem:[%s5121_s0 + $0x138] sm:$0xff]  }
  0x7f   :  { %v866_v17 = vshrl.u32 %v3164_v5, 16  ;;  %v868_v10 = vshll.u32 %v3164_v5, 16  ;;  %v198_v18 = vunpack.c.l.bf16 %v96_v63  ;;  %v199_v36 = vunpack.c.l.bf16 %v97_v50  ;;  %v1084_v40 = vpop.permute.xlu1 %1083  ;;  %v102_v63 = vld [vmem:[%s5121_s0 + $0x140] sm:$0x1] }
  0x80   :  { %v873_v23 = vshll.u32 %v579_v11, 16  ;;  %vm298_vm15 = vcmp.ge.f32.partialorder %v2547_v13, 0.0  ;;  %vm299_vm0 = vcmp.ge.f32.partialorder %v2548_v14, 0.0  ;;  %v400_v25 = vmul.f32 0.2, %v2547_v13 }
  0x81   :  { %1119 = vrot.lane.b32.xlu1 %v3128_v8, %s2730_s27  ;;  %1117 = vrot.lane.b32.xlu0 %v3115_v57, %s2730_s27  ;;  %v3181_v30 = vsel %vm600_vm8, %v859_v16, %v863_v9  ;;  %v870_v29 = vrot.slane %v868_v10, 1  ;;  %vm300_vm1 = vcmp.ge.f32.partialorder %v198_v18, 0.0  ;;  %v401_v32 = vmul.f32 0.2, %v2548_v14 }
  0x82   :  { %v875_v55 = vrot.slane %v873_v23, 1  ;;  %v402_v33 = vmul.f32 0.2, %v198_v18  ;;  %v502_v35 = vsel %vm298_vm15, %v2547_v13, %v400_v25  ;;  %v200_v46 = vunpack.c.h.bf16 %v97_v50 }
  0x83   :  { %v871_v41 = vor.u32 %v870_v29, %v866_v17  ;;  %v503_v44 = vsel %vm299_vm0, %v2548_v14, %v401_v32  ;;  %v201_v47 = vunpack.c.l.bf16 %v99_v21  ;;  %vm301_vm2 = vcmp.ge.f32.partialorder %v199_v36, 0.0 }
  0x84   :  { %v504_v51 = vsel %vm300_vm1, %v198_v18, %v402_v33  ;;  %v3183_v52 = vpack.c.bf16 %v503_v44, %v502_v35  ;;  %v403_v54 = vmul.f32 0.2, %v199_v36  ;;  %vm1363_vm3 = vcmask 785408   ;;  %v3205_v10 = vpop.permute.xlu1 %1087  ;;  %v105_v44 = vld [vmem:[%s5121_s0 + $0x14c] sm:$0x1] }
  0x85   :  { %1207 = vrot.lane.b32.xlu1 %v3162_v3, %s2732_s25  ;;  %1205 = vrot.lane.b32.xlu0 %v840_v49, %s2732_s25  ;;  %v3192_v59 = vsel %vm600_vm8, %v871_v41, %v875_v55  ;;  %v581_v37 = vpack.c.bf16 %v504_v51, %v504_v51  ;;  %vm302_vm4 = vcmp.ge.f32.partialorder %v200_v46, 0.0  ;;  %v404_v7 = vmul.f32 0.2, %v200_v46 }
  0x86   :  { %v878_v61 = vshrl.u32 %v3183_v52, 16  ;;  %v880_v2 = vshll.u32 %v3183_v52, 16  ;;  %v505_v38 = vsel %vm301_vm2, %v199_v36, %v403_v54  ;;  %vm303_vm5 = vcmp.ge.f32.partialorder %v201_v47, 0.0 }
  0x87   :  { %v986_v26 = vpop.permute.xlu0 %985  ;;  %v885_v6 = vshll.u32 %v581_v37, 16  ;;  %v506_v49 = vsel %vm302_vm4, %v200_v46, %v404_v7  ;;  %v405_v9 = vmul.f32 0.2, %v201_v47  ;;  %v2551_v11 = vunpack.c.l.bf16 %v2577_v58  ;;  %v2578_v46 = vld [vmem:[%s5121_s0 + $0x150] sm:$0xff]  }
  0x88   :  { %v1235_v13 = vsel %vm1233_vm13, %v2790_v39, %v986_v26  ;;  %v882_v14 = vrot.slane %v880_v2, 1  ;;  %v3201_v16 = vpack.c.bf16 %v506_v49, %v505_v38  ;;  %v2552_v17 = vunpack.c.h.bf16 %v2577_v58 }
  0x89   :  { %1027 = vrot.lane.b32.xlu1 %v3181_v30, %s2731_s12  ;;  %1025 = vrot.lane.b32.xlu0 %v3162_v3, %s2731_s12  ;;  %v1300_v18 = vsel %vm1298_vm14, %v1235_v13, %v3159_v0  ;;  %v887_v50 = vrot.slane %v885_v6, 1  ;;  %v507_v21 = vsel %vm303_vm5, %v201_v47, %v405_v9  ;;  %v204_v23 = vunpack.c.l.bf16 %v102_v63  ;;  %v103_v3 = vld [vmem:[%s5121_s0 + $0x144] sm:$0xff]  }
  0x8a   :  { %v883_v39 = vor.u32 %v882_v14, %v878_v61  ;;  %v583_v25 = vpack.c.bf16 %v507_v21, %v507_v21  ;;  %v890_v29 = vshrl.u32 %v3201_v16, 16  ;;  %v892_v32 = vshll.u32 %v3201_v16, 16 }
  0x8b   :  { %v988_v55 = vpop.permute.xlu0 %987  ;;  %vm304_vm6 = vcmp.ge.f32.partialorder %v2551_v11, 0.0  ;;  %vm305_vm7 = vcmp.ge.f32.partialorder %v2552_v17, 0.0  ;;  %vm306_vm9 = vcmp.ge.f32.partialorder %v204_v23, 0.0  ;;  %v406_v33 = vmul.f32 0.2, %v2551_v11 }
  0x8c   :  { %v1237_v0 = vsel %vm1233_vm13, %v2773_v19, %v988_v55  ;;  %v3220_v35 = vsel %vm600_vm8, %v883_v39, %v887_v50  ;;  %v894_v36 = vrot.slane %v892_v32, 1  ;;  %v897_v41 = vshll.u32 %v583_v25, 16 }
  0x8d   :  { %1123 = vrot.lane.b32.xlu1 %v3164_v5, %s2730_s27  ;;  %1121 = vrot.lane.b32.xlu0 %v3146_v48, %s2730_s27  ;;  %v1302_v19 = vsel %vm1298_vm14, %v1237_v0, %v1084_v40  ;;  %v407_v47 = vmul.f32 0.2, %v2552_v17  ;;  %v408_v51 = vmul.f32 0.2, %v204_v23  ;;  %v508_v54 = vsel %vm304_vm6, %v2551_v11, %v406_v33 }
  0x8e   :  { %v895_v58 = vor.u32 %v894_v36, %v890_v29  ;;  %v899_v37 = vrot.slane %v897_v41, 1  ;;  %v205_v7 = vunpack.c.l.bf16 %v103_v3  ;;  %v206_v61 = vunpack.c.h.bf16 %v103_v3 }
  0x8f   :  { %v1172_v2 = vpop.permute.xlu1 %1171  ;;  %v1170_v38 = vpop.permute.xlu0 %1169  ;;  %v509_v63 = vsel %vm305_vm7, %v2552_v17, %v407_v47  ;;  %v510_v26 = vsel %vm306_vm9, %v204_v23, %v408_v51  ;;  %v207_v6 = vunpack.c.l.bf16 %v105_v44  ;;  %v3236_v49 = vunpack.c.l.bf16 %v2578_v46 }
  0x90   :  { %v1365_v9 = vsel %vm1363_vm3, %v1300_v18, %v1170_v38  ;;  %v1368_v40 = vsel %vm1363_vm3, %v1302_v19, %v1172_v2  ;;  %v3241_v13 = vsel %vm600_vm8, %v895_v58, %v899_v37  ;;  %v3243_v11 = vpack.c.bf16 %v509_v63, %v508_v54 }
  0x91   :  { %1211 = vrot.lane.b32.xlu1 %v3192_v59, %s2732_s25  ;;  %1209 = vrot.lane.b32.xlu0 %v3181_v30, %s2732_s25  ;;  %v585_v14 = vpack.c.bf16 %v510_v26, %v510_v26  ;;  %vm307_vm10 = vcmp.ge.f32.partialorder %v205_v7, 0.0  ;;  %vm308_vm11 = vcmp.ge.f32.partialorder %v206_v61, 0.0  ;;  %v409_v17 = vmul.f32 0.2, %v205_v7  ;;  %v108_v30 = vld [vmem:[%s5121_s0 + $0x158] sm:$0x1] }
  0x92   :  { %2637 = vmatprep.mubr.bf16.mxu0 %v1365_v9  ;;  %v902_v18 = vshrl.u32 %v3243_v11, 16  ;;  %v904_v50 = vshll.u32 %v3243_v11, 16  ;;  %v410_v21 = vmul.f32 0.2, %v206_v61  ;;  %vm309_vm12 = vcmp.ge.f32.partialorder %v207_v6, 0.0 }
  0x93   :  { %v992_v23 = vpop.permute.xlu1 %991  ;;  %2638 = vmatmul.mubr.bf16.vlgmr.msra.gmra.mrb[0].mxu0 %v1368_v40  ;;  %v990_v39 = vpop.permute.xlu0 %989  ;;  %v909_v25 = vshll.u32 %v585_v14, 16  ;;  %v511_v29 = vsel %vm307_vm10, %v205_v7, %v409_v17  ;;  %v411_v32 = vmul.f32 0.2, %v207_v6  ;;  %v2556_v55 = vunpack.c.h.bf16 %v2578_v46 }
  0x94   :  { %v1241_v33 = vsel %vm1233_vm13, %v2778_v24, %v992_v23  ;;  %v1239_v3 = vsel %vm1233_vm13, %v2788_v34, %v990_v39  ;;  %v906_v0 = vrot.slane %v904_v50, 1  ;;  %v512_v36 = vsel %vm308_vm11, %v206_v61, %v410_v21 }
  0x95   :  { %1031 = vrot.lane.b32.xlu1 %v3220_v35, %s2731_s12  ;;  %1029 = vrot.lane.b32.xlu0 %v3192_v59, %s2731_s12  ;;  %v1304_v41 = vsel %vm1298_vm14, %v1239_v3, %v3178_v28  ;;  %v1306_v44 = vsel %vm1298_vm14, %v1241_v33, %v3205_v10  ;;  %v3267_v46 = vpack.c.bf16 %v512_v36, %v511_v29  ;;  %v911_v19 = vrot.slane %v909_v25, 1  ;;  %v109_v28 = vld [vmem:[%s5121_s0 + $0x15c] sm:$0xff]   ;;  %v111_v10 = vld [vmem:[%s5121_s0 + $0x164] sm:$0x1] }
  0x96   :  { %v907_v24 = vor.u32 %v906_v0, %v902_v18  ;;  %v513_v34 = vsel %vm309_vm12, %v207_v6, %v411_v32  ;;  %v210_v47 = vunpack.c.l.bf16 %v108_v30  ;;  %vm310_vm15 = vcmp.ge.f32.partialorder %v3236_v49, 0.0  ;;  %v2579_v33 = vld [vmem:[%s5121_s0 + $0x168] sm:$0xff]  }
  0x97   :  { %v1176_v51 = vpop.permute.xlu1 %1175  ;;  %v1174_v54 = vpop.permute.xlu0 %1173  ;;  %v587_v58 = vpack.c.bf16 %v513_v34, %v513_v34  ;;  %v914_v37 = vshrl.u32 %v3267_v46, 16  ;;  %v916_v59 = vshll.u32 %v3267_v46, 16  ;;  %vm311_vm0 = vcmp.ge.f32.partialorder %v2556_v55, 0.0 }
  0x98   :  { %v1371_v7 = vsel %vm1363_vm3, %v1304_v41, %v1174_v54  ;;  %v1374_v61 = vsel %vm1363_vm3, %v1306_v44, %v1176_v51  ;;  %vm312_vm1 = vcmp.ge.f32.partialorder %v210_v47, 0.0  ;;  %v412_v63 = vmul.f32 0.2, %v3236_v49 }
  0x99   :  { %1127 = vrot.lane.b32.xlu1 %v3201_v16, %s2730_s27  ;;  %1125 = vrot.lane.b32.xlu0 %v3183_v52, %s2730_s27  ;;  %v918_v2 = vrot.slane %v916_v59, 1  ;;  %v921_v38 = vshll.u32 %v587_v58, 16  ;;  %v413_v26 = vmul.f32 0.2, %v2556_v55  ;;  %v414_v6 = vmul.f32 0.2, %v210_v47 }
  0x9a   :  { %2641 = vmatprep.mubr.bf16.mxu0 %v1371_v7  ;;  %v211_v9 = vunpack.c.l.bf16 %v109_v28  ;;  %v212_v40 = vunpack.c.h.bf16 %v109_v28  ;;  %v213_v14 = vunpack.c.l.bf16 %v111_v10  ;;  %v514_v23 = vsel %vm310_vm15, %v3236_v49, %v412_v63 }
  0x9b   :  { %v996_v17 = vpop.permute.xlu1 %995  ;;  %2642 = vmatmul.mubr.bf16.gmra.mrb[4].mxu0 %v1374_v61  ;;  %v994_v18 = vpop.permute.xlu0 %993  ;;  %v919_v50 = vor.u32 %v918_v2, %v914_v37  ;;  %v923_v21 = vrot.slane %v921_v38, 1  ;;  %v515_v39 = vsel %vm311_vm0, %v2556_v55, %v413_v26  ;;  %v3293_v29 = vsel %vm600_vm8, %v907_v24, %v911_v19  ;;  %v115_v38 = vld [vmem:[%s5121_s0 + $0x174] sm:$0xff]  }
  0x9c   :  { %v1245_v25 = vsel %vm1233_vm13, %v2855_v62, %v996_v17  ;;  %v516_v32 = vsel %vm312_vm1, %v210_v47, %v414_v6  ;;  %v3296_v30 = vpack.c.bf16 %v515_v39, %v514_v23  ;;  %v1243_v49 = vsel %vm1233_vm13, %v2800_v53, %v994_v18  ;;  %v114_v53 = vld [vmem:[%s5121_s0 + $0x170] sm:$0x1] }
  0x9d   :  { %1215 = vrot.lane.b32.xlu1 %v3241_v13, %s2732_s25  ;;  %1213 = vrot.lane.b32.xlu0 %v3220_v35, %s2732_s25  ;;  %v3308_v62 = vsel %vm600_vm8, %v919_v50, %v923_v21  ;;  %v589_v55 = vpack.c.bf16 %v516_v32, %v516_v32  ;;  %vm313_vm2 = vcmp.ge.f32.partialorder %v211_v9, 0.0  ;;  %vm314_vm4 = vcmp.ge.f32.partialorder %v212_v40, 0.0 }
  0x9e   :  { %v928_v3 = vshll.u32 %v3296_v30, 16  ;;  %v415_v0 = vmul.f32 0.2, %v211_v9  ;;  %v416_v36 = vmul.f32 0.2, %v212_v40  ;;  %vm315_vm5 = vcmp.ge.f32.partialorder %v213_v14, 0.0 }
  0x9f   :  { %v1092_v41 = vpop.permute.xlu1 %1091  ;;  %v1090_v44 = vpop.permute.xlu0 %1089  ;;  %v933_v24 = vshll.u32 %v589_v55, 16  ;;  %v417_v19 = vmul.f32 0.2, %v213_v14  ;;  %v2559_v34 = vunpack.c.l.bf16 %v2579_v33  ;;  %v926_v47 = vshrl.u32 %v3296_v30, 16 }
  0xa0   :  { %v1310_v35 = vsel %vm1298_vm14, %v1245_v25, %v1092_v41  ;;  %v930_v51 = vrot.slane %v928_v3, 1  ;;  %v517_v54 = vsel %vm313_vm2, %v211_v9, %v415_v0  ;;  %v1308_v58 = vsel %vm1298_vm14, %v1243_v49, %v1090_v44 }
  0xa1   :  { %1035 = vrot.lane.b32.xlu1 %v3293_v29, %s2731_s12  ;;  %1033 = vrot.lane.b32.xlu0 %v3241_v13, %s2731_s12  ;;  %v518_v37 = vsel %vm314_vm4, %v212_v40, %v416_v36  ;;  %v519_v59 = vsel %vm315_vm5, %v213_v14, %v417_v19  ;;  %v2560_v28 = vunpack.c.h.bf16 %v2579_v33  ;;  %v935_v10 = vrot.slane %v933_v24, 1  ;;  %v117_v36 = vld [vmem:[%s5121_s0 + $0x17c] sm:$0x1]  ;;  %v2580_v19 = vld [vmem:[%s5121_s0 + $0x180] sm:$0xff]  }
  0xa2   :  { %v3322_v7 = vpack.c.bf16 %v518_v37, %v517_v54  ;;  %v591_v61 = vpack.c.bf16 %v519_v59, %v519_v59  ;;  %v216_v2 = vunpack.c.l.bf16 %v114_v53  ;;  %vm316_vm6 = vcmp.ge.f32.partialorder %v2559_v34, 0.0 }
  0xa3   :  { %v1180_v63 = vpop.permute.xlu1 %1179  ;;  %v1178_v26 = vpop.permute.xlu0 %1177  ;;  %vm317_vm7 = vcmp.ge.f32.partialorder %v2560_v28, 0.0  ;;  %v418_v6 = vmul.f32 0.2, %v2559_v34  ;;  %v419_v9 = vmul.f32 0.2, %v2560_v28  ;;  %v931_v14 = vor.u32 %v930_v51, %v926_v47 }
  0xa4   :  { %v1377_v13 = vsel %vm1363_vm3, %v1308_v58, %v1178_v26  ;;  %v1380_v40 = vsel %vm1363_vm3, %v1310_v35, %v1180_v63  ;;  %v938_v17 = vshrl.u32 %v3322_v7, 16  ;;  %v940_v18 = vshll.u32 %v3322_v7, 16 }
  0xa5   :  { %1131 = vrot.lane.b32.xlu1 %v3267_v46, %s2730_s27  ;;  %1129 = vrot.lane.b32.xlu0 %v3243_v11, %s2730_s27  ;;  %v945_v50 = vshll.u32 %v591_v61, 16  ;;  %vm318_vm9 = vcmp.ge.f32.partialorder %v216_v2, 0.0  ;;  %v420_v21 = vmul.f32 0.2, %v216_v2  ;;  %v520_v23 = vsel %vm316_vm6, %v2559_v34, %v418_v6 }
  0xa6   :  { %2645 = vmatprep.mubr.bf16.mxu0 %v1377_v13  ;;  %v521_v39 = vsel %vm317_vm7, %v2560_v28, %v419_v9  ;;  %v217_v25 = vunpack.c.l.bf16 %v115_v38  ;;  %v218_v32 = vunpack.c.h.bf16 %v115_v38  ;;  %v942_v55 = vrot.slane %v940_v18, 1 }
  0xa7   :  { %v1000_v33 = vpop.permute.xlu1 %999  ;;  %2646 = vmatmul.mubr.bf16.gmra.mrb[8].mxu0 %v1380_v40  ;;  %v998_v49 = vpop.permute.xlu0 %997  ;;  %v522_v3 = vsel %vm318_vm9, %v216_v2, %v420_v21  ;;  %v3335_v0 = vpack.c.bf16 %v521_v39, %v520_v23  ;;  %v3341_v41 = vsel %vm600_vm8, %v931_v14, %v935_v10  ;;  %v947_v44 = vrot.slane %v945_v50, 1 }
  0xa8   :  { %v593_v24 = vpack.c.bf16 %v522_v3, %v522_v3  ;;  %v1249_v34 = vsel %vm1233_vm13, %v2888_v42, %v1000_v33  ;;  %v943_v53 = vor.u32 %v942_v55, %v938_v17  ;;  %vm319_vm10 = vcmp.ge.f32.partialorder %v217_v25, 0.0  ;;  %v123_v33 = vld [vmem:[%s5121_s0 + $0x194] sm:$0x1] }
  0xa9   :  { %1219 = vrot.lane.b32.xlu1 %v3308_v62, %s2732_s25  ;;  %1217 = vrot.lane.b32.xlu0 %v3293_v29, %s2732_s25  ;;  %v952_v35 = vshll.u32 %v3335_v0, 16  ;;  %vm320_vm11 = vcmp.ge.f32.partialorder %v218_v32, 0.0  ;;  %v421_v47 = vmul.f32 0.2, %v217_v25  ;;  %v422_v51 = vmul.f32 0.2, %v218_v32 }
  0xaa   :  { %v219_v54 = vunpack.c.l.bf16 %v117_v36  ;;  %v1247_v58 = vsel %vm1233_vm13, %v2869_v15, %v998_v49  ;;  %v950_v42 = vshrl.u32 %v3335_v0, 16  ;;  %v2563_v28 = vunpack.c.l.bf16 %v2580_v19  ;;  %v120_v29 = vld [vmem:[%s5121_s0 + $0x188] sm:$0x1] }
  0xab   :  { %v1096_v37 = vpop.permute.xlu1 %1095  ;;  %v1094_v59 = vpop.permute.xlu0 %1093  ;;  %v2564_v10 = vunpack.c.h.bf16 %v2580_v19  ;;  %v948_v61 = vsel %vm600_vm8, %v943_v53, %v947_v44  ;;  %v954_v2 = vrot.slane %v952_v35, 1  ;;  %v957_v38 = vshll.u32 %v593_v24, 16 }
  0xac   :  { %v523_v63 = vsel %vm319_vm10, %v217_v25, %v421_v47  ;;  %v1314_v26 = vsel %vm1298_vm14, %v1249_v34, %v1096_v37  ;;  %v524_v15 = vsel %vm320_vm11, %v218_v32, %v422_v51  ;;  %vm321_vm12 = vcmp.ge.f32.partialorder %v219_v54, 0.0 }
  0xad   :  { %1039 = vrot.lane.b32.xlu1 %v3341_v41, %s2731_s12  ;;  %1037 = vrot.lane.b32.xlu0 %v3308_v62, %s2731_s12  ;;  %v423_v6 = vmul.f32 0.2, %v219_v54  ;;  %v1312_v9 = vsel %vm1298_vm14, %v1247_v58, %v1094_v59  ;;  %v3367_v13 = vpack.c.bf16 %v524_v15, %v523_v63  ;;  %v222_v40 = vunpack.c.l.bf16 %v120_v29  ;;  %v121_v62 = vld [vmem:[%s5121_s0 + $0x18c] sm:$0xff]  }
  0xae   :  { %vm322_vm15 = vcmp.ge.f32.partialorder %v2563_v28, 0.0  ;;  %vm323_vm0 = vcmp.ge.f32.partialorder %v2564_v10, 0.0  ;;  %v424_v50 = vmul.f32 0.2, %v2563_v28  ;;  %v425_v21 = vmul.f32 0.2, %v2564_v10 }
  0xaf   :  { %v1184_v14 = vpop.permute.xlu1 %1183  ;;  %v1182_v17 = vpop.permute.xlu0 %1181  ;;  %v525_v18 = vsel %vm321_vm12, %v219_v54, %v423_v6  ;;  %v955_v39 = vor.u32 %v954_v2, %v950_v42  ;;  %v959_v25 = vrot.slane %v957_v38, 1  ;;  %v964_v49 = vshll.u32 %v3367_v13, 16 }
  0xb0   :  { %v1383_v23 = vsel %vm1363_vm3, %v1312_v9, %v1182_v17  ;;  %v595_v32 = vpack.c.bf16 %v525_v18, %v525_v18  ;;  %vm324_vm1 = vcmp.ge.f32.partialorder %v222_v40, 0.0  ;;  %v426_v55 = vmul.f32 0.2, %v222_v40 }
  0xb1   :  { %1135 = vrot.lane.b32.xlu1 %v3322_v7, %s2730_s27  ;;  %1133 = vrot.lane.b32.xlu0 %v3296_v30, %s2730_s27  ;;  %v526_v3 = vsel %vm322_vm15, %v2563_v28, %v424_v50  ;;  %v1386_v36 = vsel %vm1363_vm3, %v1314_v26, %v1184_v14  ;;  %v527_v44 = vsel %vm323_vm0, %v2564_v10, %v425_v21  ;;  %v223_v24 = vunpack.c.l.bf16 %v121_v62 }
  0xb2   :  { %2649 = vmatprep.mubr.bf16.mxu0 %v1383_v23  ;;  %v224_v19 = vunpack.c.h.bf16 %v121_v62  ;;  %v528_v35 = vsel %vm324_vm1, %v222_v40, %v426_v55  ;;  %v3384_v47 = vpack.c.bf16 %v527_v44, %v526_v3  ;;  %v225_v51 = vunpack.c.l.bf16 %v123_v33 }
  0xb3   :  { %v1004_v34 = vpop.permute.xlu1 %1003  ;;  %2650 = vmatmul.mubr.bf16.gmra.mrb[12].mxu0 %v1386_v36  ;;  %v1002_v53 = vpop.permute.xlu0 %1001  ;;  %v960_v54 = vsel %vm600_vm8, %v955_v39, %v959_v25  ;;  %v962_v58 = vshrl.u32 %v3367_v13, 16  ;;  %v966_v37 = vrot.slane %v964_v49, 1  ;;  %v969_v59 = vshll.u32 %v595_v32, 16 }
  0xb4   :  { %v597_v42 = vpack.c.bf16 %v528_v35, %v528_v35  ;;  %vm325_vm2 = vcmp.ge.f32.partialorder %v223_v24, 0.0  ;;  %v976_v28 = vshll.u32 %v3384_v47, 16  ;;  %vm326_vm4 = vcmp.ge.f32.partialorder %v224_v19, 0.0 }
  0xb5   :  { %1223 = vrot.lane.b32.xlu1 %v948_v61, %s2732_s25  ;;  %1221 = vrot.lane.b32.xlu0 %v3341_v41, %s2732_s25  ;;  %v427_v10 = vmul.f32 0.2, %v223_v24  ;;  %v428_v29 = vmul.f32 0.2, %v224_v19  ;;  %v429_v63 = vmul.f32 0.2, %v225_v51  ;;  %v1253_v26 = vsel %vm1233_vm13, %v2922_v22, %v1004_v34 }
  0xb6   :  { %vm327_vm5 = vcmp.ge.f32.partialorder %v225_v51, 0.0  ;;  %v967_v41 = vor.u32 %v966_v37, %v962_v58  ;;  %v971_v6 = vrot.slane %v969_v59, 1  ;;  %v981_v9 = vshll.u32 %v597_v42, 16 }
  0xb7   :  { %v1100_v2 = vpop.permute.xlu1 %1099  ;;  %v1098_v38 = vpop.permute.xlu0 %1097  ;;  %v529_v15 = vsel %vm325_vm2, %v223_v24, %v427_v10  ;;  %v530_v40 = vsel %vm326_vm4, %v224_v19, %v428_v29  ;;  %v1251_v14 = vsel %vm1233_vm13, %v2907_v60, %v1002_v53  ;;  %v974_v17 = vshrl.u32 %v3384_v47, 16 }
  0xb8   :  { %v978_v18 = vrot.slane %v976_v28, 1  ;;  %v598_v50 = vpack.c.bf16 %v530_v40, %v529_v15  ;;  %v1316_v21 = vsel %vm1298_vm14, %v1251_v14, %v1098_v38  ;;  %v531_v23 = vsel %vm327_vm5, %v225_v51, %v429_v63 }
  0xb9   :  { %1043 = vrot.lane.b32.xlu1 %v960_v54, %s2731_s12  ;;  %1041 = vrot.lane.b32.xlu0 %v948_v61, %s2731_s12  ;;  %v1318_v61 = vsel %vm1298_vm14, %v1253_v26, %v1100_v2  ;;  %v972_v60 = vsel %vm600_vm8, %v967_v41, %v971_v6  ;;  %v983_v25 = vrot.slane %v981_v9, 1  ;;  %v599_v55 = vpack.c.bf16 %v531_v23, %v531_v23 }
  0xba   :  { %v979_v33 = vor.u32 %v978_v18, %v974_v17  ;;  %v1160_v49 = vshll.u32 %v598_v50, 16  ;;  %v1158_v24 = vshrl.u32 %v598_v50, 16 }
  0xbb   :  { %v1188_v22 = vpop.permute.xlu1 %1187  ;;  %v1186_v62 = vpop.permute.xlu0 %1185  ;;  %v1165_v34 = vshll.u32 %v599_v55, 16 }
  0xbc   :  { %v1389_v39 = vsel %vm1363_vm3, %v1316_v21, %v1186_v62  ;;  %v1392_v32 = vsel %vm1363_vm3, %v1318_v61, %v1188_v22  ;;  %v984_v44 = vsel %vm600_vm8, %v979_v33, %v983_v25  ;;  %v1162_v19 = vrot.slane %v1160_v49, 1 }
  0xbd   :  { %1139 = vrot.lane.b32.xlu1 %v3367_v13, %s2730_s27  ;;  %1137 = vrot.lane.b32.xlu0 %v3335_v0, %s2730_s27  ;;  %v1167_v59 = vrot.slane %v1165_v34, 1 }
  0xbe   :  { %2653 = vmatprep.mubr.bf16.mxu0 %v1389_v39  ;;  %v1163_v37 = vor.u32 %v1162_v19, %v1158_v24 }
  0xbf   :  { %v1008_v3 = vpop.permute.xlu1 %1007  ;;  %2654 = vmatmul.mubr.bf16.gmra.mrb[16].mxu0 %v1392_v32  ;;  %v1006_v36 = vpop.permute.xlu0 %1005 }
  0xc0   :  { %v1257_v51 = vsel %vm1233_vm13, %v2955_v4, %v1008_v3  ;;  %v1255_v58 = vsel %vm1233_vm13, %v2938_v43, %v1006_v36  ;;  %v1168_v4 = vsel %vm600_vm8, %v1163_v37, %v1167_v59  ;;  %vm1813_vm8 = vcmask 130048  }
  0xc1   :  { %1227 = vrot.lane.b32.xlu1 %v972_v60, %s2732_s25  ;;  %1225 = vrot.lane.b32.xlu0 %v960_v54, %s2732_s25 }
  0xc3   :  { %v1104_v53 = vpop.permute.xlu1 %1103  ;;  %v1102_v35 = vpop.permute.xlu0 %1101 }
  0xc4   :  { %v1320_v54 = vsel %vm1298_vm14, %v1255_v58, %v1102_v35  ;;  %v1322_v29 = vsel %vm1298_vm14, %v1257_v51, %v1104_v53 }
  0xc5   :  { %1047 = vrot.lane.b32.xlu1 %v984_v44, %s2731_s12  ;;  %1045 = vrot.lane.b32.xlu0 %v972_v60, %s2731_s12 }
  0xc7   :  { %v1192_v42 = vpop.permute.xlu1 %1191  ;;  %v1190_v28 = vpop.permute.xlu0 %1189 }
  0xc8   :  { %v1395_v10 = vsel %vm1363_vm3, %v1320_v54, %v1190_v28  ;;  %v1398_v43 = vsel %vm1363_vm3, %v1322_v29, %v1192_v42 }
  0xc9   :  { %1143 = vrot.lane.b32.xlu1 %v598_v50, %s2730_s27  ;;  %1141 = vrot.lane.b32.xlu0 %v3384_v47, %s2730_s27 }
  0xca   :  { %2657 = vmatprep.mubr.bf16.mxu0 %v1395_v10 }
  0xcb   :  { %v1012_v2 = vpop.permute.xlu1 %1011  ;;  %2658 = vmatmul.mubr.bf16.gmra.mrb[20].mxu0 %v1398_v43  ;;  %v1010_v38 = vpop.permute.xlu0 %1009 }
  0xcc   :  { %v1261_v15 = vsel %vm1233_vm13, %v2994_v56, %v1012_v2  ;;  %v1259_v41 = vsel %vm1233_vm13, %v2972_v27, %v1010_v38 }
  0xcd   :  { %1231 = vrot.lane.b32.xlu1 %v1168_v4, %s2732_s25  ;;  %1229 = vrot.lane.b32.xlu0 %v984_v44, %s2732_s25 }
  0xcf   :  { %v1108_v63 = vpop.permute.xlu1 %1107  ;;  %v1106_v26 = vpop.permute.xlu0 %1105 }
  0xd0   :  { %v1324_v6 = vsel %vm1298_vm14, %v1259_v41, %v1106_v26  ;;  %v1326_v14 = vsel %vm1298_vm14, %v1261_v15, %v1108_v63 }
  0xd3   :  { %v1196_v9 = vpop.permute.xlu1 %1195  ;;  %v1194_v40 = vpop.permute.xlu0 %1193 }
  0xd4   :  { %v1401_v17 = vsel %vm1363_vm3, %v1324_v6, %v1194_v40  ;;  %v1404_v18 = vsel %vm1363_vm3, %v1326_v14, %v1196_v9 }
  0xd5   :  { %2661 = vmatprep.mubr.bf16.mxu0 %v1401_v17 }
  0xd6   :  { %2662 = vmatmul.mubr.bf16.gmra.mrb[24].mxu0 %v1404_v18 }
  0xd7   :  { %v1016_v50 = vpop.permute.xlu1 %1015  ;;  %v1014_v21 = vpop.permute.xlu0 %1013 }
  0xd8   :  { %v1265_v56 = vsel %vm1233_vm13, %v3026_v45, %v1016_v50  ;;  %v1263_v27 = vsel %vm1233_vm13, %v3008_v12, %v1014_v21 }
  0xdb   :  { %v1112_v22 = vpop.permute.xlu1 %1111  ;;  %v1110_v62 = vpop.permute.xlu0 %1109 }
  0xdc   :  { %v1328_v23 = vsel %vm1298_vm14, %v1263_v27, %v1110_v62  ;;  %v1330_v60 = vsel %vm1298_vm14, %v1265_v56, %v1112_v22 }
  0xdf   :  { %v1200_v39 = vpop.permute.xlu1 %1199  ;;  %v1198_v61 = vpop.permute.xlu0 %1197 }
  0xe0   :  { %v1407_v25 = vsel %vm1363_vm3, %v1328_v23, %v1198_v61  ;;  %v1410_v32 = vsel %vm1363_vm3, %v1330_v60, %v1200_v39 }
  0xe1   :  { %2665 = vmatprep.mubr.bf16.mxu0 %v1407_v25 }
  0xe2   :  { %2666 = vmatmul.mubr.bf16.gmra.mrb[28].mxu0 %v1410_v32 }
  0xe3   :  { %v1020_v33 = vpop.permute.xlu1 %1019  ;;  %v1018_v49 = vpop.permute.xlu0 %1017 }
  0xe4   :  { %v1269_v45 = vsel %vm1233_vm13, %v3063_v31, %v1020_v33  ;;  %v1267_v12 = vsel %vm1233_vm13, %v3082_v1, %v1018_v49 }
  0xe7   :  { %v1116_v55 = vpop.permute.xlu1 %1115  ;;  %v1114_v3 = vpop.permute.xlu0 %1113 }
  0xe8   :  { %v1332_v36 = vsel %vm1298_vm14, %v1267_v12, %v1114_v3  ;;  %v1334_v19 = vsel %vm1298_vm14, %v1269_v45, %v1116_v55 }
  0xeb   :  { %v1204_v44 = vpop.permute.xlu1 %1203  ;;  %v1202_v24 = vpop.permute.xlu0 %1201 }
  0xec   :  { %v1413_v34 = vsel %vm1363_vm3, %v1332_v36, %v1202_v24  ;;  %v1416_v53 = vsel %vm1363_vm3, %v1334_v19, %v1204_v44 }
  0xed   :  { %2669 = vmatprep.mubr.bf16.mxu1 %v1413_v34 }
  0xee   :  { %2670 = vmatmul.mubr.bf16.vlgmr.msra.gmra.mrb[0].mxu1 %v1416_v53 }
  0xef   :  { %v1024_v35 = vpop.permute.xlu1 %1023  ;;  %v1022_v51 = vpop.permute.xlu0 %1021 }
  0xf0   :  { %v1273_v31 = vsel %vm1233_vm13, %v3115_v57, %v1024_v35  ;;  %v1271_v1 = vsel %vm1233_vm13, %v3096_v20, %v1022_v51 }
  0xf3   :  { %v1120_v58 = vpop.permute.xlu1 %1119  ;;  %v1118_v37 = vpop.permute.xlu0 %1117 }
  0xf4   :  { %v1336_v59 = vsel %vm1298_vm14, %v1271_v1, %v1118_v37  ;;  %v1338_v28 = vsel %vm1298_vm14, %v1273_v31, %v1120_v58 }
  0xf7   :  { %v1208_v54 = vpop.permute.xlu1 %1207  ;;  %v1206_v42 = vpop.permute.xlu0 %1205 }
  0xf8   :  { %v1419_v10 = vsel %vm1363_vm3, %v1336_v59, %v1206_v42  ;;  %v1422_v29 = vsel %vm1363_vm3, %v1338_v28, %v1208_v54 }
  0xf9   :  { %2673 = vmatprep.mubr.bf16.mxu1 %v1419_v10 }
  0xfa   :  { %2674 = vmatmul.mubr.bf16.gmra.mrb[4].mxu1 %v1422_v29 }
  0xfb   :  { %v1028_v4 = vpop.permute.xlu1 %1027  ;;  %v1026_v43 = vpop.permute.xlu0 %1025 }
  0xfc   :  { %v1277_v57 = vsel %vm1233_vm13, %v3146_v48, %v1028_v4  ;;  %v1275_v20 = vsel %vm1233_vm13, %v3128_v8, %v1026_v43 }
  0xff   :  { %v1124_v2 = vpop.permute.xlu1 %1123  ;;  %v1122_v38 = vpop.permute.xlu0 %1121 }
 0x100   :  { %v1340_v63 = vsel %vm1298_vm14, %v1275_v20, %v1122_v38  ;;  %v1342_v41 = vsel %vm1298_vm14, %v1277_v57, %v1124_v2 }
 0x103   :  { %v1212_v26 = vpop.permute.xlu1 %1211  ;;  %v1210_v15 = vpop.permute.xlu0 %1209 }
 0x104   :  { %v1425_v6 = vsel %vm1363_vm3, %v1340_v63, %v1210_v15  ;;  %v1428_v9 = vsel %vm1363_vm3, %v1342_v41, %v1212_v26 }
 0x105   :  { %2677 = vmatprep.mubr.bf16.mxu1 %v1425_v6 }
 0x106   :  { %2678 = vmatmul.mubr.bf16.gmra.mrb[8].mxu1 %v1428_v9 }
 0x107   :  { %v1032_v40 = vpop.permute.xlu1 %1031  ;;  %v1030_v14 = vpop.permute.xlu0 %1029 }
 0x108   :  { %v1281_v48 = vsel %vm1233_vm13, %v3183_v52, %v1032_v40  ;;  %v1279_v8 = vsel %vm1233_vm13, %v3164_v5, %v1030_v14 }
 0x10b   :  { %v1128_v17 = vpop.permute.xlu1 %1127  ;;  %v1126_v18 = vpop.permute.xlu0 %1125 }
 0x10c   :  { %v1344_v50 = vsel %vm1298_vm14, %v1279_v8, %v1126_v18  ;;  %v1346_v62 = vsel %vm1298_vm14, %v1281_v48, %v1128_v17 }
 0x10f   :  { %v1216_v21 = vpop.permute.xlu1 %1215  ;;  %v1214_v22 = vpop.permute.xlu0 %1213 }
 0x110   :  { %v1431_v56 = vsel %vm1363_vm3, %v1344_v50, %v1214_v22  ;;  %v1434_v27 = vsel %vm1363_vm3, %v1346_v62, %v1216_v21 }
 0x111   :  { %2681 = vmatprep.mubr.bf16.mxu1 %v1431_v56 }
 0x112   :  { %2682 = vmatmul.mubr.bf16.gmra.mrb[12].mxu1 %v1434_v27 }
 0x113   :  { %v1036_v23 = vpop.permute.xlu1 %1035  ;;  %v1034_v39 = vpop.permute.xlu0 %1033 }
 0x114   :  { %v1285_v52 = vsel %vm1233_vm13, %v3243_v11, %v1036_v23  ;;  %v1283_v5 = vsel %vm1233_vm13, %v3201_v16, %v1034_v39 }
 0x117   :  { %v1132_v61 = vpop.permute.xlu1 %1131  ;;  %v1130_v60 = vpop.permute.xlu0 %1129 }
 0x118   :  { %v1348_v25 = vsel %vm1298_vm14, %v1283_v5, %v1130_v60  ;;  %v1350_v49 = vsel %vm1298_vm14, %v1285_v52, %v1132_v61 }
 0x11b   :  { %v1220_v32 = vpop.permute.xlu1 %1219  ;;  %v1218_v33 = vpop.permute.xlu0 %1217 }
 0x11c   :  { %v1437_v55 = vsel %vm1363_vm3, %v1348_v25, %v1218_v33  ;;  %v1440_v3 = vsel %vm1363_vm3, %v1350_v49, %v1220_v32 }
 0x11d   :  { %2685 = vmatprep.mubr.bf16.mxu1 %v1437_v55 }
 0x11e   :  { %2686 = vmatmul.mubr.bf16.gmra.mrb[16].mxu1 %v1440_v3 }
 0x11f   :  { %v1040_v45 = vpop.permute.xlu1 %1039  ;;  %v1038_v12 = vpop.permute.xlu0 %1037 }
 0x120   :  { %v1289_v11 = vsel %vm1233_vm13, %v3296_v30, %v1040_v45  ;;  %v1287_v16 = vsel %vm1233_vm13, %v3267_v46, %v1038_v12 }
 0x123   :  { %v1136_v36 = vpop.permute.xlu1 %1135  ;;  %v1134_v44 = vpop.permute.xlu0 %1133 }
 0x124   :  { %v1352_v24 = vsel %vm1298_vm14, %v1287_v16, %v1134_v44  ;;  %v1354_v53 = vsel %vm1298_vm14, %v1289_v11, %v1136_v36 }
 0x127   :  { %v1224_v19 = vpop.permute.xlu1 %1223  ;;  %v1222_v34 = vpop.permute.xlu0 %1221 }
 0x128   :  { %v1443_v35 = vsel %vm1363_vm3, %v1352_v24, %v1222_v34  ;;  %v1446_v51 = vsel %vm1363_vm3, %v1354_v53, %v1224_v19 }
 0x129   :  { %2689 = vmatprep.mubr.bf16.mxu1 %v1443_v35 }
 0x12a   :  { %2690 = vmatmul.mubr.bf16.gmra.mrb[20].mxu1 %v1446_v51 }
 0x12b   :  { %v1044_v58 = vpop.permute.xlu1 %1043  ;;  %v1042_v37 = vpop.permute.xlu0 %1041 }
 0x12c   :  { %v1293_v30 = vsel %vm1233_vm13, %v3335_v0, %v1044_v58  ;;  %v1291_v46 = vsel %vm1233_vm13, %v3322_v7, %v1042_v37 }
 0x12f   :  { %v1140_v31 = vpop.permute.xlu1 %1139  ;;  %v1138_v1 = vpop.permute.xlu0 %1137 }
 0x130   :  { %v1356_v59 = vsel %vm1298_vm14, %v1291_v46, %v1138_v1  ;;  %v1358_v28 = vsel %vm1298_vm14, %v1293_v30, %v1140_v31 }
 0x133   :  { %v1228_v54 = vpop.permute.xlu1 %1227  ;;  %v1226_v42 = vpop.permute.xlu0 %1225 }
 0x134   :  { %v1449_v10 = vsel %vm1363_vm3, %v1356_v59, %v1226_v42  ;;  %v1452_v29 = vsel %vm1363_vm3, %v1358_v28, %v1228_v54 }
 0x135   :  { %2693 = vmatprep.mubr.bf16.mxu1 %v1449_v10 }
 0x136   :  { %2694 = vmatmul.mubr.bf16.gmra.mrb[24].mxu1 %v1452_v29 }
 0x137   :  { %v1048_v4 = vpop.permute.xlu1 %1047  ;;  %v1046_v43 = vpop.permute.xlu0 %1045 }
 0x138   :  { %v1297_v0 = vsel %vm1233_vm13, %v3384_v47, %v1048_v4  ;;  %v1295_v7 = vsel %vm1233_vm13, %v3367_v13, %v1046_v43 }
 0x13b   :  { %v1144_v2 = vpop.permute.xlu1 %1143  ;;  %v1142_v38 = vpop.permute.xlu0 %1141 }
 0x13c   :  { %v1360_v57 = vsel %vm1298_vm14, %v1295_v7, %v1142_v38  ;;  %v1362_v26 = vsel %vm1298_vm14, %v1297_v0, %v1144_v2 }
 0x13f   :  { %v1232_v20 = vpop.permute.xlu1 %1231  ;;  %v1230_v63 = vpop.permute.xlu0 %1229 }
 0x140   :  { %v1455_v15 = vsel %vm1363_vm3, %v1360_v57, %v1230_v63  ;;  %v1458_v41 = vsel %vm1363_vm3, %v1362_v26, %v1232_v20 }
 0x141   :  { %2697 = vmatprep.mubr.bf16.mxu1 %v1455_v15 }
 0x142   :  { %2698 = vmatmul.mubr.bf16.gmra.mrb[28].mxu1 %v1458_v41 }
 0x166   :  { %v3507_v6 = vpop.f32.mrb[0].mxu0 }
 0x167   :  { %v3509_v9 = vpop.f32.mrb[1].mxu0  ;;  %v1817_v18 = vsel %vm1813_vm8, %v3507_v6, 0.0 }
 0x168   :  { %v3511_v47 = vpop.f32.mrb[2].mxu0  ;;  %v1814_v40 = vsel %vm1813_vm8, %v3509_v9, 0.0 }
 0x169   :  { %v3513_v13 = vpop.f32.mrb[3].mxu0  ;;  %v1819_v8 = vsel %vm1813_vm8, %v3511_v47, 0.0 }
 0x16a   :  { %v1815_v14 = vsel %vm1813_vm8, %v3513_v13, 0.0 }
 0x16b   :  { %v1816_v17 = vadd.f32 %v1815_v14, %v1814_v40 }
 0x16d   :  { %v1818_v48 = vadd.f32 %v1817_v18, %v1816_v17 }
 0x16e   :  { %v3523_v50 = vpop.f32.mrb[4].mxu0 }
 0x16f   :  { %v3525_v21 = vpop.f32.mrb[5].mxu0  ;;  %v1820_v22 = vadd.f32 %v1819_v8, %v1818_v48  ;;  %v1825_v60 = vsel %vm1813_vm8, %v3523_v50, 0.0 }
 0x170   :  { %v1821_v62 = vsel %vm1813_vm8, %v3525_v21, 0.0  ;;  %v3529_v56 = vpop.f32.mrb[6].mxu0 }
 0x171   :  { %v1822_v27 = vadd.f32 %v1821_v62, %v1820_v22  ;;  %v3531_v23 = vpop.f32.mrb[7].mxu0  ;;  %v1827_v5 = vsel %vm1813_vm8, %v3529_v56, 0.0 }
 0x172   :  { %v1823_v39 = vsel %vm1813_vm8, %v3531_v23, 0.0 }
 0x173   :  { %v1824_v61 = vadd.f32 %v1823_v39, %v1822_v27 }
 0x175   :  { %v1826_v52 = vadd.f32 %v1825_v60, %v1824_v61 }
 0x177   :  { %v1828_v25 = vadd.f32 %v1827_v5, %v1826_v52 }
 0x17a   :  { %v3539_v32 = vpop.f32.mrb[8].mxu0 }
 0x17b   :  { %v3541_v33 = vpop.f32.mrb[9].mxu0  ;;  %v1833_v44 = vsel %vm1813_vm8, %v3539_v32, 0.0 }
 0x17c   :  { %v1829_v49 = vsel %vm1813_vm8, %v3541_v33, 0.0  ;;  %v3545_v55 = vpop.f32.mrb[10].mxu0 }
 0x17d   :  { %v1830_v3 = vadd.f32 %v1829_v49, %v1828_v25  ;;  %v3547_v45 = vpop.f32.mrb[11].mxu0  ;;  %v1835_v16 = vsel %vm1813_vm8, %v3545_v55, 0.0 }
 0x17e   :  { %v1831_v12 = vsel %vm1813_vm8, %v3547_v45, 0.0 }
 0x17f   :  { %v1832_v36 = vadd.f32 %v1831_v12, %v1830_v3 }
 0x181   :  { %v1834_v11 = vadd.f32 %v1833_v44, %v1832_v36 }
 0x183   :  { %v1836_v24 = vadd.f32 %v1835_v16, %v1834_v11 }
 0x186   :  { %v3555_v19 = vpop.f32.mrb[12].mxu0 }
 0x187   :  { %v3557_v34 = vpop.f32.mrb[13].mxu0  ;;  %v1841_v1 = vsel %vm1813_vm8, %v3555_v19, 0.0 }
 0x188   :  { %v1837_v53 = vsel %vm1813_vm8, %v3557_v34, 0.0  ;;  %v3561_v35 = vpop.f32.mrb[14].mxu0 }
 0x189   :  { %v1838_v51 = vadd.f32 %v1837_v53, %v1836_v24  ;;  %v3563_v58 = vpop.f32.mrb[15].mxu0  ;;  %v1843_v46 = vsel %vm1813_vm8, %v3561_v35, 0.0 }
 0x18a   :  { %v1839_v37 = vsel %vm1813_vm8, %v3563_v58, 0.0 }
 0x18b   :  { %v1840_v31 = vadd.f32 %v1839_v37, %v1838_v51 }
 0x18d   :  { %v1842_v30 = vadd.f32 %v1841_v1, %v1840_v31 }
 0x18f   :  { %v1844_v59 = vadd.f32 %v1843_v46, %v1842_v30 }
 0x192   :  { %v3571_v54 = vpop.f32.mrb[16].mxu0 }
 0x193   :  { %v3573_v42 = vpop.f32.mrb[17].mxu0  ;;  %v1849_v38 = vsel %vm1813_vm8, %v3571_v54, 0.0 }
 0x194   :  { %v1845_v28 = vsel %vm1813_vm8, %v3573_v42, 0.0  ;;  %v3577_v10 = vpop.f32.mrb[18].mxu0 }
 0x195   :  { %v1846_v29 = vadd.f32 %v1845_v28, %v1844_v59  ;;  %v3579_v4 = vpop.f32.mrb[19].mxu0  ;;  %v1851_v7 = vsel %vm1813_vm8, %v3577_v10, 0.0 }
 0x196   :  { %v1847_v43 = vsel %vm1813_vm8, %v3579_v4, 0.0 }
 0x197   :  { %v1848_v2 = vadd.f32 %v1847_v43, %v1846_v29 }
 0x199   :  { %v1850_v0 = vadd.f32 %v1849_v38, %v1848_v2 }
 0x19b   :  { %v1852_v57 = vadd.f32 %v1851_v7, %v1850_v0 }
 0x19e   :  { %v3587_v20 = vpop.f32.mrb[20].mxu0 }
 0x19f   :  { %v3589_v63 = vpop.f32.mrb[21].mxu0  ;;  %v1857_v18 = vsel %vm1813_vm8, %v3587_v20, 0.0 }
 0x1a0   :  { %v1853_v26 = vsel %vm1813_vm8, %v3589_v63, 0.0  ;;  %v3593_v15 = vpop.f32.mrb[22].mxu0 }
 0x1a1   :  { %v1854_v41 = vadd.f32 %v1853_v26, %v1852_v57  ;;  %v3595_v40 = vpop.f32.mrb[23].mxu0  ;;  %v1859_v8 = vsel %vm1813_vm8, %v3593_v15, 0.0 }
 0x1a2   :  { %v1855_v14 = vsel %vm1813_vm8, %v3595_v40, 0.0 }
 0x1a3   :  { %v1856_v17 = vadd.f32 %v1855_v14, %v1854_v41 }
 0x1a5   :  { %v1858_v48 = vadd.f32 %v1857_v18, %v1856_v17 }
 0x1a7   :  { %v1860_v22 = vadd.f32 %v1859_v8, %v1858_v48 }
 0x1a9   :  { %v3603_v62 = vpop.f32.mrb[24].mxu0 }
 0x1aa   :  { %v3605_v27 = vpop.f32.mrb[25].mxu0  ;;  %v1865_v49 = vsel %vm1813_vm8, %v3603_v62, 0.0 }
 0x1ab   :  { %v1861_v39 = vsel %vm1813_vm8, %v3605_v27, 0.0  ;;  %v3609_v61 = vpop.f32.mrb[26].mxu0 }
 0x1ac   :  { %v1862_v60 = vadd.f32 %v1861_v39, %v1860_v22  ;;  %v3611_v52 = vpop.f32.mrb[27].mxu0  ;;  %v1867_v12 = vsel %vm1813_vm8, %v3609_v61, 0.0 }
 0x1ad   :  { %v1863_v5 = vsel %vm1813_vm8, %v3611_v52, 0.0 }
 0x1ae   :  { %v1864_v25 = vadd.f32 %v1863_v5, %v1862_v60 }
 0x1b0   :  { %v1866_v3 = vadd.f32 %v1865_v49, %v1864_v25 }
 0x1b2   :  { %v1868_v36 = vadd.f32 %v1867_v12, %v1866_v3 }
 0x1b5   :  { %v3619_v44 = vpop.f32.mrb[28].mxu0 }
 0x1b6   :  { %v3621_v11 = vpop.f32.mrb[29].mxu0  ;;  %v1873_v1 = vsel %vm1813_vm8, %v3619_v44, 0.0 }
 0x1b7   :  { %v1869_v16 = vsel %vm1813_vm8, %v3621_v11, 0.0  ;;  %v3625_v24 = vpop.f32.mrb[30].mxu0 }
 0x1b8   :  { %v1870_v53 = vadd.f32 %v1869_v16, %v1868_v36  ;;  %v3627_v51 = vpop.f32.mrb[31].mxu0  ;;  %v1875_v46 = vsel %vm1813_vm8, %v3625_v24, 0.0 }
 0x1b9   :  { %v1871_v37 = vsel %vm1813_vm8, %v3627_v51, 0.0 }
 0x1ba   :  { %v1872_v31 = vadd.f32 %v1871_v37, %v1870_v53 }
 0x1bc   :  { %v1874_v30 = vadd.f32 %v1873_v1, %v1872_v31 }
 0x1be   :  { %v1876_v59 = vadd.f32 %v1875_v46, %v1874_v30 }
 0x1c1   :  { %v3635_v28 = vpop.f32.mrb[0].mxu1 }
 0x1c2   :  { %v3637_v29 = vpop.f32.mrb[1].mxu1  ;;  %v1881_v26 = vsel %vm1813_vm8, %v3635_v28, 0.0 }
 0x1c3   :  { %v1877_v43 = vsel %vm1813_vm8, %v3637_v29, 0.0  ;;  %v3641_v2 = vpop.f32.mrb[2].mxu1 }
 0x1c4   :  { %v1878_v38 = vadd.f32 %v1877_v43, %v1876_v59  ;;  %v3643_v0 = vpop.f32.mrb[3].mxu1  ;;  %v1883_v14 = vsel %vm1813_vm8, %v3641_v2, 0.0 }
 0x1c5   :  { %v1879_v7 = vsel %vm1813_vm8, %v3643_v0, 0.0 }
 0x1c6   :  { %v1880_v57 = vadd.f32 %v1879_v7, %v1878_v38 }
 0x1c8   :  { %v1882_v41 = vadd.f32 %v1881_v26, %v1880_v57 }
 0x1ca   :  { %v1884_v17 = vadd.f32 %v1883_v14, %v1882_v41 }
 0x1cd   :  { %v3651_v18 = vpop.f32.mrb[4].mxu1 }
 0x1ce   :  { %v3653_v48 = vpop.f32.mrb[5].mxu1  ;;  %v1889_v49 = vsel %vm1813_vm8, %v3651_v18, 0.0 }
 0x1cf   :  { %v1885_v8 = vsel %vm1813_vm8, %v3653_v48, 0.0  ;;  %v3657_v22 = vpop.f32.mrb[6].mxu1 }
 0x1d0   :  { %v1886_v39 = vadd.f32 %v1885_v8, %v1884_v17  ;;  %v3659_v60 = vpop.f32.mrb[7].mxu1  ;;  %v1891_v12 = vsel %vm1813_vm8, %v3657_v22, 0.0 }
 0x1d1   :  { %v1887_v5 = vsel %vm1813_vm8, %v3659_v60, 0.0 }
 0x1d2   :  { %v1888_v25 = vadd.f32 %v1887_v5, %v1886_v39 }
 0x1d4   :  { %v1890_v3 = vadd.f32 %v1889_v49, %v1888_v25 }
 0x1d6   :  { %v1892_v36 = vadd.f32 %v1891_v12, %v1890_v3 }
 0x1d9   :  { %v3667_v16 = vpop.f32.mrb[8].mxu1 }
 0x1da   :  { %v3669_v53 = vpop.f32.mrb[9].mxu1  ;;  %v1897_v43 = vsel %vm1813_vm8, %v3667_v16, 0.0 }
 0x1db   :  { %v1893_v37 = vsel %vm1813_vm8, %v3669_v53, 0.0  ;;  %v3673_v31 = vpop.f32.mrb[10].mxu1 }
 0x1dc   :  { %v1894_v1 = vadd.f32 %v1893_v37, %v1892_v36  ;;  %v3675_v30 = vpop.f32.mrb[11].mxu1  ;;  %v1899_v7 = vsel %vm1813_vm8, %v3673_v31, 0.0 }
 0x1dd   :  { %v1895_v46 = vsel %vm1813_vm8, %v3675_v30, 0.0 }
 0x1de   :  { %v1896_v59 = vadd.f32 %v1895_v46, %v1894_v1 }
 0x1e0   :  { %v1898_v38 = vadd.f32 %v1897_v43, %v1896_v59 }
 0x1e2   :  { %v1900_v57 = vadd.f32 %v1899_v7, %v1898_v38 }
 0x1e5   :  { %v3683_v26 = vpop.f32.mrb[12].mxu1 }
 0x1e6   :  { %v3685_v41 = vpop.f32.mrb[13].mxu1  ;;  %v1905_v49 = vsel %vm1813_vm8, %v3683_v26, 0.0 }
 0x1e7   :  { %v1901_v14 = vsel %vm1813_vm8, %v3685_v41, 0.0  ;;  %v3689_v17 = vpop.f32.mrb[14].mxu1 }
 0x1e8   :  { %5162 = vst [vmem:[#allocation2_spill] sm:$0xff] %v3689_v17  ;;  %v1902_v8 = vadd.f32 %v1901_v14, %v1900_v57  ;;  %v3691_v39 = vpop.f32.mrb[15].mxu1  ;;  %v1907_v12 = vsel %vm1813_vm8, %v3689_v17, 0.0 }
 0x1e9   :  { %v1903_v5 = vsel %vm1813_vm8, %v3691_v39, 0.0 }
 0x1ea   :  { %v1904_v25 = vadd.f32 %v1903_v5, %v1902_v8 }
 0x1ec   :  { %v1906_v3 = vadd.f32 %v1905_v49, %v1904_v25 }
 0x1ee   :  { %v1908_v36 = vadd.f32 %v1907_v12, %v1906_v3 }
 0x1f1   :  { %v3699_v37 = vpop.f32.mrb[16].mxu1 }
 0x1f2   :  { %5163 = vst [vmem:[#allocation3_spill] sm:$0xff] %v3699_v37  ;;  %v3701_v1 = vpop.f32.mrb[17].mxu1  ;;  %v1913_v14 = vsel %vm1813_vm8, %v3699_v37, 0.0 }
 0x1f3   :  { %5164 = vst [vmem:[#allocation4_spill] sm:$0xff] %v3701_v1  ;;  %v1909_v46 = vsel %vm1813_vm8, %v3701_v1, 0.0  ;;  %v3705_v59 = vpop.f32.mrb[18].mxu1 }
 0x1f4   :  { %5165 = vst [vmem:[#allocation5_spill] sm:$0xff] %v3705_v59  ;;  %v1910_v43 = vadd.f32 %v1909_v46, %v1908_v36  ;;  %v3707_v38 = vpop.f32.mrb[19].mxu1  ;;  %v1915_v5 = vsel %vm1813_vm8, %v3705_v59, 0.0 }
 0x1f5   :  { %5166 = vst [vmem:[#allocation6_spill] sm:$0xff] %v3707_v38  ;;  %v1911_v7 = vsel %vm1813_vm8, %v3707_v38, 0.0 }
 0x1f6   :  { %v1912_v57 = vadd.f32 %v1911_v7, %v1910_v43 }
 0x1f8   :  { %v1914_v8 = vadd.f32 %v1913_v14, %v1912_v57 }
 0x1fa   :  { %v1916_v25 = vadd.f32 %v1915_v5, %v1914_v8 }
 0x1fd   :  { %v3715_v49 = vpop.f32.mrb[20].mxu1 }
 0x1fe   :  { %5167 = vst [vmem:[#allocation7_spill] sm:$0xff] %v3715_v49  ;;  %v3717_v3 = vpop.f32.mrb[21].mxu1  ;;  %v1921_v57 = vsel %vm1813_vm8, %v3715_v49, 0.0 }
 0x1ff   :  { %5168 = vst [vmem:[#allocation8_spill] sm:$0xff] %v3717_v3  ;;  %v1917_v12 = vsel %vm1813_vm8, %v3717_v3, 0.0  ;;  %v3721_v36 = vpop.f32.mrb[22].mxu1 }
 0x200   :  { %5169 = vst [vmem:[#allocation9_spill] sm:$0xff] %v3721_v36  ;;  %v1918_v46 = vadd.f32 %v1917_v12, %v1916_v25  ;;  %v3723_v38 = vpop.f32.mrb[23].mxu1  ;;  %v1923_v8 = vsel %vm1813_vm8, %v3721_v36, 0.0 }
 0x201   :  { %5170 = vst [vmem:[#allocation10_spill] sm:$0xff] %v3723_v38  ;;  %v1919_v43 = vsel %vm1813_vm8, %v3723_v38, 0.0 }
 0x202   :  { %v1920_v7 = vadd.f32 %v1919_v43, %v1918_v46 }
 0x204   :  { %v1922_v14 = vadd.f32 %v1921_v57, %v1920_v7 }
 0x206   :  { %v1924_v5 = vadd.f32 %v1923_v8, %v1922_v14 }
 0x209   :  { %v3731_v59 = vpop.f32.mrb[24].mxu1 }
 0x20a   :  { %5171 = vst [vmem:[#allocation11_spill] sm:$0xff] %v3731_v59  ;;  %v3733_v3 = vpop.f32.mrb[25].mxu1  ;;  %v1929_v7 = vsel %vm1813_vm8, %v3731_v59, 0.0 }
 0x20b   :  { %5172 = vst [vmem:[#allocation12_spill] sm:$0xff] %v3733_v3  ;;  %v1925_v25 = vsel %vm1813_vm8, %v3733_v3, 0.0  ;;  %v3737_v12 = vpop.f32.mrb[26].mxu1 }
 0x20c   :  { %5173 = vst [vmem:[#allocation13_spill] sm:$0xff] %v3737_v12  ;;  %v1926_v37 = vadd.f32 %v1925_v25, %v1924_v5  ;;  %v3739_v38 = vpop.f32.mrb[27].mxu1  ;;  %v1931_v14 = vsel %vm1813_vm8, %v3737_v12, 0.0 }
 0x20d   :  { %5174 = vst [vmem:[#allocation14_spill] sm:$0xff] %v3739_v38  ;;  %v1927_v46 = vsel %vm1813_vm8, %v3739_v38, 0.0 }
 0x20e   :  { %v1928_v43 = vadd.f32 %v1927_v46, %v1926_v37 }
 0x210   :  { %v1930_v57 = vadd.f32 %v1929_v7, %v1928_v43 }
 0x212   :  { %v1932_v8 = vadd.f32 %v1931_v14, %v1930_v57 }
 0x215   :  { %v3747_v36 = vpop.f32.mrb[28].mxu1 }
 0x216   :  { %v3749_v3 = vpop.f32.mrb[29].mxu1  ;;  %v1937_v43 = vsel %vm1813_vm8, %v3747_v36, 0.0 }
 0x217   :  { %5175 = vst [vmem:[#allocation15_spill] sm:$0xff] %v3749_v3  ;;  %v1933_v5 = vsel %vm1813_vm8, %v3749_v3, 0.0  ;;  %v3753_v25 = vpop.f32.mrb[30].mxu1 }
 0x218   :  { %v1934_v49 = vadd.f32 %v1933_v5, %v1932_v8  ;;  %v3755_v38 = vpop.f32.mrb[31].mxu1  ;;  %v1939_v57 = vsel %vm1813_vm8, %v3753_v25, 0.0 }
 0x219   :  { %5176 = vst [vmem:[#allocation16_spill] sm:$0xff] %v3755_v38  ;;  %v1935_v37 = vsel %vm1813_vm8, %v3755_v38, 0.0 }
 0x21a   :  { %v1936_v46 = vadd.f32 %v1935_v37, %v1934_v49 }
 0x21c   :  { %v1938_v7 = vadd.f32 %v1937_v43, %v1936_v46  ;;  %v5187_v46 = vld [vmem:[#allocation3_spill] sm:$0xff]  ;;  %v5189_v43 = vld [vmem:[#allocation5_spill] sm:$0xff] }
 0x21e   :  { %v1940_v14 = vadd.f32 %v1939_v57, %v1938_v7  ;;  %v5191_v7 = vld [vmem:[#allocation8_spill] sm:$0xff] }
 0x220   :  { %v1941_v12 = vrot.slane %v1940_v14, 4 }
 0x222   :  { %v1942_v59 = vadd.f32 %v1941_v12, %v1940_v14  ;;  %v5193_v14 = vld [vmem:[#allocation10_spill] sm:$0xff] }
 0x224   :  { %v1943_v3 = vrot.slane %v1942_v59, 2 }
 0x226   :  { %v1944_v1 = vadd.f32 %v1943_v3, %v1942_v59  ;;  %v5183_v59 = vld [vmem:[#allocation4_spill] sm:$0xff]  ;;  %v5185_v3 = vld [vmem:[#allocation6_spill] sm:$0xff] }
 0x228   :  { %v1945_v17 = vrot.slane %v1944_v1, 1 }
 0x22a   :  { %v1946_v8 = vadd.f32 %v1945_v17, %v1944_v1  ;;  %v5181_v1 = vld [vmem:[#allocation2_spill] sm:$0xff] }
 0x22c   :  { %v3763_v5 = vmul.f32 0.001953125, %v1946_v8 }
 0x22e   :  { %v3767_v38 = vsub.f32 %v3509_v9, %v3763_v5  ;;  %v3771_v49 = vsub.f32 %v3513_v13, %v3763_v5  ;;  %v3775_v37 = vsub.f32 %v3507_v6, %v3763_v5  ;;  %v3779_v12 = vsub.f32 %v3511_v47, %v3763_v5 }
 0x22f   :  { %v3783_v17 = vsub.f32 %v3525_v21, %v3763_v5  ;;  %v3787_v9 = vsub.f32 %v3531_v23, %v3763_v5  ;;  %v3791_v13 = vsub.f32 %v3523_v50, %v3763_v5  ;;  %v3795_v6 = vsub.f32 %v3529_v56, %v3763_v5 }
 0x230   :  { %5177 = vst [vmem:[#allocation17_spill] sm:$0xff] %v3767_v38  ;;  %5178 = vst [vmem:[#allocation18_spill] sm:$0xff] %v3771_v49  ;;  %v3799_v47 = vsub.f32 %v3541_v33, %v3763_v5  ;;  %v3803_v21 = vsub.f32 %v3547_v45, %v3763_v5  ;;  %v3807_v23 = vsub.f32 %v3539_v32, %v3763_v5 }
 0x231   :  { %5179 = vst [vmem:[#allocation19_spill] sm:$0xff] %v3775_v37  ;;  %5180 = vst [vmem:[#allocation20_spill] sm:$0xff] %v3779_v12  ;;  %v3811_v50 = vsub.f32 %v3545_v55, %v3763_v5  ;;  %v3815_v56 = vsub.f32 %v3557_v34, %v3763_v5  ;;  %v3819_v33 = vsub.f32 %v3563_v58, %v3763_v5 }
 0x232   :  { %v3823_v45 = vsub.f32 %v3555_v19, %v3763_v5  ;;  %v3827_v32 = vsub.f32 %v3561_v35, %v3763_v5  ;;  %v3831_v55 = vsub.f32 %v3573_v42, %v3763_v5  ;;  %v3835_v34 = vsub.f32 %v3579_v4, %v3763_v5 }
 0x233   :  { %v3839_v58 = vsub.f32 %v3571_v54, %v3763_v5  ;;  %v3843_v19 = vsub.f32 %v3577_v10, %v3763_v5  ;;  %v3847_v35 = vsub.f32 %v3589_v63, %v3763_v5  ;;  %v3851_v42 = vsub.f32 %v3595_v40, %v3763_v5 }
 0x234   :  { %v3855_v4 = vsub.f32 %v3587_v20, %v3763_v5  ;;  %v3859_v54 = vsub.f32 %v3593_v15, %v3763_v5  ;;  %v3863_v10 = vsub.f32 %v3605_v27, %v3763_v5  ;;  %v3867_v63 = vsub.f32 %v3611_v52, %v3763_v5 }
 0x235   :  { %v3871_v40 = vsub.f32 %v3603_v62, %v3763_v5  ;;  %v3875_v20 = vsub.f32 %v3609_v61, %v3763_v5  ;;  %v3879_v15 = vsub.f32 %v3621_v11, %v3763_v5  ;;  %v3883_v27 = vsub.f32 %v3627_v51, %v3763_v5 }
 0x236   :  { %v3887_v52 = vsub.f32 %v3619_v44, %v3763_v5  ;;  %v3891_v62 = vsub.f32 %v3625_v24, %v3763_v5  ;;  %v3895_v61 = vsub.f32 %v3637_v29, %v3763_v5  ;;  %v3899_v11 = vsub.f32 %v3643_v0, %v3763_v5 }
 0x237   :  { %v3903_v51 = vsub.f32 %v3635_v28, %v3763_v5  ;;  %v3907_v44 = vsub.f32 %v3641_v2, %v3763_v5  ;;  %v3911_v24 = vsub.f32 %v3653_v48, %v3763_v5  ;;  %v3915_v29 = vsub.f32 %v3659_v60, %v3763_v5 }
 0x238   :  { %v3919_v0 = vsub.f32 %v3651_v18, %v3763_v5  ;;  %v3923_v28 = vsub.f32 %v3657_v22, %v3763_v5  ;;  %v3927_v2 = vsub.f32 %v3669_v53, %v3763_v5  ;;  %v3931_v48 = vsub.f32 %v3675_v30, %v3763_v5 }
 0x239   :  { %v3935_v60 = vsub.f32 %v3667_v16, %v3763_v5  ;;  %v3939_v18 = vsub.f32 %v3673_v31, %v3763_v5  ;;  %v3943_v22 = vsub.f32 %v3685_v41, %v3763_v5  ;;  %v3947_v53 = vsub.f32 %v3691_v39, %v3763_v5 }
 0x23a   :  { %v3951_v30 = vsub.f32 %v3683_v26, %v3763_v5  ;;  %v3955_v16 = vsub.f32 %v5181_v1, %v3763_v5  ;;  %v3959_v31 = vsub.f32 %v5183_v59, %v3763_v5  ;;  %v3963_v41 = vsub.f32 %v5185_v3, %v3763_v5  ;;  %v5195_v1 = vld [vmem:[#allocation7_spill] sm:$0xff]  ;;  %v5197_v3 = vld [vmem:[#allocation9_spill] sm:$0xff] }
 0x23b   :  { %v3967_v39 = vsub.f32 %v5187_v46, %v3763_v5  ;;  %v3971_v26 = vsub.f32 %v5189_v43, %v3763_v5  ;;  %v3975_v57 = vsub.f32 %v5191_v7, %v3763_v5  ;;  %v3979_v8 = vsub.f32 %v5193_v14, %v3763_v5 }
 0x23c   :  { %5182 = vst [vmem:[#allocation2_spill] sm:$0xff] %v3955_v16  ;;  %5184 = vst [vmem:[#allocation4_spill] sm:$0xff] %v3959_v31  ;;  %v3983_v59 = vsub.f32 %v5195_v1, %v3763_v5  ;;  %v3987_v46 = vsub.f32 %v5197_v3, %v3763_v5 }
 0x23d   :  { %5186 = vst [vmem:[#allocation6_spill] sm:$0xff] %v3963_v41  ;;  %5188 = vst [vmem:[#allocation3_spill] sm:$0xff] %v3967_v39  ;;  %v5199_v39 = vld [vmem:[#allocation12_spill] sm:$0xff] }
 0x23e   :  { %5190 = vst [vmem:[#allocation5_spill] sm:$0xff] %v3971_v26  ;;  %5192 = vst [vmem:[#allocation8_spill] sm:$0xff] %v3975_v57  ;;  %v3991_v43 = vsub.f32 %v5199_v39, %v3763_v5  ;;  %v5201_v26 = vld [vmem:[#allocation14_spill] sm:$0xff]  ;;  %v5203_v57 = vld [vmem:[#allocation11_spill] sm:$0xff] }
 0x23f   :  { %5194 = vst [vmem:[#allocation10_spill] sm:$0xff] %v3979_v8  ;;  %5196 = vst [vmem:[#allocation7_spill] sm:$0xff] %v3983_v59  ;;  %v3995_v7 = vsub.f32 %v5201_v26, %v3763_v5  ;;  %v3999_v14 = vsub.f32 %v5203_v57, %v3763_v5  ;;  %v5205_v8 = vld [vmem:[#allocation13_spill] sm:$0xff]  ;;  %v5207_v59 = vld [vmem:[#allocation15_spill] sm:$0xff]  ;;  %v4015_v26 = vsub.f32 %v3747_v36, %v3763_v5 }
 0x240   :  { %5198 = vst [vmem:[#allocation9_spill] sm:$0xff] %v3987_v46  ;;  %5200 = vst [vmem:[#allocation12_spill] sm:$0xff] %v3991_v43  ;;  %v4003_v1 = vsub.f32 %v5205_v8, %v3763_v5  ;;  %v4007_v3 = vsub.f32 %v5207_v59, %v3763_v5  ;;  %v5209_v46 = vld [vmem:[#allocation16_spill] sm:$0xff]  ;;  %v4019_v57 = vsub.f32 %v3753_v25, %v3763_v5 }
 0x241   :  { %5202 = vst [vmem:[#allocation14_spill] sm:$0xff] %v3995_v7  ;;  %5204 = vst [vmem:[#allocation11_spill] sm:$0xff] %v3999_v14  ;;  %v4011_v39 = vsub.f32 %v5209_v46, %v3763_v5  ;;  %v2013_v8 = vmul.f32 %v3767_v38, %v3767_v38  ;;  %v2015_v59 = vmul.f32 %v3775_v37, %v3775_v37 }
 0x242   :  { %5206 = vst [vmem:[#allocation13_spill] sm:$0xff] %v4003_v1  ;;  %5208 = vst [vmem:[#allocation15_spill] sm:$0xff] %v4007_v3  ;;  %v2014_v1 = vmul.f32 %v3771_v49, %v3771_v49  ;;  %v2016_v46 = vmul.f32 %v3779_v12, %v3779_v12  ;;  %v2017_v25 = vmul.f32 %v3783_v17, %v3783_v17 }
 0x243   :  { %5210 = vst [vmem:[#allocation16_spill] sm:$0xff] %v4011_v39  ;;  %5211 = vst [vmem:[#allocation21_spill] sm:$0xff] %v4015_v26  ;;  %v2077_v39 = vsel %vm1813_vm8, %v2013_v8, 0.0  ;;  %v2080_v5 = vsel %vm1813_vm8, %v2015_v59, 0.0  ;;  %v2018_v49 = vmul.f32 %v3787_v9, %v3787_v9  ;;  %v2019_v12 = vmul.f32 %v3791_v13, %v3791_v13 }
 0x244   :  { %5212 = vst [vmem:[#allocation22_spill] sm:$0xff] %v4019_v57  ;;  %v2078_v36 = vsel %vm1813_vm8, %v2014_v1, 0.0  ;;  %v2082_v57 = vsel %vm1813_vm8, %v2016_v46, 0.0  ;;  %v2084_v8 = vsel %vm1813_vm8, %v2017_v25, 0.0  ;;  %v2020_v1 = vmul.f32 %v3795_v6, %v3795_v6 }
 0x245   :  { %v2079_v26 = vadd.f32 %v2078_v36, %v2077_v39  ;;  %v2086_v39 = vsel %vm1813_vm8, %v2018_v49, 0.0  ;;  %v2088_v59 = vsel %vm1813_vm8, %v2019_v12, 0.0  ;;  %v2024_v49 = vmul.f32 %v3811_v50, %v3811_v50 }
 0x246   :  { %v2025_v12 = vmul.f32 %v3815_v56, %v3815_v56 }
 0x247   :  { %v2081_v38 = vadd.f32 %v2080_v5, %v2079_v26  ;;  %v2021_v26 = vmul.f32 %v3799_v47, %v3799_v47 }
 0x249   :  { %v2083_v37 = vadd.f32 %v2082_v57, %v2081_v38  ;;  %v2022_v38 = vmul.f32 %v3803_v21, %v3803_v21  ;;  %v2090_v57 = vsel %vm1813_vm8, %v2020_v1, 0.0  ;;  %v2092_v25 = vsel %vm1813_vm8, %v2021_v26, 0.0 }
 0x24a   :  { %v2026_v1 = vmul.f32 %v3819_v33, %v3819_v33  ;;  %v2027_v26 = vmul.f32 %v3823_v45, %v3823_v45 }
 0x24b   :  { %v2085_v3 = vadd.f32 %v2084_v8, %v2083_v37  ;;  %v2023_v37 = vmul.f32 %v3807_v23, %v3807_v23 }
 0x24d   :  { %v2087_v36 = vadd.f32 %v2086_v39, %v2085_v3  ;;  %v2094_v3 = vsel %vm1813_vm8, %v2022_v38, 0.0  ;;  %v2028_v38 = vmul.f32 %v3827_v32, %v3827_v32 }
 0x24f   :  { %v2089_v5 = vadd.f32 %v2088_v59, %v2087_v36  ;;  %v2096_v36 = vsel %vm1813_vm8, %v2023_v37, 0.0  ;;  %v2029_v37 = vmul.f32 %v3831_v55, %v3831_v55 }
 0x251   :  { %v2091_v46 = vadd.f32 %v2090_v57, %v2089_v5  ;;  %v2098_v5 = vsel %vm1813_vm8, %v2024_v49, 0.0  ;;  %v2030_v49 = vmul.f32 %v3835_v34, %v3835_v34 }
 0x253   :  { %v2093_v8 = vadd.f32 %v2092_v25, %v2091_v46  ;;  %v2100_v46 = vsel %vm1813_vm8, %v2025_v12, 0.0  ;;  %v2031_v12 = vmul.f32 %v3839_v58, %v3839_v58 }
 0x255   :  { %v2095_v39 = vadd.f32 %v2094_v3, %v2093_v8  ;;  %v2102_v8 = vsel %vm1813_vm8, %v2026_v1, 0.0  ;;  %v2032_v1 = vmul.f32 %v3843_v19, %v3843_v19 }
 0x257   :  { %v2097_v59 = vadd.f32 %v2096_v36, %v2095_v39  ;;  %v2104_v39 = vsel %vm1813_vm8, %v2027_v26, 0.0  ;;  %v2033_v26 = vmul.f32 %v3847_v35, %v3847_v35 }
 0x259   :  { %v2099_v57 = vadd.f32 %v2098_v5, %v2097_v59  ;;  %v2106_v59 = vsel %vm1813_vm8, %v2028_v38, 0.0  ;;  %v2034_v38 = vmul.f32 %v3851_v42, %v3851_v42 }
 0x25b   :  { %v2101_v25 = vadd.f32 %v2100_v46, %v2099_v57  ;;  %v2108_v57 = vsel %vm1813_vm8, %v2029_v37, 0.0  ;;  %v2035_v37 = vmul.f32 %v3855_v4, %v3855_v4 }
 0x25d   :  { %v2103_v3 = vadd.f32 %v2102_v8, %v2101_v25  ;;  %v2110_v25 = vsel %vm1813_vm8, %v2030_v49, 0.0  ;;  %v2036_v49 = vmul.f32 %v3859_v54, %v3859_v54 }
 0x25f   :  { %v2105_v36 = vadd.f32 %v2104_v39, %v2103_v3  ;;  %v2112_v3 = vsel %vm1813_vm8, %v2031_v12, 0.0  ;;  %v2037_v12 = vmul.f32 %v3863_v10, %v3863_v10 }
 0x261   :  { %v2107_v5 = vadd.f32 %v2106_v59, %v2105_v36  ;;  %v2114_v36 = vsel %vm1813_vm8, %v2032_v1, 0.0  ;;  %v2038_v1 = vmul.f32 %v3867_v63, %v3867_v63 }
 0x263   :  { %v2109_v46 = vadd.f32 %v2108_v57, %v2107_v5  ;;  %v2116_v5 = vsel %vm1813_vm8, %v2033_v26, 0.0  ;;  %v2039_v26 = vmul.f32 %v3871_v40, %v3871_v40 }
 0x265   :  { %v2111_v8 = vadd.f32 %v2110_v25, %v2109_v46  ;;  %v2118_v46 = vsel %vm1813_vm8, %v2034_v38, 0.0  ;;  %v2040_v38 = vmul.f32 %v3875_v20, %v3875_v20 }
 0x267   :  { %v2113_v39 = vadd.f32 %v2112_v3, %v2111_v8  ;;  %v2120_v8 = vsel %vm1813_vm8, %v2035_v37, 0.0  ;;  %v2041_v37 = vmul.f32 %v3879_v15, %v3879_v15 }
 0x269   :  { %v2115_v59 = vadd.f32 %v2114_v36, %v2113_v39  ;;  %v2122_v39 = vsel %vm1813_vm8, %v2036_v49, 0.0  ;;  %v2042_v49 = vmul.f32 %v3883_v27, %v3883_v27 }
 0x26b   :  { %v2117_v57 = vadd.f32 %v2116_v5, %v2115_v59  ;;  %v2124_v59 = vsel %vm1813_vm8, %v2037_v12, 0.0  ;;  %v2043_v12 = vmul.f32 %v3887_v52, %v3887_v52 }
 0x26d   :  { %v2119_v25 = vadd.f32 %v2118_v46, %v2117_v57  ;;  %v2126_v57 = vsel %vm1813_vm8, %v2038_v1, 0.0  ;;  %v2044_v1 = vmul.f32 %v3891_v62, %v3891_v62 }
 0x26f   :  { %v2121_v3 = vadd.f32 %v2120_v8, %v2119_v25  ;;  %v2128_v25 = vsel %vm1813_vm8, %v2039_v26, 0.0  ;;  %v2045_v26 = vmul.f32 %v3895_v61, %v3895_v61 }
 0x271   :  { %v2123_v36 = vadd.f32 %v2122_v39, %v2121_v3  ;;  %v2130_v3 = vsel %vm1813_vm8, %v2040_v38, 0.0  ;;  %v2046_v38 = vmul.f32 %v3899_v11, %v3899_v11 }
 0x273   :  { %v2125_v5 = vadd.f32 %v2124_v59, %v2123_v36  ;;  %v2132_v36 = vsel %vm1813_vm8, %v2041_v37, 0.0  ;;  %v2047_v37 = vmul.f32 %v3903_v51, %v3903_v51 }
 0x275   :  { %v2127_v46 = vadd.f32 %v2126_v57, %v2125_v5  ;;  %v2134_v5 = vsel %vm1813_vm8, %v2042_v49, 0.0  ;;  %v2048_v49 = vmul.f32 %v3907_v44, %v3907_v44 }
 0x277   :  { %v2129_v8 = vadd.f32 %v2128_v25, %v2127_v46  ;;  %v2136_v46 = vsel %vm1813_vm8, %v2043_v12, 0.0  ;;  %v2049_v12 = vmul.f32 %v3911_v24, %v3911_v24 }
 0x279   :  { %v2131_v39 = vadd.f32 %v2130_v3, %v2129_v8  ;;  %v2138_v8 = vsel %vm1813_vm8, %v2044_v1, 0.0  ;;  %v2050_v1 = vmul.f32 %v3915_v29, %v3915_v29 }
 0x27b   :  { %v2133_v59 = vadd.f32 %v2132_v36, %v2131_v39  ;;  %v2140_v39 = vsel %vm1813_vm8, %v2045_v26, 0.0  ;;  %v2051_v26 = vmul.f32 %v3919_v0, %v3919_v0 }
 0x27d   :  { %v2135_v57 = vadd.f32 %v2134_v5, %v2133_v59  ;;  %v2142_v59 = vsel %vm1813_vm8, %v2046_v38, 0.0  ;;  %v2052_v38 = vmul.f32 %v3923_v28, %v3923_v28 }
 0x27f   :  { %v2137_v25 = vadd.f32 %v2136_v46, %v2135_v57  ;;  %v2144_v57 = vsel %vm1813_vm8, %v2047_v37, 0.0  ;;  %v2053_v37 = vmul.f32 %v3927_v2, %v3927_v2 }
 0x281   :  { %v2139_v3 = vadd.f32 %v2138_v8, %v2137_v25  ;;  %v2146_v25 = vsel %vm1813_vm8, %v2048_v49, 0.0  ;;  %v2054_v49 = vmul.f32 %v3931_v48, %v3931_v48 }
 0x283   :  { %v2141_v36 = vadd.f32 %v2140_v39, %v2139_v3  ;;  %v2148_v3 = vsel %vm1813_vm8, %v2049_v12, 0.0  ;;  %v2055_v12 = vmul.f32 %v3935_v60, %v3935_v60 }
 0x285   :  { %v2143_v5 = vadd.f32 %v2142_v59, %v2141_v36  ;;  %v2150_v36 = vsel %vm1813_vm8, %v2050_v1, 0.0  ;;  %v2056_v1 = vmul.f32 %v3939_v18, %v3939_v18 }
 0x287   :  { %v2145_v46 = vadd.f32 %v2144_v57, %v2143_v5  ;;  %v2152_v5 = vsel %vm1813_vm8, %v2051_v26, 0.0  ;;  %v2057_v26 = vmul.f32 %v3943_v22, %v3943_v22 }
 0x289   :  { %v2147_v8 = vadd.f32 %v2146_v25, %v2145_v46  ;;  %v2154_v46 = vsel %vm1813_vm8, %v2052_v38, 0.0  ;;  %v2058_v38 = vmul.f32 %v3947_v53, %v3947_v53 }
 0x28b   :  { %v2149_v39 = vadd.f32 %v2148_v3, %v2147_v8  ;;  %v2156_v8 = vsel %vm1813_vm8, %v2053_v37, 0.0  ;;  %v2059_v37 = vmul.f32 %v3951_v30, %v3951_v30 }
 0x28d   :  { %v2151_v59 = vadd.f32 %v2150_v36, %v2149_v39  ;;  %v2158_v39 = vsel %vm1813_vm8, %v2054_v49, 0.0  ;;  %v2060_v49 = vmul.f32 %v3955_v16, %v3955_v16 }
 0x28f   :  { %v2153_v57 = vadd.f32 %v2152_v5, %v2151_v59  ;;  %v2160_v59 = vsel %vm1813_vm8, %v2055_v12, 0.0  ;;  %v2061_v12 = vmul.f32 %v3959_v31, %v3959_v31 }
 0x291   :  { %v2155_v25 = vadd.f32 %v2154_v46, %v2153_v57  ;;  %v2162_v57 = vsel %vm1813_vm8, %v2056_v1, 0.0  ;;  %v2062_v1 = vmul.f32 %v3963_v41, %v3963_v41 }
 0x293   :  { %v2157_v3 = vadd.f32 %v2156_v8, %v2155_v25  ;;  %v2164_v25 = vsel %vm1813_vm8, %v2057_v26, 0.0  ;;  %v5213_v26 = vld [vmem:[#allocation3_spill] sm:$0xff] }
 0x295   :  { %v2159_v36 = vadd.f32 %v2158_v39, %v2157_v3  ;;  %v2166_v3 = vsel %vm1813_vm8, %v2058_v38, 0.0  ;;  %v5214_v38 = vld [vmem:[#allocation5_spill] sm:$0xff] }
 0x297   :  { %v2161_v5 = vadd.f32 %v2160_v59, %v2159_v36  ;;  %v2168_v36 = vsel %vm1813_vm8, %v2059_v37, 0.0  ;;  %v5215_v37 = vld [vmem:[#allocation8_spill] sm:$0xff] }
 0x299   :  { %v2163_v46 = vadd.f32 %v2162_v57, %v2161_v5  ;;  %v2170_v5 = vsel %vm1813_vm8, %v2060_v49, 0.0  ;;  %v5216_v49 = vld [vmem:[#allocation10_spill] sm:$0xff] }
 0x29b   :  { %v2165_v8 = vadd.f32 %v2164_v25, %v2163_v46  ;;  %v2063_v46 = vmul.f32 %v5213_v26, %v5213_v26  ;;  %v2172_v25 = vsel %vm1813_vm8, %v2061_v12, 0.0  ;;  %v5217_v12 = vld [vmem:[#allocation7_spill] sm:$0xff] }
 0x29d   :  { %v2167_v39 = vadd.f32 %v2166_v3, %v2165_v8  ;;  %v2064_v8 = vmul.f32 %v5214_v38, %v5214_v38  ;;  %v2174_v3 = vsel %vm1813_vm8, %v2062_v1, 0.0  ;;  %v5218_v1 = vld [vmem:[#allocation9_spill] sm:$0xff] }
 0x29f   :  { %v2169_v59 = vadd.f32 %v2168_v36, %v2167_v39  ;;  %v2065_v39 = vmul.f32 %v5215_v37, %v5215_v37  ;;  %v2176_v36 = vsel %vm1813_vm8, %v2063_v46, 0.0 }
 0x2a1   :  { %v2171_v57 = vadd.f32 %v2170_v5, %v2169_v59  ;;  %v2066_v59 = vmul.f32 %v5216_v49, %v5216_v49  ;;  %v2178_v5 = vsel %vm1813_vm8, %v2064_v8, 0.0 }
 0x2a3   :  { %v2173_v16 = vadd.f32 %v2172_v25, %v2171_v57  ;;  %v2067_v57 = vmul.f32 %v5217_v12, %v5217_v12  ;;  %v2180_v25 = vsel %vm1813_vm8, %v2065_v39, 0.0 }
 0x2a5   :  { %v2175_v31 = vadd.f32 %v2174_v3, %v2173_v16  ;;  %v2068_v16 = vmul.f32 %v5218_v1, %v5218_v1  ;;  %v2182_v3 = vsel %vm1813_vm8, %v2066_v59, 0.0  ;;  %v2184_v46 = vsel %vm1813_vm8, %v2067_v57, 0.0  ;;  %v5219_v59 = vld [vmem:[#allocation13_spill] sm:$0xff]  ;;  %v5220_v57 = vld [vmem:[#allocation15_spill] sm:$0xff] }
 0x2a7   :  { %v2177_v41 = vadd.f32 %v2176_v36, %v2175_v31  ;;  %v2069_v31 = vmul.f32 %v3991_v43, %v3991_v43  ;;  %v2186_v8 = vsel %vm1813_vm8, %v2068_v16, 0.0  ;;  %v5221_v16 = vld [vmem:[#allocation16_spill] sm:$0xff] }
 0x2a9   :  { %v2179_v26 = vadd.f32 %v2178_v5, %v2177_v41  ;;  %v2070_v41 = vmul.f32 %v3995_v7, %v3995_v7  ;;  %v2188_v39 = vsel %vm1813_vm8, %v2069_v31, 0.0  ;;  %v5222_v31 = vld [vmem:[#allocation21_spill] sm:$0xff] }
 0x2ab   :  { %v2181_v38 = vadd.f32 %v2180_v25, %v2179_v26  ;;  %v2071_v26 = vmul.f32 %v3999_v14, %v3999_v14 }
 0x2ad   :  { %v2183_v37 = vadd.f32 %v2182_v3, %v2181_v38  ;;  %v2072_v38 = vmul.f32 %v5219_v59, %v5219_v59  ;;  %v2190_v3 = vsel %vm1813_vm8, %v2070_v41, 0.0  ;;  %v5223_v41 = vld [vmem:[#allocation22_spill] sm:$0xff] }
 0x2af   :  { %v2185_v36 = vadd.f32 %v2184_v46, %v2183_v37  ;;  %v2073_v37 = vmul.f32 %v5220_v57, %v5220_v57  ;;  %v2192_v46 = vsel %vm1813_vm8, %v2071_v26, 0.0 }
 0x2b1   :  { %v2187_v5 = vadd.f32 %v2186_v8, %v2185_v36  ;;  %v2074_v36 = vmul.f32 %v5221_v16, %v5221_v16  ;;  %v2194_v8 = vsel %vm1813_vm8, %v2072_v38, 0.0 }
 0x2b3   :  { %v2189_v25 = vadd.f32 %v2188_v39, %v2187_v5  ;;  %v2075_v5 = vmul.f32 %v5222_v31, %v5222_v31  ;;  %v2196_v39 = vsel %vm1813_vm8, %v2073_v37, 0.0 }
 0x2b5   :  { %v2191_v43 = vadd.f32 %v2190_v3, %v2189_v25  ;;  %v2076_v25 = vmul.f32 %v5223_v41, %v5223_v41  ;;  %v2198_v3 = vsel %vm1813_vm8, %v2074_v36, 0.0  ;;  %v5224_v41 = vld [vmem:[#allocation17_spill] sm:$0xff]  ;;  %v5225_v36 = vld [vmem:[#allocation18_spill] sm:$0xff] }
 0x2b7   :  { %v2193_v7 = vadd.f32 %v2192_v46, %v2191_v43  ;;  %v2200_v43 = vsel %vm1813_vm8, %v2075_v5, 0.0  ;;  %v2202_v46 = vsel %vm1813_vm8, %v2076_v25, 0.0  ;;  %v5226_v5 = vld [vmem:[#allocation19_spill] sm:$0xff]  ;;  %v5227_v25 = vld [vmem:[#allocation20_spill] sm:$0xff] }
 0x2b9   :  { %v2195_v14 = vadd.f32 %v2194_v8, %v2193_v7 }
 0x2bb   :  { %v2197_v59 = vadd.f32 %v2196_v39, %v2195_v14 }
 0x2bd   :  { %v2199_v57 = vadd.f32 %v2198_v3, %v2197_v59 }
 0x2bf   :  { %v2201_v26 = vadd.f32 %v2200_v43, %v2199_v57 }
 0x2c1   :  { %v2203_v16 = vadd.f32 %v2202_v46, %v2201_v26  ;;  %v5228_v26 = vld [vmem:[#allocation2_spill] sm:$0xff]  ;;  %v5229_v46 = vld [vmem:[#allocation4_spill] sm:$0xff] }
 0x2c3   :  { %v2204_v38 = vrot.slane %v2203_v16, 4 }
 0x2c5   :  { %v2205_v7 = vadd.f32 %v2204_v38, %v2203_v16  ;;  %v5230_v38 = vld [vmem:[#allocation6_spill] sm:$0xff] }
 0x2c7   :  { %v2206_v8 = vrot.slane %v2205_v7, 2 }
 0x2c9   :  { %v2207_v1 = vadd.f32 %v2206_v8, %v2205_v7  ;;  %v5231_v7 = vld [vmem:[#allocation3_spill] sm:$0xff]  ;;  %v5232_v8 = vld [vmem:[#allocation5_spill] sm:$0xff] }
 0x2cb   :  { %v2208_v31 = vrot.slane %v2207_v1, 1 }
 0x2cd   :  { %v2209_v12 = vadd.f32 %v2208_v31, %v2207_v1 }
 0x2cf   :  { %v2210_v37 = vmul.f32 0.001953125, %v2209_v12 }
 0x2d1   :  { %v2211_v14 = vadd.f32 1e-05, %v2210_v37  ;;  %v5234_v37 = vld [vmem:[#allocation8_spill] sm:$0xff] }
 0x2d3   :  { %2728 = vrsqrt.f32 %v2211_v14 }
 0x2dd   :  { %v4213_v39 = vpop.eup %2728 }
 0x2de   :  { %v4217_v59 = vmul.f32 %v4213_v39, %v5224_v41  ;;  %v4221_v57 = vmul.f32 %v4213_v39, %v5225_v36  ;;  %v4225_v16 = vmul.f32 %v4213_v39, %v5226_v5  ;;  %v4229_v1 = vmul.f32 %v4213_v39, %v5227_v25  ;;  %v5237_v5 = vld [vmem:[#allocation7_spill] sm:$0xff] }
 0x2df   :  { %v4233_v12 = vmul.f32 %v4213_v39, %v3783_v17  ;;  %v4237_v31 = vmul.f32 %v4213_v39, %v3787_v9  ;;  %v4241_v41 = vmul.f32 %v4213_v39, %v3791_v13  ;;  %v4245_v3 = vmul.f32 %v4213_v39, %v3795_v6 }
 0x2e0   :  { %v4249_v43 = vmul.f32 %v4213_v39, %v3799_v47  ;;  %v4253_v17 = vmul.f32 %v4213_v39, %v3803_v21  ;;  %v4257_v9 = vmul.f32 %v4213_v39, %v3807_v23  ;;  %v4261_v13 = vmul.f32 %v4213_v39, %v3811_v50 }
 0x2e1   :  { %v4265_v6 = vmul.f32 %v4213_v39, %v3815_v56  ;;  %v4269_v47 = vmul.f32 %v4213_v39, %v3819_v33  ;;  %v4273_v21 = vmul.f32 %v4213_v39, %v3823_v45  ;;  %v4277_v23 = vmul.f32 %v4213_v39, %v3827_v32 }
 0x2e2   :  { %v4281_v50 = vmul.f32 %v4213_v39, %v3831_v55  ;;  %v4285_v56 = vmul.f32 %v4213_v39, %v3835_v34  ;;  %v4289_v33 = vmul.f32 %v4213_v39, %v3839_v58  ;;  %v4293_v45 = vmul.f32 %v4213_v39, %v3843_v19 }
 0x2e3   :  { %v4297_v32 = vmul.f32 %v4213_v39, %v3847_v35  ;;  %v4301_v55 = vmul.f32 %v4213_v39, %v3851_v42  ;;  %v4305_v34 = vmul.f32 %v4213_v39, %v3855_v4  ;;  %v4309_v58 = vmul.f32 %v4213_v39, %v3859_v54 }
 0x2e4   :  { %v4313_v19 = vmul.f32 %v4213_v39, %v3863_v10  ;;  %v4317_v35 = vmul.f32 %v4213_v39, %v3867_v63  ;;  %v4321_v42 = vmul.f32 %v4213_v39, %v3871_v40  ;;  %v4325_v4 = vmul.f32 %v4213_v39, %v3875_v20 }
 0x2e5   :  { %v4329_v54 = vmul.f32 %v4213_v39, %v3879_v15  ;;  %v4333_v10 = vmul.f32 %v4213_v39, %v3883_v27  ;;  %v4337_v63 = vmul.f32 %v4213_v39, %v3887_v52  ;;  %v4341_v40 = vmul.f32 %v4213_v39, %v3891_v62 }
 0x2e6   :  { %v4345_v20 = vmul.f32 %v4213_v39, %v3895_v61  ;;  %v4349_v15 = vmul.f32 %v4213_v39, %v3899_v11  ;;  %v4353_v27 = vmul.f32 %v4213_v39, %v3903_v51  ;;  %v4357_v52 = vmul.f32 %v4213_v39, %v3907_v44 }
 0x2e7   :  { %v4361_v62 = vmul.f32 %v4213_v39, %v3911_v24  ;;  %v4365_v61 = vmul.f32 %v4213_v39, %v3915_v29  ;;  %v4369_v11 = vmul.f32 %v4213_v39, %v3919_v0  ;;  %v4373_v51 = vmul.f32 %v4213_v39, %v3923_v28 }
 0x2e8   :  { %v4377_v44 = vmul.f32 %v4213_v39, %v3927_v2  ;;  %v4381_v24 = vmul.f32 %v4213_v39, %v3931_v48  ;;  %v4385_v29 = vmul.f32 %v4213_v39, %v3935_v60  ;;  %v4389_v0 = vmul.f32 %v4213_v39, %v3939_v18 }
 0x2e9   :  { %v4393_v28 = vmul.f32 %v4213_v39, %v3943_v22  ;;  %v4397_v2 = vmul.f32 %v4213_v39, %v3947_v53  ;;  %v4401_v48 = vmul.f32 %v4213_v39, %v3951_v30  ;;  %v4405_v60 = vmul.f32 %v4213_v39, %v5228_v26  ;;  %v5239_v26 = vld [vmem:[#allocation9_spill] sm:$0xff] }
 0x2ea   :  { %v4409_v18 = vmul.f32 %v4213_v39, %v5229_v46  ;;  %v4413_v22 = vmul.f32 %v4213_v39, %v5230_v38  ;;  %v4417_v53 = vmul.f32 %v4213_v39, %v5231_v7  ;;  %v4421_v30 = vmul.f32 %v4213_v39, %v5232_v8  ;;  %v4442_v38 = vld [vmem:[%s5123_s2] ss:$0 sm:$0xff]  ;;  %v5241_v7 = vld [vmem:[#allocation12_spill] sm:$0xff] }
 0x2eb   :  { %v4425_v14 = vmul.f32 %v4213_v39, %v5234_v37  ;;  %v4429_v36 = vmul.f32 %v4213_v39, %v5216_v49  ;;  %v4433_v25 = vmul.f32 %v4213_v39, %v5237_v5  ;;  %v4437_v46 = vmul.f32 %v4213_v39, %v5239_v26  ;;  %v5243_v37 = vld [vmem:[#allocation14_spill] sm:$0xff] }
 0x2ec   :  { %5233 = vst [vmem:[#allocation10_spill] sm:$0xff] %v4421_v30  ;;  %v4446_v8 = vmul.f32 %v4213_v39, %v5241_v7  ;;  %v4450_v49 = vmul.f32 %v4213_v39, %v5243_v37  ;;  %v5248_v30 = vld [vmem:[#allocation16_spill] sm:$0xff] }
 0x2ed   :  { %5235 = vst [vmem:[#allocation17_spill] sm:$0xff] %v4425_v14  ;;  %5236 = vst [vmem:[#allocation18_spill] sm:$0xff] %v4429_v36  ;;  %v5245_v36 = vld [vmem:[#allocation11_spill] sm:$0xff]  ;;  %v4466_v7 = vmul.f32 %v4213_v39, %v5248_v30  ;;  %v4486_v30 = vmul.f32 %v4442_v38, %v4225_v16  ;;  %v4506_v16 = vmul.f32 %v4442_v38, %v4245_v3 }
 0x2ee   :  { %5238 = vst [vmem:[#allocation19_spill] sm:$0xff] %v4433_v25  ;;  %5240 = vst [vmem:[#allocation20_spill] sm:$0xff] %v4437_v46  ;;  %v4454_v5 = vmul.f32 %v4213_v39, %v5245_v36  ;;  %v5246_v25 = vld [vmem:[#allocation13_spill] sm:$0xff]  ;;  %v5247_v46 = vld [vmem:[#allocation15_spill] sm:$0xff]  ;;  %v4526_v3 = vmul.f32 %v4442_v38, %v4265_v6  ;;  %v4546_v6 = vmul.f32 %v4442_v38, %v4285_v56 }
 0x2ef   :  { %5242 = vst [vmem:[#allocation2_spill] sm:$0xff] %v4446_v8  ;;  %5244 = vst [vmem:[#allocation4_spill] sm:$0xff] %v4450_v49  ;;  %v4458_v26 = vmul.f32 %v4213_v39, %v5246_v25  ;;  %v4462_v14 = vmul.f32 %v4213_v39, %v5247_v46  ;;  %v5249_v8 = vld [vmem:[#allocation21_spill] sm:$0xff]  ;;  %v5250_v49 = vld [vmem:[#allocation22_spill] sm:$0xff]  ;;  %v4478_v25 = vmul.f32 %v4442_v38, %v4217_v59 }
 0x2f0   :  { %v4470_v37 = vmul.f32 %v4213_v39, %v5249_v8  ;;  %v4474_v36 = vmul.f32 %v4213_v39, %v5250_v49  ;;  %v4482_v46 = vmul.f32 %v4442_v38, %v4221_v57  ;;  %v4490_v8 = vmul.f32 %v4442_v38, %v4229_v1 }
 0x2f1   :  { %v4494_v39 = vmul.f32 %v4442_v38, %v4233_v12  ;;  %v4498_v59 = vmul.f32 %v4442_v38, %v4237_v31  ;;  %v4502_v57 = vmul.f32 %v4442_v38, %v4241_v41  ;;  %v4510_v1 = vmul.f32 %v4442_v38, %v4249_v43 }
 0x2f2   :  { %v4514_v12 = vmul.f32 %v4442_v38, %v4253_v17  ;;  %v4518_v31 = vmul.f32 %v4442_v38, %v4257_v9  ;;  %v4522_v41 = vmul.f32 %v4442_v38, %v4261_v13  ;;  %v4530_v43 = vmul.f32 %v4442_v38, %v4269_v47 }
 0x2f3   :  { %v4534_v17 = vmul.f32 %v4442_v38, %v4273_v21  ;;  %v4538_v9 = vmul.f32 %v4442_v38, %v4277_v23  ;;  %v4542_v13 = vmul.f32 %v4442_v38, %v4281_v50  ;;  %v4550_v47 = vmul.f32 %v4442_v38, %v4289_v33  ;;  %v5255_v49 = vld [vmem:[#allocation10_spill] sm:$0xff] }
 0x2f4   :  { %v4554_v21 = vmul.f32 %v4442_v38, %v4293_v45  ;;  %v4558_v23 = vmul.f32 %v4442_v38, %v4297_v32  ;;  %v4562_v50 = vmul.f32 %v4442_v38, %v4301_v55  ;;  %v4566_v56 = vmul.f32 %v4442_v38, %v4305_v34 }
 0x2f5   :  { %v4570_v33 = vmul.f32 %v4442_v38, %v4309_v58  ;;  %v4574_v45 = vmul.f32 %v4442_v38, %v4313_v19  ;;  %v4578_v32 = vmul.f32 %v4442_v38, %v4317_v35  ;;  %v4582_v55 = vmul.f32 %v4442_v38, %v4321_v42 }
 0x2f6   :  { %v4586_v34 = vmul.f32 %v4442_v38, %v4325_v4  ;;  %v4590_v58 = vmul.f32 %v4442_v38, %v4329_v54  ;;  %v4594_v19 = vmul.f32 %v4442_v38, %v4333_v10  ;;  %v4598_v35 = vmul.f32 %v4442_v38, %v4337_v63 }
 0x2f7   :  { %v4602_v42 = vmul.f32 %v4442_v38, %v4341_v40  ;;  %v4606_v4 = vmul.f32 %v4442_v38, %v4345_v20  ;;  %v4610_v54 = vmul.f32 %v4442_v38, %v4349_v15  ;;  %v4614_v10 = vmul.f32 %v4442_v38, %v4353_v27 }
 0x2f8   :  { %v4618_v63 = vmul.f32 %v4442_v38, %v4357_v52  ;;  %v4622_v40 = vmul.f32 %v4442_v38, %v4361_v62  ;;  %v4626_v20 = vmul.f32 %v4442_v38, %v4365_v61  ;;  %v4630_v15 = vmul.f32 %v4442_v38, %v4369_v11 }
 0x2f9   :  { %v4634_v27 = vmul.f32 %v4442_v38, %v4373_v51  ;;  %v4638_v52 = vmul.f32 %v4442_v38, %v4377_v44  ;;  %v4642_v62 = vmul.f32 %v4442_v38, %v4381_v24  ;;  %v4646_v61 = vmul.f32 %v4442_v38, %v4385_v29 }
 0x2fa   :  { %v4650_v11 = vmul.f32 %v4442_v38, %v4389_v0  ;;  %v4654_v51 = vmul.f32 %v4442_v38, %v4393_v28  ;;  %v4658_v44 = vmul.f32 %v4442_v38, %v4397_v2  ;;  %v4662_v24 = vmul.f32 %v4442_v38, %v4401_v48 }
 0x2fb   :  { %v4666_v29 = vmul.f32 %v4442_v38, %v4405_v60  ;;  %v4670_v0 = vmul.f32 %v4442_v38, %v4409_v18  ;;  %v4674_v28 = vmul.f32 %v4442_v38, %v4413_v22  ;;  %v4678_v2 = vmul.f32 %v4442_v38, %v4417_v53 }
 0x2fc   :  { %5251 = vst [vmem:[#allocation6_spill] sm:$0xff] %v4662_v24  ;;  %v4682_v48 = vmul.f32 %v4442_v38, %v5255_v49  ;;  %v5257_v24 = vld [vmem:[#allocation17_spill] sm:$0xff]  ;;  %v4703_v49 = vld [vmem:[%s5124_s3] ss:$0 sm:$0xff] }
 0x2fd   :  { %5252 = vst [vmem:[#allocation3_spill] sm:$0xff] %v4666_v29  ;;  %5253 = vst [vmem:[#allocation5_spill] sm:$0xff] %v4670_v0  ;;  %v4686_v60 = vmul.f32 %v4442_v38, %v5257_v24  ;;  %v5259_v29 = vld [vmem:[#allocation18_spill] sm:$0xff]  ;;  %v5260_v0 = vld [vmem:[#allocation19_spill] sm:$0xff] }
 0x2fe   :  { %5254 = vst [vmem:[#allocation8_spill] sm:$0xff] %v4674_v28  ;;  %5256 = vst [vmem:[#allocation7_spill] sm:$0xff] %v4682_v48  ;;  %v4690_v18 = vmul.f32 %v4442_v38, %v5259_v29  ;;  %v4694_v22 = vmul.f32 %v4442_v38, %v5260_v0  ;;  %v5261_v28 = vld [vmem:[#allocation20_spill] sm:$0xff]  ;;  %v5263_v48 = vld [vmem:[#allocation2_spill] sm:$0xff]  ;;  %v4715_v0 = vmul.f32 %v4442_v38, %v4454_v5 }
 0x2ff   :  { %5258 = vst [vmem:[#allocation9_spill] sm:$0xff] %v4686_v60  ;;  %v4698_v53 = vmul.f32 %v4442_v38, %v5261_v28  ;;  %v4707_v24 = vmul.f32 %v4442_v38, %v5263_v48  ;;  %v5264_v60 = vld [vmem:[#allocation4_spill] sm:$0xff]  ;;  %v4719_v28 = vmul.f32 %v4442_v38, %v4458_v26  ;;  %v4727_v48 = vmul.f32 %v4442_v38, %v4466_v7 }
 0x300   :  { %v4711_v29 = vmul.f32 %v4442_v38, %v5264_v60  ;;  %v4731_v60 = vmul.f32 %v4442_v38, %v4470_v37  ;;  %v4735_v5 = vmul.f32 %v4442_v38, %v4474_v36  ;;  %v2355_v26 = vadd.f32 %v4703_v49, %v4478_v25 }
 0x301   :  { %5262 = vst [vmem:[#allocation12_spill] sm:$0xff] %v4698_v53  ;;  %5265 = vst [vmem:[#allocation14_spill] sm:$0xff] %v4719_v28  ;;  %v4723_v53 = vmul.f32 %v4442_v38, %v4462_v14  ;;  %v2356_v28 = vadd.f32 %v4703_v49, %v4482_v46  ;;  %v2357_v14 = vadd.f32 %v4703_v49, %v4486_v30 }
 0x302   :  { %5266 = vst [vmem:[#allocation11_spill] sm:$0xff] %v4731_v60  ;;  %v2358_v7 = vadd.f32 %v4703_v49, %v4490_v8  ;;  %v2359_v37 = vadd.f32 %v4703_v49, %v4494_v39  ;;  %v2360_v60 = vadd.f32 %v4703_v49, %v4498_v59  ;;  %v2361_v38 = vadd.f32 %v4703_v49, %v4502_v57 }
 0x303   :  { %v2362_v36 = vadd.f32 %v4703_v49, %v4506_v16  ;;  %v2363_v25 = vadd.f32 %v4703_v49, %v4510_v1  ;;  %v2364_v46 = vadd.f32 %v4703_v49, %v4514_v12  ;;  %v2365_v30 = vadd.f32 %v4703_v49, %v4518_v31  ;;  %2419 = vst.msk [vmem:[%s5125_s4] sm:$0xff] %vm1813_vm8, %v2355_v26 }
 0x304   :  { %v2366_v8 = vadd.f32 %v4703_v49, %v4522_v41  ;;  %2420 = vst.msk [vmem:[%s5125_s4 + $0x8] sm:$0xff] %vm1813_vm8, %v2356_v28  ;;  %2421 = vst.msk [vmem:[%s5125_s4 + $0x10] sm:$0xff] %vm1813_vm8, %v2357_v14  ;;  %v2367_v39 = vadd.f32 %v4703_v49, %v4526_v3  ;;  %v2368_v59 = vadd.f32 %v4703_v49, %v4530_v43 }
 0x305   :  { %2422 = vst.msk [vmem:[%s5125_s4 + $0x18] sm:$0xff] %vm1813_vm8, %v2358_v7  ;;  %v2369_v57 = vadd.f32 %v4703_v49, %v4534_v17  ;;  %v2370_v16 = vadd.f32 %v4703_v49, %v4538_v9  ;;  %2423 = vst.msk [vmem:[%s5125_s4 + $0x20] sm:$0xff] %vm1813_vm8, %v2359_v37  ;;  %v2371_v1 = vadd.f32 %v4703_v49, %v4542_v13 }
 0x306   :  { %2424 = vst.msk [vmem:[%s5125_s4 + $0x28] sm:$0xff] %vm1813_vm8, %v2360_v60  ;;  %2425 = vst.msk [vmem:[%s5125_s4 + $0x30] sm:$0xff] %vm1813_vm8, %v2361_v38  ;;  %v2372_v12 = vadd.f32 %v4703_v49, %v4546_v6  ;;  %v2373_v31 = vadd.f32 %v4703_v49, %v4550_v47  ;;  %v2374_v41 = vadd.f32 %v4703_v49, %v4554_v21  ;;  %v5271_v60 = vld [vmem:[#allocation7_spill] sm:$0xff] }
 0x307   :  { %2426 = vst.msk [vmem:[%s5125_s4 + $0x38] sm:$0xff] %vm1813_vm8, %v2362_v36  ;;  %2427 = vst.msk [vmem:[%s5125_s4 + $0x40] sm:$0xff] %vm1813_vm8, %v2363_v25  ;;  %v2375_v3 = vadd.f32 %v4703_v49, %v4558_v23  ;;  %v2376_v43 = vadd.f32 %v4703_v49, %v4562_v50  ;;  %v2377_v17 = vadd.f32 %v4703_v49, %v4566_v56 }
 0x308   :  { %2428 = vst.msk [vmem:[%s5125_s4 + $0x48] sm:$0xff] %vm1813_vm8, %v2364_v46  ;;  %2429 = vst.msk [vmem:[%s5125_s4 + $0x50] sm:$0xff] %vm1813_vm8, %v2365_v30  ;;  %v2378_v9 = vadd.f32 %v4703_v49, %v4570_v33  ;;  %v2379_v13 = vadd.f32 %v4703_v49, %v4574_v45  ;;  %v2380_v6 = vadd.f32 %v4703_v49, %v4578_v32  ;;  %v5273_v38 = vld [vmem:[#allocation12_spill] sm:$0xff]  ;;  %v5274_v46 = vld [vmem:[#allocation14_spill] sm:$0xff] }
 0x309   :  { %2430 = vst.msk [vmem:[%s5125_s4 + $0x58] sm:$0xff] %vm1813_vm8, %v2366_v8  ;;  %2431 = vst.msk [vmem:[%s5125_s4 + $0x60] sm:$0xff] %vm1813_vm8, %v2367_v39  ;;  %v2381_v47 = vadd.f32 %v4703_v49, %v4582_v55  ;;  %v2382_v21 = vadd.f32 %v4703_v49, %v4586_v34  ;;  %v2383_v23 = vadd.f32 %v4703_v49, %v4590_v58 }
 0x30a   :  { %2432 = vst.msk [vmem:[%s5125_s4 + $0x68] sm:$0xff] %vm1813_vm8, %v2368_v59  ;;  %2433 = vst.msk [vmem:[%s5125_s4 + $0x70] sm:$0xff] %vm1813_vm8, %v2369_v57  ;;  %v2384_v50 = vadd.f32 %v4703_v49, %v4594_v19  ;;  %v2385_v56 = vadd.f32 %v4703_v49, %v4598_v35  ;;  %v2386_v33 = vadd.f32 %v4703_v49, %v4602_v42 }
 0x30b   :  { %2434 = vst.msk [vmem:[%s5125_s4 + $0x78] sm:$0xff] %vm1813_vm8, %v2370_v16  ;;  %2435 = vst.msk [vmem:[%s5125_s4 + $0x80] sm:$0xff] %vm1813_vm8, %v2371_v1  ;;  %v2387_v45 = vadd.f32 %v4703_v49, %v4606_v4  ;;  %v2388_v32 = vadd.f32 %v4703_v49, %v4610_v54  ;;  %v2389_v55 = vadd.f32 %v4703_v49, %v4614_v10 }
 0x30c   :  { %2436 = vst.msk [vmem:[%s5125_s4 + $0x88] sm:$0xff] %vm1813_vm8, %v2372_v12  ;;  %2437 = vst.msk [vmem:[%s5125_s4 + $0x90] sm:$0xff] %vm1813_vm8, %v2373_v31  ;;  %v2390_v34 = vadd.f32 %v4703_v49, %v4618_v63  ;;  %v2391_v58 = vadd.f32 %v4703_v49, %v4622_v40  ;;  %v2392_v19 = vadd.f32 %v4703_v49, %v4626_v20 }
 0x30d   :  { %2438 = vst.msk [vmem:[%s5125_s4 + $0x98] sm:$0xff] %vm1813_vm8, %v2374_v41  ;;  %2439 = vst.msk [vmem:[%s5125_s4 + $0xa0] sm:$0xff] %vm1813_vm8, %v2375_v3  ;;  %v2393_v35 = vadd.f32 %v4703_v49, %v4630_v15  ;;  %v2394_v42 = vadd.f32 %v4703_v49, %v4634_v27  ;;  %v2395_v4 = vadd.f32 %v4703_v49, %v4638_v52  ;;  %v5267_v15 = vld [vmem:[#allocation6_spill] sm:$0xff]  ;;  %v5268_v52 = vld [vmem:[#allocation3_spill] sm:$0xff] }
 0x30e   :  { %2440 = vst.msk [vmem:[%s5125_s4 + $0xa8] sm:$0xff] %vm1813_vm8, %v2376_v43  ;;  %2441 = vst.msk [vmem:[%s5125_s4 + $0xb0] sm:$0xff] %vm1813_vm8, %v2377_v17  ;;  %v2396_v54 = vadd.f32 %v4703_v49, %v4642_v62  ;;  %v2397_v10 = vadd.f32 %v4703_v49, %v4646_v61  ;;  %v2398_v63 = vadd.f32 %v4703_v49, %v4650_v11  ;;  %v5269_v61 = vld [vmem:[#allocation5_spill] sm:$0xff] }
 0x30f   :  { %2442 = vst.msk [vmem:[%s5125_s4 + $0xb8] sm:$0xff] %vm1813_vm8, %v2378_v9  ;;  %2443 = vst.msk [vmem:[%s5125_s4 + $0xc0] sm:$0xff] %vm1813_vm8, %v2379_v13  ;;  %v2399_v40 = vadd.f32 %v4703_v49, %v4654_v51  ;;  %v2400_v20 = vadd.f32 %v4703_v49, %v4658_v44  ;;  %v2401_v27 = vadd.f32 %v4703_v49, %v5267_v15  ;;  %v5270_v51 = vld [vmem:[#allocation8_spill] sm:$0xff] }
 0x310   :  { %2444 = vst.msk [vmem:[%s5125_s4 + $0xc8] sm:$0xff] %vm1813_vm8, %v2380_v6  ;;  %2445 = vst.msk [vmem:[%s5125_s4 + $0xd0] sm:$0xff] %vm1813_vm8, %v2381_v47  ;;  %v2402_v62 = vadd.f32 %v4703_v49, %v5268_v52  ;;  %v2403_v11 = vadd.f32 %v4703_v49, %v5269_v61  ;;  %v2404_v44 = vadd.f32 %v4703_v49, %v5270_v51 }
 0x311   :  { %2446 = vst.msk [vmem:[%s5125_s4 + $0xd8] sm:$0xff] %vm1813_vm8, %v2382_v21  ;;  %2447 = vst.msk [vmem:[%s5125_s4 + $0xe0] sm:$0xff] %vm1813_vm8, %v2383_v23  ;;  %v2405_v28 = vadd.f32 %v4703_v49, %v4678_v2  ;;  %v2406_v26 = vadd.f32 %v4703_v49, %v5271_v60  ;;  %v5272_v2 = vld [vmem:[#allocation9_spill] sm:$0xff]  ;;  %v2408_v7 = vadd.f32 %v4703_v49, %v4690_v18 }
 0x312   :  { %2448 = vst.msk [vmem:[%s5125_s4 + $0xe8] sm:$0xff] %vm1813_vm8, %v2384_v50  ;;  %2449 = vst.msk [vmem:[%s5125_s4 + $0xf0] sm:$0xff] %vm1813_vm8, %v2385_v56  ;;  %v2407_v14 = vadd.f32 %v4703_v49, %v5272_v2  ;;  %v2409_v37 = vadd.f32 %v4703_v49, %v4694_v22  ;;  %v2410_v36 = vadd.f32 %v4703_v49, %v5273_v38 }
 0x313   :  { %2450 = vst.msk [vmem:[%s5125_s4 + $0xf8] sm:$0xff] %vm1813_vm8, %v2386_v33  ;;  %2451 = vst.msk [vmem:[%s5125_s4 + $0x100] sm:$0xff] %vm1813_vm8, %v2387_v45  ;;  %v2411_v18 = vadd.f32 %v4703_v49, %v4707_v24  ;;  %v2412_v22 = vadd.f32 %v4703_v49, %v4711_v29  ;;  %v2413_v25 = vadd.f32 %v4703_v49, %v4715_v0  ;;  %v5275_v0 = vld [vmem:[#allocation11_spill] sm:$0xff] }
 0x314   :  { %2452 = vst.msk [vmem:[%s5125_s4 + $0x108] sm:$0xff] %vm1813_vm8, %v2388_v32  ;;  %2453 = vst.msk [vmem:[%s5125_s4 + $0x110] sm:$0xff] %vm1813_vm8, %v2389_v55  ;;  %v2414_v30 = vadd.f32 %v4703_v49, %v5274_v46  ;;  %v2415_v24 = vadd.f32 %v4703_v49, %v4723_v53  ;;  %v2416_v29 = vadd.f32 %v4703_v49, %v4727_v48 }
 0x315   :  { %2454 = vst.msk [vmem:[%s5125_s4 + $0x118] sm:$0xff] %vm1813_vm8, %v2390_v34  ;;  %2455 = vst.msk [vmem:[%s5125_s4 + $0x120] sm:$0xff] %vm1813_vm8, %v2391_v58  ;;  %v2417_v8 = vadd.f32 %v4703_v49, %v5275_v0  ;;  %v2418_v39 = vadd.f32 %v4703_v49, %v4735_v5 }
 0x316   :  { %2456 = vst.msk [vmem:[%s5125_s4 + $0x128] sm:$0xff] %vm1813_vm8, %v2392_v19  ;;  %2457 = vst.msk [vmem:[%s5125_s4 + $0x130] sm:$0xff] %vm1813_vm8, %v2393_v35 }
 0x317   :  { %2458 = vst.msk [vmem:[%s5125_s4 + $0x138] sm:$0xff] %vm1813_vm8, %v2394_v42  ;;  %2459 = vst.msk [vmem:[%s5125_s4 + $0x140] sm:$0xff] %vm1813_vm8, %v2395_v4 }
 0x318   :  { %2460 = vst.msk [vmem:[%s5125_s4 + $0x148] sm:$0xff] %vm1813_vm8, %v2396_v54  ;;  %2461 = vst.msk [vmem:[%s5125_s4 + $0x150] sm:$0xff] %vm1813_vm8, %v2397_v10 }
 0x319   :  { %2462 = vst.msk [vmem:[%s5125_s4 + $0x158] sm:$0xff] %vm1813_vm8, %v2398_v63  ;;  %2463 = vst.msk [vmem:[%s5125_s4 + $0x160] sm:$0xff] %vm1813_vm8, %v2399_v40 }
 0x31a   :  { %2464 = vst.msk [vmem:[%s5125_s4 + $0x168] sm:$0xff] %vm1813_vm8, %v2400_v20  ;;  %2465 = vst.msk [vmem:[%s5125_s4 + $0x170] sm:$0xff] %vm1813_vm8, %v2401_v27 }
 0x31b   :  { %2466 = vst.msk [vmem:[%s5125_s4 + $0x178] sm:$0xff] %vm1813_vm8, %v2402_v62  ;;  %2467 = vst.msk [vmem:[%s5125_s4 + $0x180] sm:$0xff] %vm1813_vm8, %v2403_v11 }
 0x31c   :  { %2468 = vst.msk [vmem:[%s5125_s4 + $0x188] sm:$0xff] %vm1813_vm8, %v2404_v44  ;;  %2469 = vst.msk [vmem:[%s5125_s4 + $0x190] sm:$0xff] %vm1813_vm8, %v2405_v28 }
 0x31d   :  { %2470 = vst.msk [vmem:[%s5125_s4 + $0x198] sm:$0xff] %vm1813_vm8, %v2406_v26  ;;  %2471 = vst.msk [vmem:[%s5125_s4 + $0x1a0] sm:$0xff] %vm1813_vm8, %v2407_v14 }
 0x31e   :  { %2472 = vst.msk [vmem:[%s5125_s4 + $0x1a8] sm:$0xff] %vm1813_vm8, %v2408_v7  ;;  %2473 = vst.msk [vmem:[%s5125_s4 + $0x1b0] sm:$0xff] %vm1813_vm8, %v2409_v37 }
 0x31f   :  { %2474 = vst.msk [vmem:[%s5125_s4 + $0x1b8] sm:$0xff] %vm1813_vm8, %v2410_v36  ;;  %2475 = vst.msk [vmem:[%s5125_s4 + $0x1c0] sm:$0xff] %vm1813_vm8, %v2411_v18 }
 0x320   :  { %2476 = vst.msk [vmem:[%s5125_s4 + $0x1c8] sm:$0xff] %vm1813_vm8, %v2412_v22  ;;  %2477 = vst.msk [vmem:[%s5125_s4 + $0x1d0] sm:$0xff] %vm1813_vm8, %v2413_v25 }
 0x321   :  { %2478 = vst.msk [vmem:[%s5125_s4 + $0x1d8] sm:$0xff] %vm1813_vm8, %v2414_v30  ;;  %2479 = vst.msk [vmem:[%s5125_s4 + $0x1e0] sm:$0xff] %vm1813_vm8, %v2415_v24 }
 0x322   :  { %2480 = vst.msk [vmem:[%s5125_s4 + $0x1e8] sm:$0xff] %vm1813_vm8, %v2416_v29  ;;  %2481 = vst.msk [vmem:[%s5125_s4 + $0x1f0] sm:$0xff] %vm1813_vm8, %v2417_v8 }
 0x323   :  { %2482 = vst.msk [vmem:[%s5125_s4 + $0x1f8] sm:$0xff] %vm1813_vm8, %v2418_v39 }

// kernel: vae_encoder_forward.7
= control target key start
LH: loop header
LB: loop body
LE: loop exit
PB: predicated region body
PF: predicated region fallthrough
CT: control target
= control target key end

     0   :  { %s1039_s13 = smov 64   ;;  %s1550_s0 = inlined_call_operand.vmem [shape: bf16[2,9,9,64], index: 0, kind: input, shape index: {}]   ;;  %s1551_s1 = inlined_call_operand.vmem [shape: bf16[256,32], index: 1, kind: input, shape index: {}]   ;;  %s1552_s2 = inlined_call_operand.vmem [shape: f32[1,32], index: 2, kind: input, shape index: {}]   ;;  %s1553_s3 = inlined_call_operand.vmem [shape: f32[1,32], index: 3, kind: input, shape index: {}]   ;;  %s1554_s4 = inlined_call_operand.vmem [shape: f32[2,8,8,32], index: 4, kind: output, shape index: {}]  }
   0x1   :  { %v24_v0 = vld [vmem:[%s1550_s0] ss:$8 sps:$4 sm:$0xff]   ;;  %v25_v1 = vld [vmem:[%s1550_s0 + $0xc] sm:$0x1]  ;;  %v23_v2 = vld [vmem:[%s1550_s0 + $0x4] sm:$0x1] }
   0x2   :  { %v60_v3 = vunpack.c.h.bf16 %v24_v0  ;;  %v61_v4 = vunpack.c.l.bf16 %v25_v1  ;;  %v58_v5 = vunpack.c.l.bf16 %v24_v0  ;;  %v59_v6 = vunpack.c.l.bf16 %v23_v2  ;;  %v26_v7 = vld [vmem:[%s1550_s0 + $0x10] ss:$8 sps:$4 sm:$0xff]   ;;  %v27_v8 = vld [vmem:[%s1550_s0 + $0x14] sm:$0x1]  ;;  %v29_v9 = vld [vmem:[%s1550_s0 + $0x1c] sm:$0x1] }
   0x3   :  { %v62_v10 = vunpack.c.l.bf16 %v26_v7  ;;  %v63_v11 = vunpack.c.l.bf16 %v27_v8  ;;  %v64_v12 = vunpack.c.h.bf16 %v26_v7  ;;  %v65_v13 = vunpack.c.l.bf16 %v29_v9  ;;  %v30_v26 = vld [vmem:[%s1550_s0 + $0x20] ss:$8 sps:$4 sm:$0xff]   ;;  %v31_v31 = vld [vmem:[%s1550_s0 + $0x24] sm:$0x1]  ;;  %v33_v50 = vld [vmem:[%s1550_s0 + $0x2c] sm:$0x1] }
   0x4   :  { %vm96_vm0 = vcmp.ge.f32.partialorder %v60_v3, 0.0  ;;  %vm97_vm1 = vcmp.ge.f32.partialorder %v61_v4, 0.0  ;;  %v132_v14 = vmul.f32 0.2, %v60_v3  ;;  %v133_v15 = vmul.f32 0.2, %v61_v4 }
   0x5   :  { %vm94_vm2 = vcmp.ge.f32.partialorder %v58_v5, 0.0  ;;  %vm95_vm3 = vcmp.ge.f32.partialorder %v59_v6, 0.0  ;;  %v130_v16 = vmul.f32 0.2, %v58_v5  ;;  %v131_v17 = vmul.f32 0.2, %v59_v6 }
   0x6   :  { %v168_v18 = vsel %vm96_vm0, %v60_v3, %v132_v14  ;;  %v169_v19 = vsel %vm97_vm1, %v61_v4, %v133_v15  ;;  %vm98_vm4 = vcmp.ge.f32.partialorder %v62_v10, 0.0  ;;  %vm99_vm5 = vcmp.ge.f32.partialorder %v63_v11, 0.0  ;;  %v1021_v40 = vld [vmem:[%s1551_s1 + $0x40] sm:$0xff]   ;;  %v34_v53 = vld [vmem:[%s1550_s0 + $0x30] ss:$40 sps:$4 sm:$0xff]   ;;  %v1023_v58 = vld [vmem:[%s1551_s1 + $0x48] sm:$0xff]  }
   0x7   :  { %v1083_v20 = vpack.c.bf16 %v169_v19, %v168_v18  ;;  %v166_v21 = vsel %vm94_vm2, %v58_v5, %v130_v16  ;;  %v167_v22 = vsel %vm95_vm3, %v59_v6, %v131_v17  ;;  %v134_v23 = vmul.f32 0.2, %v62_v10  ;;  %v1022_v45 = vld [vmem:[%s1551_s1] sm:$0xff]   ;;  %940 = vmatprep.subr.bf16.mxu0 %v1021_v40  ;;  %1004 = vmatprep.subr.bf16.mxu1 %v1021_v40  ;;  %v35_v62 = vld [vmem:[%s1550_s0 + $0x34] sm:$0x1]  ;;  %v1024_v63 = vld [vmem:[%s1551_s1 + $0x8] sm:$0xff]  }
   0x8   :  { %v1085_v24 = vpack.c.bf16 %v167_v22, %v166_v21  ;;  %v135_v25 = vmul.f32 0.2, %v63_v11  ;;  %vm100_vm6 = vcmp.ge.f32.partialorder %v64_v12, 0.0  ;;  %vm101_vm7 = vcmp.ge.f32.partialorder %v65_v13, 0.0  ;;  %941 = vmatpush3.bf16.msra.mxu0 %v1022_v45  ;;  %1012 = vmatpush3.bf16.msra.mxu1 %v1022_v45  ;;  %v1134_v4 = vld [vmem:[%s1550_s0 + $0x48] ss:$8 sps:$4 sm:$0xff]  }
   0x9   :  { %v228_v27 = vshrl.u32 %v1083_v20, 16  ;;  %v230_v28 = vshll.u32 %v1083_v20, 16  ;;  %v170_v29 = vsel %vm98_vm4, %v62_v10, %v134_v23  ;;  %v136_v30 = vmul.f32 0.2, %v64_v12  ;;  %942 = vmatprep.subr.bf16.mxu0 %v1023_v58  ;;  %v1025_v5 = vld [vmem:[%s1551_s1 + $0x50] sm:$0xff]   ;;  %1005 = vmatprep.subr.bf16.mxu1 %v1023_v58  ;;  %v1027_v14 = vld [vmem:[%s1551_s1 + $0x58] sm:$0xff]  }
   0xa   :  { %v221_v32 = vshrl.u32 %v1085_v24, 16  ;;  %v223_v33 = vshll.u32 %v1085_v24, 16  ;;  %v171_v34 = vsel %vm99_vm5, %v63_v11, %v135_v25  ;;  %v137_v35 = vmul.f32 0.2, %v65_v13  ;;  %v43_v9 = vld [vmem:[%s1550_s0 + $0x54] sm:$0x1] }
   0xb   :  { %v232_v36 = vrot.slane %v230_v28, 1  ;;  %v1098_v37 = vpack.c.bf16 %v171_v34, %v170_v29  ;;  %v172_v38 = vsel %vm100_vm6, %v64_v12, %v136_v30  ;;  %v66_v39 = vunpack.c.l.bf16 %v30_v26  ;;  %v1026_v10 = vld [vmem:[%s1551_s1 + $0x10] sm:$0xff]   ;;  %v45_v19 = vld [vmem:[%s1550_s0 + $0x5c] sm:$0x1] }
   0xc   :  { %v225_v41 = vrot.slane %v223_v33, 1  ;;  %v173_v42 = vsel %vm101_vm7, %v65_v13, %v137_v35  ;;  %v67_v43 = vunpack.c.l.bf16 %v31_v31  ;;  %v68_v44 = vunpack.c.h.bf16 %v30_v26  ;;  %943 = vmatpush3.bf16.msra.mxu0 %v1024_v63  ;;  %1013 = vmatpush3.bf16.msra.mxu1 %v1024_v63  ;;  %v1028_v25 = vld [vmem:[%s1551_s1 + $0x18] sm:$0xff]   ;;  %v41_v33 = vld [vmem:[%s1550_s0 + $0x4c] sm:$0x1] }
   0xd   :  { %v233_v46 = vor.u32 %v232_v36, %v228_v27  ;;  %v235_v47 = vshrl.u32 %v1098_v37, 16  ;;  %v237_v48 = vshll.u32 %v1098_v37, 16  ;;  %v1109_v49 = vpack.c.bf16 %v173_v42, %v172_v38  ;;  %944 = vmatprep.subr.bf16.mxu0 %v1025_v5  ;;  %1006 = vmatprep.subr.bf16.mxu1 %v1025_v5  ;;  %v1174_v38 = vld [vmem:[%s1550_s0 + $0x38] ss:$40 sps:$4 sm:$0xff]  }
   0xe   :  { %v226_v51 = vor.u32 %v225_v41, %v221_v32  ;;  %vm102_vm8 = vcmp.ge.f32.partialorder %v66_v39, 0.0  ;;  %vm103_vm9 = vcmp.ge.f32.partialorder %v67_v43, 0.0  ;;  %v138_v52 = vmul.f32 0.2, %v66_v39 }
   0xf   :  { %334 = vrot.lane.b32.xlu0 %v233_v46, %s1039_s13  ;;  %v239_v54 = vrot.slane %v237_v48, 1  ;;  %v242_v55 = vshrl.u32 %v1109_v49, 16  ;;  %v244_v56 = vshll.u32 %v1109_v49, 16  ;;  %v139_v57 = vmul.f32 0.2, %v67_v43 }
  0x10   :  { %332 = vrot.lane.b32.xlu1 %v226_v51, %s1039_s13  ;;  %v174_v59 = vsel %vm102_vm8, %v66_v39, %v138_v52  ;;  %v69_v60 = vunpack.c.l.bf16 %v33_v50  ;;  %vm104_vm10 = vcmp.ge.f32.partialorder %v68_v44, 0.0  ;;  %v140_v61 = vmul.f32 0.2, %v68_v44  ;;  %945 = vmatpush3.bf16.msra.mxu0 %v1026_v10  ;;  %v1029_v39 = vld [vmem:[%s1551_s1 + $0x60] sm:$0xff]  }
  0x11   :  { %v240_v0 = vor.u32 %v239_v54, %v235_v47  ;;  %v246_v1 = vrot.slane %v244_v56, 1  ;;  %v175_v2 = vsel %vm103_vm9, %v67_v43, %v139_v57  ;;  %v70_v3 = vunpack.c.l.bf16 %v34_v53  ;;  %1014 = vmatpush3.bf16.msra.mxu1 %v1026_v10  ;;  %946 = vmatprep.subr.bf16.mxu0 %v1027_v14  ;;  %v37_v47 = vld [vmem:[%s1550_s0 + $0x3c] sm:$0x1]  ;;  %v1030_v52 = vld [vmem:[%s1551_s1 + $0x20] sm:$0xff]   ;;  %v1031_v57 = vld [vmem:[%s1551_s1 + $0x68] sm:$0xff]  }
  0x12   :  { %v1139_v6 = vpack.c.bf16 %v175_v2, %v174_v59  ;;  %vm105_vm11 = vcmp.ge.f32.partialorder %v69_v60, 0.0  ;;  %v141_v7 = vmul.f32 0.2, %v69_v60  ;;  %v176_v8 = vsel %vm104_vm10, %v68_v44, %v140_v61  ;;  %1007 = vmatprep.subr.bf16.mxu1 %v1027_v14  ;;  %v49_v2 = vld [vmem:[%s1550_s0 + $0x6c] sm:$0x1] }
  0x13   :  { %336 = vrot.lane.b32.xlu0 %v240_v0, %s1039_s13  ;;  %v247_v11 = vor.u32 %v246_v1, %v242_v55  ;;  %v71_v12 = vunpack.c.l.bf16 %v35_v62  ;;  %vm106_vm12 = vcmp.ge.f32.partialorder %v70_v3, 0.0  ;;  %v142_v13 = vmul.f32 0.2, %v70_v3  ;;  %v47_v0 = vld [vmem:[%s1550_s0 + $0x64] sm:$0x1] }
  0x14   :  { %v249_v15 = vshrl.u32 %v1139_v6, 16  ;;  %v251_v16 = vshll.u32 %v1139_v6, 16  ;;  %v177_v17 = vsel %vm105_vm11, %v69_v60, %v141_v7  ;;  %v78_v18 = vunpack.c.h.bf16 %v1134_v4  ;;  %947 = vmatpush3.bf16.msra.mxu0 %v1028_v25  ;;  %v48_v1 = vld [vmem:[%s1550_s0 + $0x40] ss:$40 sps:$4 sm:$0xff]  }
  0x15   :  { %338 = vrot.lane.b32.xlu1 %v247_v11, %s1039_s13  ;;  %v1159_v21 = vpack.c.bf16 %v177_v17, %v176_v8  ;;  %vm107_vm13 = vcmp.ge.f32.partialorder %v71_v12, 0.0  ;;  %v143_v22 = vmul.f32 0.2, %v71_v12  ;;  %v178_v23 = vsel %vm106_vm12, %v70_v3, %v142_v13  ;;  %948 = vmatprep.subr.bf16.mxu0 %v1029_v39  ;;  %v1032_v8 = vld [vmem:[%s1551_s1 + $0x28] sm:$0xff]  }
  0x16   :  { %v253_v26 = vrot.slane %v251_v16, 1  ;;  %v79_v27 = vunpack.c.l.bf16 %v43_v9  ;;  %vm114_vm14 = vcmp.ge.f32.partialorder %v78_v18, 0.0  ;;  %v150_v28 = vmul.f32 0.2, %v78_v18  ;;  %1015 = vmatpush3.bf16.msra.mxu1 %v1028_v25  ;;  %v1034_v16 = vld [vmem:[%s1551_s1 + $0x30] sm:$0xff]  }
  0x17   :  { %v256_v29 = vshrl.u32 %v1159_v21, 16  ;;  %v258_v30 = vshll.u32 %v1159_v21, 16  ;;  %v179_v31 = vsel %vm107_vm13, %v71_v12, %v143_v22  ;;  %v80_v32 = vunpack.c.h.bf16 %v34_v53  ;;  %1008 = vmatprep.subr.bf16.mxu1 %v1029_v39  ;;  %v1033_v12 = vld [vmem:[%s1551_s1 + $0x70] sm:$0xff]  }
  0x18   :  { %v254_v34 = vor.u32 %v253_v26, %v249_v15  ;;  %v1169_v35 = vpack.c.bf16 %v179_v31, %v178_v23  ;;  %vm115_vm15 = vcmp.ge.f32.partialorder %v79_v27, 0.0  ;;  %v151_v36 = vmul.f32 0.2, %v79_v27  ;;  %949 = vmatpush3.bf16.msra.mxu0 %v1030_v52  ;;  %v1035_v23 = vld [vmem:[%s1551_s1 + $0x78] sm:$0xff]  }
  0x19   :  { %v260_v40 = vrot.slane %v258_v30, 1  ;;  %v186_v41 = vsel %vm114_vm14, %v78_v18, %v150_v28  ;;  %v81_v42 = vunpack.c.l.bf16 %v45_v19  ;;  %vm116_vm0 = vcmp.ge.f32.partialorder %v80_v32, 0.0  ;;  %950 = vmatprep.subr.bf16.mxu0 %v1031_v57 }
  0x1a   :  { %340 = vrot.lane.b32.xlu0 %v254_v34, %s1039_s13  ;;  %v263_v43 = vshrl.u32 %v1169_v35, 16  ;;  %v265_v44 = vshll.u32 %v1169_v35, 16  ;;  %v187_v45 = vsel %vm115_vm15, %v79_v27, %v151_v36  ;;  %v152_v46 = vmul.f32 0.2, %v80_v32  ;;  %1016 = vmatpush3.bf16.msra.mxu1 %v1030_v52 }
  0x1b   :  { %v261_v48 = vor.u32 %v260_v40, %v256_v29  ;;  %v1186_v50 = vpack.c.bf16 %v187_v45, %v186_v41  ;;  %vm117_vm1 = vcmp.ge.f32.partialorder %v81_v42, 0.0  ;;  %v153_v51 = vmul.f32 0.2, %v81_v42  ;;  %1009 = vmatprep.subr.bf16.mxu1 %v1031_v57  ;;  %v1036_v41 = vld [vmem:[%s1551_s1 + $0x38] sm:$0xff]  }
  0x1c   :  { %v267_v53 = vrot.slane %v265_v44, 1  ;;  %v188_v54 = vsel %vm116_vm0, %v80_v32, %v152_v46  ;;  %v76_v55 = vunpack.c.l.bf16 %v1134_v4  ;;  %v77_v56 = vunpack.c.l.bf16 %v41_v33  ;;  %951 = vmatpush3.bf16.msra.mxu0 %v1032_v8  ;;  %v39_v33 = vld [vmem:[%s1550_s0 + $0x44] sm:$0x1]  ;;  %v51_v46 = vld [vmem:[%s1550_s0 + $0x74] sm:$0x1] }
  0x1d   :  { %342 = vrot.lane.b32.xlu1 %v261_v48, %s1039_s13  ;;  %v284_v58 = vshrl.u32 %v1186_v50, 16  ;;  %v286_v59 = vshll.u32 %v1186_v50, 16  ;;  %v189_v60 = vsel %vm117_vm1, %v81_v42, %v153_v51  ;;  %v72_v61 = vunpack.c.l.bf16 %v1174_v38  ;;  %952 = vmatprep.subr.bf16.mxu0 %v1033_v12 }
  0x1e   :  { %v268_v62 = vor.u32 %v267_v53, %v263_v43  ;;  %v1200_v63 = vpack.c.bf16 %v189_v60, %v188_v54  ;;  %vm112_vm2 = vcmp.ge.f32.partialorder %v76_v55, 0.0  ;;  %vm113_vm3 = vcmp.ge.f32.partialorder %v77_v56, 0.0  ;;  %1017 = vmatpush3.bf16.msra.mxu1 %v1032_v8 }
  0x1f   :  { %v288_v3 = vrot.slane %v286_v59, 1  ;;  %v148_v4 = vmul.f32 0.2, %v76_v55  ;;  %v149_v5 = vmul.f32 0.2, %v77_v56  ;;  %v73_v7 = vunpack.c.l.bf16 %v37_v47  ;;  %1010 = vmatprep.subr.bf16.mxu1 %v1033_v12 }
  0x20   :  { %344 = vrot.lane.b32.xlu0 %v268_v62, %s1039_s13  ;;  %v291_v9 = vshrl.u32 %v1200_v63, 16  ;;  %v293_v10 = vshll.u32 %v1200_v63, 16  ;;  %vm108_vm4 = vcmp.ge.f32.partialorder %v72_v61, 0.0  ;;  %v144_v11 = vmul.f32 0.2, %v72_v61  ;;  %953 = vmatpush3.bf16.msra.mxu0 %v1034_v16 }
  0x21   :  { %v289_v13 = vor.u32 %v288_v3, %v284_v58  ;;  %v184_v14 = vsel %vm112_vm2, %v76_v55, %v148_v4  ;;  %v185_v15 = vsel %vm113_vm3, %v77_v56, %v149_v5  ;;  %vm109_vm5 = vcmp.ge.f32.partialorder %v73_v7, 0.0  ;;  %954 = vmatprep.subr.bf16.mxu0 %v1035_v23  ;;  %v53_v4 = vld [vmem:[%s1550_s0 + $0x7c] sm:$0x1] }
  0x22   :  { %v295_v17 = vrot.slane %v293_v10, 1  ;;  %v1225_v18 = vpack.c.bf16 %v185_v15, %v184_v14  ;;  %v145_v19 = vmul.f32 0.2, %v73_v7  ;;  %v180_v22 = vsel %vm108_vm4, %v72_v61, %v144_v11  ;;  %1018 = vmatpush3.bf16.msra.mxu1 %v1034_v16 }
  0x23   :  { %350 = vrot.lane.b32.xlu1 %v289_v13, %s1039_s13  ;;  %v82_v25 = vunpack.c.h.bf16 %v1174_v38  ;;  %v83_v26 = vunpack.c.l.bf16 %v47_v0  ;;  %v84_v27 = vunpack.c.h.bf16 %v48_v1  ;;  %v85_v28 = vunpack.c.l.bf16 %v49_v2  ;;  %v50_v38 = vld [vmem:[%s1550_s0 + $0x70] ss:$8 sps:$4 sm:$0xff]   ;;  %1011 = vmatprep.subr.bf16.mxu1 %v1035_v23  ;;  %v55_v23 = vld [vmem:[%s1550_s0 + $0x84] sm:$0x1] }
  0x24   :  { %v296_v29 = vor.u32 %v295_v17, %v291_v9  ;;  %v277_v30 = vshrl.u32 %v1225_v18, 16  ;;  %v279_v31 = vshll.u32 %v1225_v18, 16  ;;  %v181_v32 = vsel %vm109_vm5, %v73_v7, %v145_v19  ;;  %955 = vmatpush3.bf16.msra.mxu0 %v1036_v41  ;;  %v54_v9 = vld [vmem:[%s1550_s0 + $0x80] ss:$8 sps:$4 sm:$0xff]  }
  0x25   :  { %v1238_v34 = vpack.c.bf16 %v181_v32, %v180_v22  ;;  %vm118_vm6 = vcmp.ge.f32.partialorder %v82_v25, 0.0  ;;  %vm119_vm7 = vcmp.ge.f32.partialorder %v83_v26, 0.0  ;;  %v154_v36 = vmul.f32 0.2, %v82_v25 }
  0x26   :  { %352 = vrot.lane.b32.xlu0 %v296_v29, %s1039_s13  ;;  %v281_v39 = vrot.slane %v279_v31, 1  ;;  %v155_v40 = vmul.f32 0.2, %v83_v26  ;;  %vm120_vm8 = vcmp.ge.f32.partialorder %v84_v27, 0.0  ;;  %vm121_vm9 = vcmp.ge.f32.partialorder %v85_v28, 0.0  ;;  %1019 = vmatpush3.bf16.msra.mxu1 %v1036_v41 }
  0x27   :  { %v270_v42 = vshrl.u32 %v1238_v34, 16  ;;  %v272_v43 = vshll.u32 %v1238_v34, 16  ;;  %v190_v44 = vsel %vm118_vm6, %v82_v25, %v154_v36  ;;  %v156_v45 = vmul.f32 0.2, %v84_v27 }
  0x28   :  { %v282_v47 = vor.u32 %v281_v39, %v277_v30  ;;  %v191_v48 = vsel %vm119_vm7, %v83_v26, %v155_v40  ;;  %v157_v51 = vmul.f32 0.2, %v85_v28  ;;  %v74_v52 = vunpack.c.l.bf16 %v48_v1  ;;  %v57_v39 = vld [vmem:[%s1550_s0 + $0x8c] sm:$0x1] }
  0x29   :  { %v274_v53 = vrot.slane %v272_v43, 1  ;;  %v1253_v54 = vpack.c.bf16 %v191_v48, %v190_v44  ;;  %v192_v55 = vsel %vm120_vm8, %v84_v27, %v156_v45  ;;  %v75_v56 = vunpack.c.l.bf16 %v39_v33 }
  0x2a   :  { %348 = vrot.lane.b32.xlu1 %v282_v47, %s1039_s13  ;;  %v193_v57 = vsel %vm121_vm9, %v85_v28, %v157_v51  ;;  %vm110_vm10 = vcmp.ge.f32.partialorder %v74_v52, 0.0  ;;  %v146_v58 = vmul.f32 0.2, %v74_v52  ;;  %v86_v59 = vunpack.c.l.bf16 %v50_v38 }
  0x2b   :  { %v275_v60 = vor.u32 %v274_v53, %v270_v42  ;;  %v298_v61 = vshrl.u32 %v1253_v54, 16  ;;  %v300_v62 = vshll.u32 %v1253_v54, 16  ;;  %v1260_v0 = vpack.c.bf16 %v193_v57, %v192_v55 }
  0x2c   :  { %vm111_vm11 = vcmp.ge.f32.partialorder %v75_v56, 0.0  ;;  %v147_v1 = vmul.f32 0.2, %v75_v56  ;;  %v182_v2 = vsel %vm110_vm10, %v74_v52, %v146_v58  ;;  %v87_v3 = vunpack.c.l.bf16 %v51_v46 }
  0x2d   :  { %346 = vrot.lane.b32.xlu0 %v275_v60, %s1039_s13  ;;  %v302_v5 = vrot.slane %v300_v62, 1  ;;  %v305_v7 = vshrl.u32 %v1260_v0, 16  ;;  %v307_v8 = vshll.u32 %v1260_v0, 16  ;;  %vm122_vm12 = vcmp.ge.f32.partialorder %v86_v59, 0.0 }
  0x2e   :  { %v183_v10 = vsel %vm111_vm11, %v75_v56, %v147_v1  ;;  %vm123_vm13 = vcmp.ge.f32.partialorder %v87_v3, 0.0  ;;  %v158_v11 = vmul.f32 0.2, %v86_v59  ;;  %v159_v12 = vmul.f32 0.2, %v87_v3 }
  0x2f   :  { %v303_v13 = vor.u32 %v302_v5, %v298_v61  ;;  %v309_v14 = vrot.slane %v307_v8, 1  ;;  %v1271_v15 = vpack.c.bf16 %v183_v10, %v182_v2  ;;  %v88_v16 = vunpack.c.h.bf16 %v50_v38 }
  0x30   :  { %v194_v17 = vsel %vm122_vm12, %v86_v59, %v158_v11  ;;  %v195_v19 = vsel %vm123_vm13, %v87_v3, %v159_v12  ;;  %v89_v22 = vunpack.c.l.bf16 %v53_v4  ;;  %v90_v25 = vunpack.c.l.bf16 %v54_v9 }
  0x31   :  { %354 = vrot.lane.b32.xlu1 %v303_v13, %s1039_s13  ;;  %v310_v26 = vor.u32 %v309_v14, %v305_v7  ;;  %v365_v27 = vshrl.u32 %v1271_v15, 16  ;;  %v367_v28 = vshll.u32 %v1271_v15, 16  ;;  %v1279_v29 = vpack.c.bf16 %v195_v19, %v194_v17 }
  0x32   :  { %vm124_vm14 = vcmp.ge.f32.partialorder %v88_v16, 0.0  ;;  %vm125_vm15 = vcmp.ge.f32.partialorder %v89_v22, 0.0  ;;  %v160_v30 = vmul.f32 0.2, %v88_v16  ;;  %v161_v31 = vmul.f32 0.2, %v89_v22 }
  0x33   :  { %356 = vrot.lane.b32.xlu0 %v310_v26, %s1039_s13  ;;  %v369_v32 = vrot.slane %v367_v28, 1  ;;  %v312_v33 = vshrl.u32 %v1279_v29, 16  ;;  %v314_v36 = vshll.u32 %v1279_v29, 16  ;;  %v91_v38 = vunpack.c.l.bf16 %v55_v23 }
  0x34   :  { %v196_v40 = vsel %vm124_vm14, %v88_v16, %v160_v30  ;;  %v197_v41 = vsel %vm125_vm15, %v89_v22, %v161_v31  ;;  %vm126_vm0 = vcmp.ge.f32.partialorder %v90_v25, 0.0  ;;  %v162_v42 = vmul.f32 0.2, %v90_v25 }
  0x35   :  { %v370_v43 = vor.u32 %v369_v32, %v365_v27  ;;  %v316_v44 = vrot.slane %v314_v36, 1  ;;  %v1287_v45 = vpack.c.bf16 %v197_v41, %v196_v40  ;;  %vm127_vm1 = vcmp.ge.f32.partialorder %v91_v38, 0.0 }
  0x36   :  { %v163_v46 = vmul.f32 0.2, %v91_v38  ;;  %v198_v47 = vsel %vm126_vm0, %v90_v25, %v162_v42  ;;  %v92_v48 = vunpack.c.h.bf16 %v54_v9  ;;  %v93_v51 = vunpack.c.l.bf16 %v57_v39 }
  0x37   :  { %378 = vrot.lane.b32.xlu1 %v370_v43, %s1039_s13  ;;  %v317_v52 = vor.u32 %v316_v44, %v312_v33  ;;  %v319_v53 = vshrl.u32 %v1287_v45, 16  ;;  %v321_v55 = vshll.u32 %v1287_v45, 16  ;;  %vm382_vm4 = vcmask 523264  }
  0x38   :  { %v199_v56 = vsel %vm127_vm1, %v91_v38, %v163_v46  ;;  %vm128_vm2 = vcmp.ge.f32.partialorder %v92_v48, 0.0  ;;  %vm129_vm3 = vcmp.ge.f32.partialorder %v93_v51, 0.0  ;;  %v164_v57 = vmul.f32 0.2, %v92_v48 }
  0x39   :  { %358 = vrot.lane.b32.xlu0 %v317_v52, %s1039_s13  ;;  %v323_v58 = vrot.slane %v321_v55, 1  ;;  %v1293_v59 = vpack.c.bf16 %v199_v56, %v198_v47  ;;  %v165_v60 = vmul.f32 0.2, %v93_v51  ;;  %vm712_vm5 = vcmask 261120  }
  0x3a   :  { %v200_v61 = vsel %vm128_vm2, %v92_v48, %v164_v57 }
  0x3b   :  { %v324_v62 = vor.u32 %v323_v58, %v319_v53  ;;  %v326_v1 = vshrl.u32 %v1293_v59, 16  ;;  %v328_v2 = vshll.u32 %v1293_v59, 16  ;;  %v201_v3 = vsel %vm129_vm3, %v93_v51, %v165_v60 }
  0x3c   :  { %v1297_v4 = vpack.c.bf16 %v201_v3, %v200_v61 }
  0x3d   :  { %360 = vrot.lane.b32.xlu1 %v324_v62, %s1039_s13  ;;  %v330_v5 = vrot.slane %v328_v2, 1 }
  0x3e   :  { %v372_v7 = vshrl.u32 %v1297_v4, 16  ;;  %v374_v8 = vshll.u32 %v1297_v4, 16 }
  0x3f   :  { %v331_v9 = vor.u32 %v330_v5, %v326_v1 }
  0x40   :  { %v376_v10 = vrot.slane %v374_v8, 1 }
  0x41   :  { %362 = vrot.lane.b32.xlu0 %v331_v9, %s1039_s13 }
  0x42   :  { %v377_v11 = vor.u32 %v376_v10, %v372_v7 }
  0x44   :  { %380 = vrot.lane.b32.xlu1 %v377_v11, %s1039_s13 }
  0x81   :  { %v335_v12 = vpop.permute.xlu0 %334 }
  0x82   :  { %v333_v13 = vpop.permute.xlu1 %332  ;;  %v386_v17 = vsel %vm382_vm4, %v1083_v20, %v335_v12 }
  0x83   :  { %v384_v14 = vsel %vm382_vm4, %v1085_v24, %v333_v13 }
  0x84   :  { %v906_v23 = vcombine.low %v384_v14, %v386_v17 }
  0x85   :  { %v337_v16 = vpop.permute.xlu0 %336 }
  0x86   :  { %v388_v19 = vsel %vm382_vm4, %v1098_v37, %v337_v16 }
  0x87   :  { %v907_v22 = vcombine.low %v386_v17, %v388_v19  ;;  %v339_v25 = vpop.permute.xlu1 %338 }
  0x88   :  { %v390_v27 = vsel %vm382_vm4, %v1109_v49, %v339_v25 }
  0x89   :  { %647 = vmatprep.mubr.bf16.mxu0 %v907_v22  ;;  %v908_v30 = vcombine.low %v388_v19, %v390_v27 }
  0x8a   :  { %648 = vmatmul.mubr.bf16.vlgmr.msra.gmra.mrb[0].mxu0 %v906_v23 }
  0x8c   :  { %v341_v26 = vpop.permute.xlu0 %340 }
  0x8d   :  { %v392_v28 = vsel %vm382_vm4, %v1139_v6, %v341_v26 }
  0x8e   :  { %v909_v24 = vcombine.low %v390_v27, %v392_v28 }
  0x8f   :  { %v343_v31 = vpop.permute.xlu1 %342 }
  0x90   :  { %655 = vmatprep.mubr.bf16.mxu0 %v909_v24  ;;  %v394_v20 = vsel %vm382_vm4, %v1159_v21, %v343_v31 }
  0x91   :  { %v910_v38 = vcombine.low %v392_v28, %v394_v20 }
  0x92   :  { %v345_v37 = vpop.permute.xlu0 %344  ;;  %656 = vmatmul.mubr.bf16.gmra.mrb[4].mxu0 %v908_v30 }
  0x93   :  { %v396_v32 = vsel %vm382_vm4, %v1169_v35, %v345_v37 }
  0x94   :  { %v911_v33 = vcombine.low %v394_v20, %v396_v32 }
  0x95   :  { %v351_v36 = vpop.permute.xlu1 %350 }
  0x96   :  { %663 = vmatprep.mubr.bf16.mxu0 %v911_v33  ;;  %v402_v49 = vsel %vm382_vm4, %v1186_v50, %v351_v36 }
  0x98   :  { %v353_v6 = vpop.permute.xlu0 %352 }
  0x99   :  { %v404_v39 = vsel %vm382_vm4, %v1200_v63, %v353_v6 }
  0x9a   :  { %v915_v40 = vcombine.low %v402_v49, %v404_v39  ;;  %664 = vmatmul.mubr.bf16.gmra.mrb[8].mxu0 %v910_v38 }
  0x9c   :  { %v349_v41 = vpop.permute.xlu1 %348  ;;  %679 = vmatprep.mubr.bf16.mxu1 %v915_v40 }
  0x9d   :  { %v400_v21 = vsel %vm382_vm4, %v1225_v18, %v349_v41 }
  0x9e   :  { %v914_v42 = vcombine.low %v400_v21, %v402_v49 }
  0x9f   :  { %v347_v35 = vpop.permute.xlu0 %346 }
  0xa0   :  { %680 = vmatmul.mubr.bf16.vlgmr.msra.gmra.mrb[0].mxu1 %v914_v42  ;;  %v398_v48 = vsel %vm382_vm4, %v1238_v34, %v347_v35 }
  0xa1   :  { %v912_v53 = vcombine.low %v396_v32, %v398_v48 }
  0xa3   :  { %v355_v43 = vpop.permute.xlu1 %354 }
  0xa4   :  { %v406_v44 = vsel %vm382_vm4, %v1253_v54, %v355_v43 }
  0xa5   :  { %v357_v50 = vpop.permute.xlu0 %356  ;;  %v916_v63 = vcombine.low %v404_v39, %v406_v44 }
  0xa6   :  { %v408_v46 = vsel %vm382_vm4, %v1260_v0, %v357_v50 }
  0xa7   :  { %v917_v47 = vcombine.low %v406_v44, %v408_v46 }
  0xa9   :  { %v379_v51 = vpop.permute.xlu1 %378  ;;  %687 = vmatprep.mubr.bf16.mxu1 %v917_v47 }
  0xaa   :  { %v416_v18 = vsel %vm382_vm4, %v1271_v15, %v379_v51  ;;  %688 = vmatmul.mubr.bf16.gmra.mrb[4].mxu1 %v916_v63 }
  0xab   :  { %v913_v52 = vcombine.low %v398_v48, %v416_v18  ;;  %v359_v55 = vpop.permute.xlu0 %358 }
  0xac   :  { %v410_v54 = vsel %vm382_vm4, %v1279_v29, %v359_v55 }
  0xad   :  { %671 = vmatprep.mubr.bf16.mxu0 %v913_v52  ;;  %v918_v34 = vcombine.low %v408_v46, %v410_v54 }
  0xae   :  { %672 = vmatmul.mubr.bf16.gmra.mrb[12].mxu0 %v912_v53 }
  0xaf   :  { %v361_v0 = vpop.permute.xlu1 %360 }
  0xb0   :  { %v412_v56 = vsel %vm382_vm4, %v1287_v45, %v361_v0 }
  0xb1   :  { %v919_v57 = vcombine.low %v410_v54, %v412_v56 }
  0xb3   :  { %695 = vmatprep.mubr.bf16.mxu1 %v919_v57  ;;  %v363_v58 = vpop.permute.xlu0 %362 }
  0xb4   :  { %696 = vmatmul.mubr.bf16.gmra.mrb[8].mxu1 %v918_v34  ;;  %v414_v15 = vsel %vm382_vm4, %v1293_v59, %v363_v58 }
  0xb5   :  { %v920_v1 = vcombine.low %v412_v56, %v414_v15 }
  0xb6   :  { %v381_v60 = vpop.permute.xlu1 %380 }
  0xb7   :  { %v418_v61 = vsel %vm382_vm4, %v1297_v4, %v381_v60 }
  0xb8   :  { %v921_v62 = vcombine.low %v414_v15, %v418_v61 }
  0xba   :  { %703 = vmatprep.mubr.bf16.mxu1 %v921_v62 }
  0xbc   :  { %704 = vmatmul.mubr.bf16.gmra.mrb[12].mxu1 %v920_v1 }
 0x15d   :  { %v956_v29 = vpop.f32.mrb[0].mxu0 }
 0x15e   :  { %v957_v2 = vpop.f32.mrb[1].mxu0 }
 0x15f   :  { %v1340_v3 = vadd.f32 %v957_v2, %v956_v29  ;;  %v959_v45 = vpop.f32.mrb[2].mxu0 }
 0x160   :  { %v960_v5 = vpop.f32.mrb[3].mxu0 }
 0x161   :  { %v1342_v7 = vadd.f32 %v960_v5, %v959_v45  ;;  %v713_v8 = vsel %vm712_vm5, %v1340_v3, 0.0 }
 0x163   :  { %v714_v59 = vsel %vm712_vm5, %v1342_v7, 0.0 }
 0x164   :  { %v715_v4 = vadd.f32 %v714_v59, %v713_v8 }
 0x165   :  { %v962_v9 = vpop.f32.mrb[4].mxu0 }
 0x166   :  { %v963_v10 = vpop.f32.mrb[5].mxu0 }
 0x167   :  { %v1348_v11 = vadd.f32 %v963_v10, %v962_v9  ;;  %v965_v12 = vpop.f32.mrb[6].mxu0 }
 0x168   :  { %v966_v13 = vpop.f32.mrb[7].mxu0 }
 0x169   :  { %v716_v14 = vsel %vm712_vm5, %v1348_v11, 0.0  ;;  %v1352_v16 = vadd.f32 %v966_v13, %v965_v12 }
 0x16a   :  { %v717_v17 = vadd.f32 %v716_v14, %v715_v4 }
 0x16b   :  { %v718_v19 = vsel %vm712_vm5, %v1352_v16, 0.0 }
 0x16c   :  { %v719_v22 = vadd.f32 %v718_v19, %v717_v17 }
 0x16d   :  { %v968_v23 = vpop.f32.mrb[8].mxu0 }
 0x16e   :  { %v969_v25 = vpop.f32.mrb[9].mxu0 }
 0x16f   :  { %v1356_v26 = vadd.f32 %v969_v25, %v968_v23  ;;  %v971_v27 = vpop.f32.mrb[10].mxu0 }
 0x170   :  { %v972_v28 = vpop.f32.mrb[11].mxu0 }
 0x171   :  { %v720_v24 = vsel %vm712_vm5, %v1356_v26, 0.0  ;;  %v1360_v30 = vadd.f32 %v972_v28, %v971_v27 }
 0x172   :  { %v721_v31 = vadd.f32 %v720_v24, %v719_v22 }
 0x173   :  { %v980_v20 = vpop.f32.mrb[0].mxu1  ;;  %v722_v37 = vsel %vm712_vm5, %v1360_v30, 0.0 }
 0x174   :  { %v981_v32 = vpop.f32.mrb[1].mxu1  ;;  %v723_v33 = vadd.f32 %v722_v37, %v721_v31 }
 0x175   :  { %v1364_v36 = vadd.f32 %v981_v32, %v980_v20  ;;  %v983_v49 = vpop.f32.mrb[2].mxu1 }
 0x176   :  { %v984_v38 = vpop.f32.mrb[3].mxu1 }
 0x177   :  { %v985_v6 = vadd.f32 %v984_v38, %v983_v49  ;;  %v728_v54 = vsel %vm712_vm5, %v1364_v36, 0.0 }
 0x179   :  { %v730_v58 = vsel %vm712_vm5, %v985_v6, 0.0 }
 0x17d   :  { %v986_v39 = vpop.f32.mrb[4].mxu1 }
 0x17e   :  { %v987_v40 = vpop.f32.mrb[5].mxu1 }
 0x17f   :  { %v988_v41 = vadd.f32 %v987_v40, %v986_v39  ;;  %v989_v21 = vpop.f32.mrb[6].mxu1 }
 0x180   :  { %v990_v42 = vpop.f32.mrb[7].mxu1 }
 0x181   :  { %v991_v35 = vadd.f32 %v990_v42, %v989_v21  ;;  %v974_v43 = vpop.f32.mrb[12].mxu0  ;;  %v732_v61 = vsel %vm712_vm5, %v988_v41, 0.0 }
 0x182   :  { %v975_v44 = vpop.f32.mrb[13].mxu0 }
 0x183   :  { %v976_v50 = vadd.f32 %v975_v44, %v974_v43  ;;  %v977_v46 = vpop.f32.mrb[14].mxu0  ;;  %v734_v1 = vsel %vm712_vm5, %v991_v35, 0.0 }
 0x184   :  { %v978_v47 = vpop.f32.mrb[15].mxu0 }
 0x185   :  { %v724_v63 = vsel %vm712_vm5, %v976_v50, 0.0  ;;  %v979_v48 = vadd.f32 %v978_v47, %v977_v46 }
 0x186   :  { %v725_v51 = vadd.f32 %v724_v63, %v723_v33 }
 0x187   :  { %v726_v18 = vsel %vm712_vm5, %v979_v48, 0.0  ;;  %v992_v52 = vpop.f32.mrb[8].mxu1 }
 0x188   :  { %v727_v53 = vadd.f32 %v726_v18, %v725_v51  ;;  %v993_v55 = vpop.f32.mrb[9].mxu1 }
 0x189   :  { %v994_v0 = vadd.f32 %v993_v55, %v992_v52  ;;  %v995_v56 = vpop.f32.mrb[10].mxu1 }
 0x18a   :  { %v729_v57 = vadd.f32 %v728_v54, %v727_v53  ;;  %v996_v34 = vpop.f32.mrb[11].mxu1 }
 0x18b   :  { %v997_v60 = vadd.f32 %v996_v34, %v995_v56  ;;  %v736_v5 = vsel %vm712_vm5, %v994_v0, 0.0 }
 0x18c   :  { %v731_v15 = vadd.f32 %v730_v58, %v729_v57 }
 0x18d   :  { %v738_v10 = vsel %vm712_vm5, %v997_v60, 0.0 }
 0x18e   :  { %v733_v62 = vadd.f32 %v732_v61, %v731_v15 }
 0x18f   :  { %v998_v29 = vpop.f32.mrb[12].mxu1 }
 0x190   :  { %v735_v2 = vadd.f32 %v734_v1, %v733_v62  ;;  %v999_v45 = vpop.f32.mrb[13].mxu1 }
 0x191   :  { %v1000_v8 = vadd.f32 %v999_v45, %v998_v29  ;;  %v1001_v59 = vpop.f32.mrb[14].mxu1 }
 0x192   :  { %v737_v4 = vadd.f32 %v736_v5, %v735_v2  ;;  %v1002_v9 = vpop.f32.mrb[15].mxu1 }
 0x193   :  { %v1003_v12 = vadd.f32 %v1002_v9, %v1001_v59  ;;  %v740_v14 = vsel %vm712_vm5, %v1000_v8, 0.0 }
 0x194   :  { %v739_v13 = vadd.f32 %v738_v10, %v737_v4 }
 0x195   :  { %v742_v19 = vsel %vm712_vm5, %v1003_v12, 0.0 }
 0x196   :  { %v741_v17 = vadd.f32 %v740_v14, %v739_v13 }
 0x198   :  { %v743_v22 = vadd.f32 %v742_v19, %v741_v17 }
 0x19a   :  { %v744_v23 = vrot.slane %v743_v22, 4 }
 0x19c   :  { %v745_v25 = vadd.f32 %v744_v23, %v743_v22 }
 0x19e   :  { %v746_v27 = vrot.slane %v745_v25, 2 }
 0x1a0   :  { %v747_v28 = vadd.f32 %v746_v27, %v745_v25 }
 0x1a2   :  { %v748_v24 = vrot.slane %v747_v28, 1 }
 0x1a4   :  { %v749_v31 = vadd.f32 %v748_v24, %v747_v28 }
 0x1a6   :  { %v751_v20 = vmul.f32 0.0078125, %v749_v31 }
 0x1a8   :  { %v1378_v37 = vsub.f32 %v1340_v3, %v751_v20  ;;  %v1381_v32 = vsub.f32 %v1342_v7, %v751_v20  ;;  %v1384_v33 = vsub.f32 %v1348_v11, %v751_v20  ;;  %v1387_v49 = vsub.f32 %v1352_v16, %v751_v20 }
 0x1a9   :  { %v1390_v38 = vsub.f32 %v1356_v26, %v751_v20  ;;  %v1393_v39 = vsub.f32 %v1360_v30, %v751_v20  ;;  %v1395_v40 = vsub.f32 %v976_v50, %v751_v20  ;;  %v1397_v21 = vsub.f32 %v979_v48, %v751_v20 }
 0x1aa   :  { %v1400_v3 = vsub.f32 %v1364_v36, %v751_v20  ;;  %v1402_v7 = vsub.f32 %v985_v6, %v751_v20  ;;  %v1404_v11 = vsub.f32 %v988_v41, %v751_v20  ;;  %v1406_v42 = vsub.f32 %v991_v35, %v751_v20 }
 0x1ab   :  { %v1408_v16 = vsub.f32 %v994_v0, %v751_v20  ;;  %v1410_v26 = vsub.f32 %v997_v60, %v751_v20  ;;  %v1412_v43 = vsub.f32 %v1000_v8, %v751_v20  ;;  %v1414_v30 = vsub.f32 %v1003_v12, %v751_v20 }
 0x1ac   :  { %v768_v44 = vmul.f32 %v1378_v37, %v1378_v37  ;;  %v769_v36 = vmul.f32 %v1381_v32, %v1381_v32  ;;  %v770_v6 = vmul.f32 %v1384_v33, %v1384_v33  ;;  %v771_v41 = vmul.f32 %v1387_v49, %v1387_v49 }
 0x1ad   :  { %v772_v47 = vmul.f32 %v1390_v38, %v1390_v38  ;;  %v773_v51 = vmul.f32 %v1393_v39, %v1393_v39  ;;  %v774_v53 = vmul.f32 %v1395_v40, %v1395_v40  ;;  %v775_v0 = vmul.f32 %v1397_v21, %v1397_v21 }
 0x1ae   :  { %v784_v35 = vsel %vm712_vm5, %v768_v44, 0.0  ;;  %v785_v50 = vsel %vm712_vm5, %v769_v36, 0.0  ;;  %v787_v63 = vsel %vm712_vm5, %v770_v6, 0.0  ;;  %v789_v18 = vsel %vm712_vm5, %v771_v41, 0.0 }
 0x1af   :  { %v786_v46 = vadd.f32 %v785_v50, %v784_v35  ;;  %v791_v55 = vsel %vm712_vm5, %v772_v47, 0.0  ;;  %v793_v56 = vsel %vm712_vm5, %v773_v51, 0.0  ;;  %v776_v34 = vmul.f32 %v1400_v3, %v1400_v3 }
 0x1b0   :  { %v795_v58 = vsel %vm712_vm5, %v774_v53, 0.0  ;;  %v777_v15 = vmul.f32 %v1402_v7, %v1402_v7  ;;  %v797_v61 = vsel %vm712_vm5, %v775_v0, 0.0  ;;  %v778_v1 = vmul.f32 %v1404_v11, %v1404_v11  ;;  %v938_v0 = vld [vmem:[%s1552_s2] ss:$0 sm:$0xff] }
 0x1b1   :  { %v788_v48 = vadd.f32 %v787_v63, %v786_v46  ;;  %v799_v29 = vsel %vm712_vm5, %v776_v34, 0.0  ;;  %v779_v45 = vmul.f32 %v1406_v42, %v1406_v42  ;;  %v780_v59 = vmul.f32 %v1408_v16, %v1408_v16 }
 0x1b2   :  { %v801_v5 = vsel %vm712_vm5, %v777_v15, 0.0  ;;  %v803_v4 = vsel %vm712_vm5, %v778_v1, 0.0  ;;  %v781_v10 = vmul.f32 %v1410_v26, %v1410_v26  ;;  %v782_v14 = vmul.f32 %v1412_v43, %v1412_v43 }
 0x1b3   :  { %v790_v52 = vadd.f32 %v789_v18, %v788_v48  ;;  %v805_v12 = vsel %vm712_vm5, %v779_v45, 0.0  ;;  %v807_v17 = vsel %vm712_vm5, %v780_v59, 0.0  ;;  %v783_v22 = vmul.f32 %v1414_v30, %v1414_v30 }
 0x1b4   :  { %v809_v23 = vsel %vm712_vm5, %v781_v10, 0.0  ;;  %v811_v27 = vsel %vm712_vm5, %v782_v14, 0.0 }
 0x1b5   :  { %v792_v54 = vadd.f32 %v791_v55, %v790_v52  ;;  %v813_v24 = vsel %vm712_vm5, %v783_v22, 0.0 }
 0x1b7   :  { %v794_v57 = vadd.f32 %v793_v56, %v792_v54 }
 0x1b9   :  { %v796_v60 = vadd.f32 %v795_v58, %v794_v57 }
 0x1bb   :  { %v798_v62 = vadd.f32 %v797_v61, %v796_v60 }
 0x1bd   :  { %v800_v2 = vadd.f32 %v799_v29, %v798_v62 }
 0x1bf   :  { %v802_v8 = vadd.f32 %v801_v5, %v800_v2 }
 0x1c1   :  { %v804_v9 = vadd.f32 %v803_v4, %v802_v8 }
 0x1c3   :  { %v806_v13 = vadd.f32 %v805_v12, %v804_v9 }
 0x1c5   :  { %v808_v19 = vadd.f32 %v807_v17, %v806_v13 }
 0x1c7   :  { %v810_v25 = vadd.f32 %v809_v23, %v808_v19 }
 0x1c9   :  { %v812_v28 = vadd.f32 %v811_v27, %v810_v25 }
 0x1cb   :  { %v814_v31 = vadd.f32 %v813_v24, %v812_v28 }
 0x1cd   :  { %v815_v20 = vrot.slane %v814_v31, 4 }
 0x1cf   :  { %v816_v44 = vadd.f32 %v815_v20, %v814_v31 }
 0x1d1   :  { %v817_v36 = vrot.slane %v816_v44, 2 }
 0x1d3   :  { %v818_v6 = vadd.f32 %v817_v36, %v816_v44 }
 0x1d5   :  { %v819_v41 = vrot.slane %v818_v6, 1 }
 0x1d7   :  { %v820_v35 = vadd.f32 %v819_v41, %v818_v6 }
 0x1d9   :  { %v821_v50 = vmul.f32 0.0078125, %v820_v35 }
 0x1db   :  { %v822_v46 = vadd.f32 1e-05, %v821_v50 }
 0x1dd   :  { %1037 = vrsqrt.f32 %v822_v46 }
 0x1e7   :  { %v1038_v47 = vpop.eup %1037 }
 0x1e8   :  { %v824_v63 = vmul.f32 %v1038_v47, %v1378_v37  ;;  %v825_v48 = vmul.f32 %v1038_v47, %v1381_v32  ;;  %v826_v51 = vmul.f32 %v1038_v47, %v1384_v33  ;;  %v827_v18 = vmul.f32 %v1038_v47, %v1387_v49 }
 0x1e9   :  { %v828_v52 = vmul.f32 %v1038_v47, %v1390_v38  ;;  %v829_v53 = vmul.f32 %v1038_v47, %v1393_v39  ;;  %v830_v55 = vmul.f32 %v1038_v47, %v1395_v40  ;;  %v831_v54 = vmul.f32 %v1038_v47, %v1397_v21 }
 0x1ea   :  { %v832_v37 = vmul.f32 %v1038_v47, %v1400_v3  ;;  %v833_v32 = vmul.f32 %v1038_v47, %v1402_v7  ;;  %v834_v33 = vmul.f32 %v1038_v47, %v1404_v11  ;;  %v835_v49 = vmul.f32 %v1038_v47, %v1406_v42  ;;  %v939_v11 = vld [vmem:[%s1553_s3] ss:$0 sm:$0xff] }
 0x1eb   :  { %v836_v38 = vmul.f32 %v1038_v47, %v1408_v16  ;;  %v837_v39 = vmul.f32 %v1038_v47, %v1410_v26  ;;  %v838_v40 = vmul.f32 %v1038_v47, %v1412_v43  ;;  %v839_v21 = vmul.f32 %v1038_v47, %v1414_v30 }
 0x1ec   :  { %v847_v56 = vmul.f32 %v938_v0, %v824_v63  ;;  %v848_v57 = vmul.f32 %v938_v0, %v825_v48  ;;  %v849_v34 = vmul.f32 %v938_v0, %v826_v51  ;;  %v850_v58 = vmul.f32 %v938_v0, %v827_v18 }
 0x1ed   :  { %v851_v60 = vmul.f32 %v938_v0, %v828_v52  ;;  %v852_v3 = vmul.f32 %v938_v0, %v829_v53  ;;  %v853_v15 = vmul.f32 %v938_v0, %v830_v55  ;;  %v854_v7 = vmul.f32 %v938_v0, %v831_v54 }
 0x1ee   :  { %v855_v42 = vmul.f32 %v938_v0, %v832_v37  ;;  %v856_v16 = vmul.f32 %v938_v0, %v833_v32  ;;  %v857_v61 = vmul.f32 %v938_v0, %v834_v33  ;;  %v858_v26 = vmul.f32 %v938_v0, %v835_v49 }
 0x1ef   :  { %v859_v62 = vmul.f32 %v938_v0, %v836_v38  ;;  %v860_v43 = vmul.f32 %v938_v0, %v837_v39  ;;  %v861_v1 = vmul.f32 %v938_v0, %v838_v40  ;;  %v862_v30 = vmul.f32 %v938_v0, %v839_v21 }
 0x1f0   :  { %v870_v29 = vadd.f32 %v939_v11, %v847_v56  ;;  %v871_v2 = vadd.f32 %v939_v11, %v848_v57  ;;  %v872_v45 = vadd.f32 %v939_v11, %v849_v34  ;;  %v873_v5 = vadd.f32 %v939_v11, %v850_v58 }
 0x1f1   :  { %v874_v8 = vadd.f32 %v939_v11, %v851_v60  ;;  %v875_v59 = vadd.f32 %v939_v11, %v852_v3  ;;  %v876_v4 = vadd.f32 %v939_v11, %v853_v15  ;;  %v877_v9 = vadd.f32 %v939_v11, %v854_v7 }
 0x1f2   :  { %v878_v10 = vadd.f32 %v939_v11, %v855_v42  ;;  %v879_v12 = vadd.f32 %v939_v11, %v856_v16  ;;  %v880_v13 = vadd.f32 %v939_v11, %v857_v61  ;;  %v881_v14 = vadd.f32 %v939_v11, %v858_v26  ;;  %886 = vst.msk [vmem:[%s1554_s4] sm:$0xff] %vm712_vm5, %v870_v29 }
 0x1f3   :  { %887 = vst.msk [vmem:[%s1554_s4 + $0x8] sm:$0xff] %vm712_vm5, %v871_v2  ;;  %888 = vst.msk [vmem:[%s1554_s4 + $0x10] sm:$0xff] %vm712_vm5, %v872_v45  ;;  %v882_v17 = vadd.f32 %v939_v11, %v859_v62  ;;  %v883_v19 = vadd.f32 %v939_v11, %v860_v43  ;;  %v884_v22 = vadd.f32 %v939_v11, %v861_v1 }
 0x1f4   :  { %889 = vst.msk [vmem:[%s1554_s4 + $0x18] sm:$0xff] %vm712_vm5, %v873_v5  ;;  %v885_v23 = vadd.f32 %v939_v11, %v862_v30  ;;  %890 = vst.msk [vmem:[%s1554_s4 + $0x20] sm:$0xff] %vm712_vm5, %v874_v8 }
 0x1f5   :  { %891 = vst.msk [vmem:[%s1554_s4 + $0x28] sm:$0xff] %vm712_vm5, %v875_v59  ;;  %892 = vst.msk [vmem:[%s1554_s4 + $0x30] sm:$0xff] %vm712_vm5, %v876_v4 }
 0x1f6   :  { %893 = vst.msk [vmem:[%s1554_s4 + $0x38] sm:$0xff] %vm712_vm5, %v877_v9  ;;  %894 = vst.msk [vmem:[%s1554_s4 + $0x40] sm:$0xff] %vm712_vm5, %v878_v10 }
 0x1f7   :  { %895 = vst.msk [vmem:[%s1554_s4 + $0x48] sm:$0xff] %vm712_vm5, %v879_v12  ;;  %896 = vst.msk [vmem:[%s1554_s4 + $0x50] sm:$0xff] %vm712_vm5, %v880_v13 }
 0x1f8   :  { %897 = vst.msk [vmem:[%s1554_s4 + $0x58] sm:$0xff] %vm712_vm5, %v881_v14  ;;  %898 = vst.msk [vmem:[%s1554_s4 + $0x60] sm:$0xff] %vm712_vm5, %v882_v17 }
 0x1f9   :  { %899 = vst.msk [vmem:[%s1554_s4 + $0x68] sm:$0xff] %vm712_vm5, %v883_v19  ;;  %900 = vst.msk [vmem:[%s1554_s4 + $0x70] sm:$0xff] %vm712_vm5, %v884_v22 }
 0x1fa   :  { %901 = vst.msk [vmem:[%s1554_s4 + $0x78] sm:$0xff] %vm712_vm5, %v885_v23 }

// kernel: vae_encoder_forward.8
= control target key start
LH: loop header
LB: loop body
LE: loop exit
PB: predicated region body
PF: predicated region fallthrough
CT: control target
= control target key end

     0   :  { %v831_v27 = vmov 1983009808   ;;  %v160_v29 = vlaneseq  ;;  %vm689_vm10 = vcmask 257024   ;;  %s1029_s1 = inlined_call_operand.vmem [shape: bf16[512,32], index: 1, kind: input, shape index: {}]   ;;  %s1030_s0 = inlined_call_operand.vmem [shape: bf16[2,5,5,128], index: 0, kind: input, shape index: {}]   ;;  %s1031_s2 = inlined_call_operand.vmem [shape: f32[2,4,4,32], index: 2, kind: output, shape index: {}]  }
   0x1   :  { %v799_v0 = vld [vmem:[%s1029_s1 + $0x40] sm:$0xff]   ;;  %v803_v4 = vld [vmem:[%s1029_s1 + $0x48] sm:$0xff]   ;;  %v807_v8 = vld [vmem:[%s1029_s1 + $0x50] sm:$0xff]   ;;  %v158_v28 = vunpack.c.l.s4 %v831_v27 }
   0x2   :  { %v800_v1 = vld [vmem:[%s1029_s1 + $0xc0] sm:$0xff]   ;;  %742 = vmatprep.subr.bf16.mxu0 %v799_v0  ;;  %v804_v5 = vld [vmem:[%s1029_s1 + $0xc8] sm:$0xff]   ;;  %v808_v9 = vld [vmem:[%s1029_s1 + $0xd0] sm:$0xff]   ;;  %v161_v35 = vshrl.u32 %v160_v29, 7 }
   0x3   :  { %v801_v2 = vld [vmem:[%s1029_s1] sm:$0xff]   ;;  %770 = vmatprep.subr.bf16.mxu1 %v800_v1  ;;  %v805_v6 = vld [vmem:[%s1029_s1 + $0x8] sm:$0xff]   ;;  %v809_v10 = vld [vmem:[%s1029_s1 + $0x10] sm:$0xff]   ;;  %v159_v34 = vunpack.c.0.s8 %v158_v28 }
   0x4   :  { %v802_v3 = vld [vmem:[%s1029_s1 + $0x80] sm:$0xff]   ;;  %743 = vmatpush3.bf16.msra.mxu0 %v801_v2  ;;  %v806_v7 = vld [vmem:[%s1029_s1 + $0x88] sm:$0xff]   ;;  %v810_v11 = vld [vmem:[%s1029_s1 + $0x90] sm:$0xff]  }
   0x5   :  { %771 = vmatpush3.bf16.msra.mxu1 %v802_v3  ;;  %744 = vmatprep.subr.bf16.mxu0 %v803_v4  ;;  %v811_v12 = vld [vmem:[%s1029_s1 + $0x58] sm:$0xff]   ;;  %v815_v16 = vld [vmem:[%s1029_s1 + $0x60] sm:$0xff]   ;;  %v819_v20 = vld [vmem:[%s1029_s1 + $0x68] sm:$0xff]   ;;  %v961_v47 = vsub.s32 %v159_v34, %v161_v35 }
   0x6   :  { %772 = vmatprep.subr.bf16.mxu1 %v804_v5  ;;  %v812_v13 = vld [vmem:[%s1029_s1 + $0xd8] sm:$0xff]   ;;  %v816_v17 = vld [vmem:[%s1029_s1 + $0xe0] sm:$0xff]   ;;  %v820_v21 = vld [vmem:[%s1029_s1 + $0xe8] sm:$0xff]  }
   0x7   :  { %v813_v14 = vld [vmem:[%s1029_s1 + $0x18] sm:$0xff]   ;;  %v817_v18 = vld [vmem:[%s1029_s1 + $0x20] sm:$0xff]   ;;  %v821_v22 = vld [vmem:[%s1029_s1 + $0x28] sm:$0xff]  }
   0x8   :  { %745 = vmatpush3.bf16.msra.mxu0 %v805_v6  ;;  %v814_v15 = vld [vmem:[%s1029_s1 + $0x98] sm:$0xff]   ;;  %v818_v19 = vld [vmem:[%s1029_s1 + $0xa0] sm:$0xff]   ;;  %v822_v23 = vld [vmem:[%s1029_s1 + $0xa8] sm:$0xff]  }
   0x9   :  { %773 = vmatpush3.bf16.msra.mxu1 %v806_v7  ;;  %746 = vmatprep.subr.bf16.mxu0 %v807_v8  ;;  %v823_v24 = vld [vmem:[%s1029_s1 + $0x70] sm:$0xff]   ;;  %v827_v31 = vld [vmem:[%s1029_s1 + $0x78] sm:$0xff]   ;;  %v15_v37 = vld [vmem:[%s1030_s0] sm:$0x7] }
   0xa   :  { %774 = vmatprep.subr.bf16.mxu1 %v808_v9  ;;  %v824_v25 = vld [vmem:[%s1029_s1 + $0xf0] sm:$0xff]   ;;  %v828_v32 = vld [vmem:[%s1029_s1 + $0xf8] sm:$0xff]   ;;  %v16_v38 = vld [vmem:[%s1030_s0 + $0x4] sm:$0x7]  ;;  %v25_v41 = vunpack.c.l.bf16 %v15_v37 }
   0xb   :  { %v825_v26 = vld [vmem:[%s1029_s1 + $0x30] sm:$0xff]   ;;  %v829_v33 = vld [vmem:[%s1029_s1 + $0x38] sm:$0xff]   ;;  %v17_v39 = vld [vmem:[%s1030_s0 + $0x8] sm:$0x7]  ;;  %v26_v42 = vunpack.c.l.bf16 %v16_v38 }
   0xc   :  { %747 = vmatpush3.bf16.msra.mxu0 %v809_v10  ;;  %v826_v30 = vld [vmem:[%s1029_s1 + $0xb0] sm:$0xff]   ;;  %v830_v36 = vld [vmem:[%s1029_s1 + $0xb8] sm:$0xff]   ;;  %v18_v40 = vld [vmem:[%s1030_s0 + $0xc] sm:$0x7]  ;;  %v27_v43 = vunpack.c.l.bf16 %v17_v39  ;;  %vm35_vm0 = vcmp.ge.f32.partialorder %v25_v41, 0.0 }
   0xd   :  { %775 = vmatpush3.bf16.msra.mxu1 %v810_v11  ;;  %748 = vmatprep.subr.bf16.mxu0 %v811_v12  ;;  %v19_v44 = vld [vmem:[%s1030_s0 + $0x10] sm:$0x7]  ;;  %v20_v45 = vld [vmem:[%s1030_s0 + $0x14] sm:$0x7]  ;;  %v28_v46 = vunpack.c.l.bf16 %v18_v40  ;;  %v21_v49 = vld [vmem:[%s1030_s0 + $0x18] sm:$0x7] }
   0xe   :  { %776 = vmatprep.subr.bf16.mxu1 %v812_v13  ;;  %v29_v48 = vunpack.c.l.bf16 %v19_v44  ;;  %v22_v50 = vld [vmem:[%s1030_s0 + $0x1c] sm:$0x7]  ;;  %v30_v51 = vunpack.c.l.bf16 %v20_v45  ;;  %vm36_vm1 = vcmp.ge.f32.partialorder %v26_v42, 0.0  ;;  %vm37_vm2 = vcmp.ge.f32.partialorder %v27_v43, 0.0  ;;  %v23_v7 = vld [vmem:[%s1030_s0 + $0x20] sm:$0x7] }
   0xf   :  { %v45_v52 = vmul.f32 0.2, %v25_v41  ;;  %vm38_vm3 = vcmp.ge.f32.partialorder %v28_v46, 0.0  ;;  %v46_v53 = vmul.f32 0.2, %v26_v42  ;;  %v31_v58 = vunpack.c.l.bf16 %v21_v49 }
  0x10   :  { %749 = vmatpush3.bf16.msra.mxu0 %v813_v14  ;;  %v47_v54 = vmul.f32 0.2, %v27_v43  ;;  %vm39_vm4 = vcmp.ge.f32.partialorder %v29_v48, 0.0  ;;  %v48_v55 = vmul.f32 0.2, %v28_v46  ;;  %v32_v62 = vunpack.c.l.bf16 %v22_v50 }
  0x11   :  { %777 = vmatpush3.bf16.msra.mxu1 %v814_v15  ;;  %750 = vmatprep.subr.bf16.mxu0 %v815_v16  ;;  %v55_v56 = vsel %vm35_vm0, %v25_v41, %v45_v52  ;;  %v49_v57 = vmul.f32 0.2, %v29_v48  ;;  %v56_v59 = vsel %vm36_vm1, %v26_v42, %v46_v53  ;;  %vm40_vm5 = vcmp.ge.f32.partialorder %v30_v51, 0.0 }
  0x12   :  { %778 = vmatprep.subr.bf16.mxu1 %v816_v17  ;;  %v57_v60 = vsel %vm37_vm2, %v27_v43, %v47_v54  ;;  %v65_v61 = vpack.c.bf16 %v55_v56, %v55_v56  ;;  %v58_v63 = vsel %vm38_vm3, %v28_v46, %v48_v55  ;;  %v66_v0 = vpack.c.bf16 %v56_v59, %v56_v59 }
  0x13   :  { %v67_v1 = vpack.c.bf16 %v57_v60, %v57_v60  ;;  %v59_v2 = vsel %vm39_vm4, %v29_v48, %v49_v57  ;;  %v68_v3 = vpack.c.bf16 %v58_v63, %v58_v63  ;;  %vm41_vm6 = vcmp.ge.f32.partialorder %v31_v58, 0.0 }
  0x14   :  { %751 = vmatpush3.bf16.msra.mxu0 %v817_v18  ;;  %v76_v4 = vshrl.u32 %v65_v61, 16  ;;  %v78_v5 = vshll.u32 %v65_v61, 16  ;;  %v69_v6 = vpack.c.bf16 %v59_v2, %v59_v2  ;;  %v83_v8 = vshrl.u32 %v66_v0, 16 }
  0x15   :  { %779 = vmatpush3.bf16.msra.mxu1 %v818_v19  ;;  %752 = vmatprep.subr.bf16.mxu0 %v819_v20  ;;  %v85_v9 = vshll.u32 %v66_v0, 16  ;;  %v90_v10 = vshrl.u32 %v67_v1, 16  ;;  %v92_v11 = vshll.u32 %v67_v1, 16  ;;  %v97_v13 = vshrl.u32 %v68_v3, 16 }
  0x16   :  { %780 = vmatprep.subr.bf16.mxu1 %v820_v21  ;;  %v80_v12 = vrot.slane %v78_v5, 1  ;;  %v99_v14 = vshll.u32 %v68_v3, 16  ;;  %v132_v15 = vshrl.u32 %v69_v6, 16  ;;  %v134_v18 = vshll.u32 %v69_v6, 16 }
  0x17   :  { %v87_v16 = vrot.slane %v85_v9, 1  ;;  %v94_v17 = vrot.slane %v92_v11, 1  ;;  %v33_v19 = vunpack.c.l.bf16 %v23_v7  ;;  %vm42_vm7 = vcmp.ge.f32.partialorder %v32_v62, 0.0 }
  0x18   :  { %753 = vmatpush3.bf16.msra.mxu0 %v821_v22  ;;  %v81_v20 = vor.u32 %v80_v12, %v76_v4  ;;  %v101_v21 = vrot.slane %v99_v14, 1  ;;  %v50_v27 = vmul.f32 0.2, %v30_v51  ;;  %v52_v34 = vmul.f32 0.2, %v32_v62 }
  0x19   :  { %781 = vmatpush3.bf16.msra.mxu1 %v822_v23  ;;  %754 = vmatprep.subr.bf16.mxu0 %v823_v24  ;;  %v88_v22 = vor.u32 %v87_v16, %v83_v8  ;;  %v95_v23 = vor.u32 %v94_v17, %v90_v10  ;;  %v136_v24 = vrot.slane %v134_v18, 1  ;;  %vm43_vm8 = vcmp.ge.f32.partialorder %v33_v19, 0.0 }
  0x1a   :  { %782 = vmatprep.subr.bf16.mxu1 %v824_v25  ;;  %v102_v25 = vor.u32 %v101_v21, %v97_v13  ;;  %v53_v35 = vmul.f32 0.2, %v33_v19  ;;  %v60_v39 = vsel %vm40_vm5, %v30_v51, %v50_v27  ;;  %v62_v42 = vsel %vm42_vm7, %v32_v62, %v52_v34 }
  0x1b   :  { %v156_v28 = vcombine.low %v66_v0, %v88_v22  ;;  %v172_v29 = vcombine.low %v67_v1, %v95_v23  ;;  %v70_v48 = vpack.c.bf16 %v60_v39, %v60_v39  ;;  %v72_v52 = vpack.c.bf16 %v62_v42, %v62_v42  ;;  %v24_v1 = vld [vmem:[%s1030_s0 + $0x24] sm:$0x7] }
  0x1c   :  { %755 = vmatpush3.bf16.msra.mxu0 %v825_v26  ;;  %v155_v26 = vcombine.low %v65_v61, %v81_v20  ;;  %v63_v43 = vsel %vm43_vm8, %v33_v19, %v53_v35  ;;  %v34_v12 = vunpack.c.l.bf16 %v24_v1 }
  0x1d   :  { %783 = vmatpush3.bf16.msra.mxu1 %v826_v30  ;;  %756 = vmatprep.subr.bf16.mxu0 %v827_v31  ;;  %v137_v30 = vor.u32 %v136_v24, %v132_v15  ;;  %v51_v31 = vmul.f32 0.2, %v31_v58  ;;  %v179_v37 = vrot.slane %v172_v29, %v961_v47  ;;  %v73_v53 = vpack.c.bf16 %v63_v43, %v63_v43 }
  0x1e   :  { %784 = vmatprep.subr.bf16.mxu1 %v828_v32  ;;  %v163_v32 = vrot.slane %v155_v26, %v961_v47  ;;  %v104_v56 = vshrl.u32 %v70_v48, 16  ;;  %v118_v62 = vshrl.u32 %v72_v52, 16  ;;  %v120_v63 = vshll.u32 %v72_v52, 16 }
  0x1f   :  { %v190_v38 = vcombine.low %v69_v6, %v137_v30  ;;  %v61_v41 = vsel %vm41_vm6, %v31_v58, %v51_v31  ;;  %v106_v58 = vshll.u32 %v70_v48, 16  ;;  %v125_v0 = vshrl.u32 %v73_v53, 16 }
  0x20   :  { %757 = vmatpush3.bf16.msra.mxu0 %v829_v33  ;;  %v181_v33 = vcombine.low %v68_v3, %v102_v25  ;;  %v71_v50 = vpack.c.bf16 %v61_v41, %v61_v41  ;;  %v122_v8 = vrot.slane %v120_v63, 1  ;;  %v127_v9 = vshll.u32 %v73_v53, 16 }
  0x21   :  { %785 = vmatpush3.bf16.msra.mxu1 %v830_v36  ;;  %v170_v36 = vrot.slane %v156_v28, %v961_v47  ;;  %v197_v45 = vrot.slane %v190_v38, %v961_v47  ;;  %v108_v4 = vrot.slane %v106_v58, 1  ;;  %vm44_vm9 = vcmp.ge.f32.partialorder %v34_v12, 0.0 }
  0x22   :  { %v188_v40 = vrot.slane %v181_v33, %v961_v47  ;;  %v111_v59 = vshrl.u32 %v71_v50, 16  ;;  %v113_v60 = vshll.u32 %v71_v50, 16  ;;  %v123_v13 = vor.u32 %v122_v8, %v118_v62 }
  0x23   :  { %v702_v44 = vcombine.low %v163_v32, %v170_v36  ;;  %v703_v46 = vcombine.low %v170_v36, %v179_v37  ;;  %v109_v10 = vor.u32 %v108_v4, %v104_v56  ;;  %v129_v14 = vrot.slane %v127_v9, 1 }
  0x24   :  { %v704_v49 = vcombine.low %v179_v37, %v188_v40  ;;  %v705_v51 = vcombine.low %v188_v40, %v197_v45  ;;  %v115_v5 = vrot.slane %v113_v60, 1  ;;  %v54_v17 = vmul.f32 0.2, %v34_v12 }
  0x25   :  { %v317_v54 = vrot.slane %v702_v44, %v961_v47  ;;  %v324_v55 = vrot.slane %v703_v46, %v961_v47  ;;  %v199_v15 = vcombine.low %v70_v48, %v109_v10  ;;  %v130_v18 = vor.u32 %v129_v14, %v125_v0 }
  0x26   :  { %v331_v57 = vrot.slane %v704_v49, %v961_v47  ;;  %v338_v61 = vrot.slane %v705_v51, %v961_v47  ;;  %v116_v11 = vor.u32 %v115_v5, %v111_v59  ;;  %v216_v19 = vcombine.low %v72_v52, %v123_v13 }
  0x27   :  { %v207_v20 = vrot.slane %v199_v15, %v961_v47  ;;  %v64_v22 = vsel %vm44_vm9, %v34_v12, %v54_v17  ;;  %v225_v24 = vcombine.low %v73_v53, %v130_v18 }
  0x28   :  { %v340_v2 = vcombine.high %v317_v54, %v331_v57  ;;  %v339_v3 = vcombine.low %v317_v54, %v331_v57  ;;  %v342_v6 = vcombine.high %v324_v55, %v338_v61  ;;  %v341_v7 = vcombine.low %v324_v55, %v338_v61 }
  0x29   :  { %v200_v16 = vcombine.low %v71_v50, %v116_v11  ;;  %v223_v23 = vrot.slane %v216_v19, %v961_v47  ;;  %v74_v25 = vpack.c.bf16 %v64_v22, %v64_v22  ;;  %v232_v27 = vrot.slane %v225_v24, %v961_v47 }
  0x2a   :  { %611 = vmatprep.mubr.bf16.mxu0 %v340_v2  ;;  %660 = vmatprep.mubr.bf16.mxu1 %v342_v6 }
  0x2b   :  { %612 = vmatmul.mubr.bf16.vlgmr.msra.gmra.mrb[0].mxu0 %v339_v3  ;;  %661 = vmatmul.mubr.bf16.vlgmr.msra.gmra.mrb[0].mxu1 %v341_v7  ;;  %v214_v21 = vrot.slane %v200_v16, %v961_v47  ;;  %v139_v28 = vshrl.u32 %v74_v25, 16  ;;  %v141_v29 = vshll.u32 %v74_v25, 16  ;;  %v708_v30 = vcombine.low %v223_v23, %v232_v27 }
  0x2d   :  { %v706_v26 = vcombine.low %v207_v20, %v214_v21  ;;  %v143_v32 = vrot.slane %v141_v29, 1  ;;  %v367_v33 = vrot.slane %v708_v30, %v961_v47  ;;  %v707_v37 = vcombine.low %v214_v21, %v223_v23 }
  0x2f   :  { %v353_v31 = vrot.slane %v706_v26, %v961_v47  ;;  %v144_v34 = vor.u32 %v143_v32, %v139_v28  ;;  %v360_v41 = vrot.slane %v707_v37, %v961_v47 }
  0x31   :  { %v376_v35 = vcombine.high %v353_v31, %v367_v33  ;;  %v234_v36 = vcombine.low %v74_v25, %v144_v34  ;;  %v375_v38 = vcombine.low %v353_v31, %v367_v33 }
  0x33   :  { %619 = vmatprep.mubr.bf16.mxu0 %v376_v35  ;;  %v241_v39 = vrot.slane %v234_v36, %v961_v47 }
  0x34   :  { %620 = vmatmul.mubr.bf16.gmra.mrb[4].mxu0 %v375_v38 }
  0x35   :  { %v709_v40 = vcombine.low %v232_v27, %v241_v39 }
  0x37   :  { %v374_v42 = vrot.slane %v709_v40, %v961_v47 }
  0x39   :  { %v378_v43 = vcombine.high %v360_v41, %v374_v42  ;;  %v377_v44 = vcombine.low %v360_v41, %v374_v42 }
  0x3b   :  { %668 = vmatprep.mubr.bf16.mxu1 %v378_v43 }
  0x3c   :  { %669 = vmatmul.mubr.bf16.gmra.mrb[4].mxu1 %v377_v44 }
  0xfe   :  { %v758_v45 = vpop.f32.mrb[0].mxu0  ;;  %v786_v46 = vpop.f32.mrb[0].mxu1 }
  0xff   :  { %v759_v48 = vpop.f32.mrb[1].mxu0  ;;  %v787_v50 = vpop.f32.mrb[1].mxu1 }
 0x100   :  { %v760_v49 = vadd.f32 %v759_v48, %v758_v45  ;;  %v761_v52 = vpop.f32.mrb[2].mxu0  ;;  %v788_v53 = vadd.f32 %v787_v50, %v786_v46  ;;  %v789_v54 = vpop.f32.mrb[2].mxu1 }
 0x101   :  { %v762_v51 = vpop.f32.mrb[3].mxu0  ;;  %v790_v56 = vpop.f32.mrb[3].mxu1 }
 0x102   :  { %v763_v55 = vadd.f32 %v762_v51, %v761_v52  ;;  %v663_v57 = vadd.f32 %v788_v53, %v760_v49  ;;  %v791_v58 = vadd.f32 %v790_v56, %v789_v54 }
 0x104   :  { %v681_v59 = vcombine.high %v663_v57, %v663_v57  ;;  %690 = vst.msk [vmem:[%s1031_s2] sm:$0xf] %vm689_vm10, %v663_v57  ;;  %v666_v47 = vadd.f32 %v791_v58, %v763_v55 }
 0x106   :  { %691 = vst.msk [vmem:[%s1031_s2 + $0x4] sm:$0xf] %vm689_vm10, %v681_v59  ;;  %v682_v60 = vcombine.high %v666_v47, %v666_v47  ;;  %692 = vst.msk [vmem:[%s1031_s2 + $0x8] sm:$0xf] %vm689_vm10, %v666_v47 }
 0x107   :  { %v764_v61 = vpop.f32.mrb[4].mxu0 }
 0x108   :  { %693 = vst.msk [vmem:[%s1031_s2 + $0xc] sm:$0xf] %vm689_vm10, %v682_v60  ;;  %v765_v62 = vpop.f32.mrb[5].mxu0 }
 0x109   :  { %v766_v63 = vadd.f32 %v765_v62, %v764_v61  ;;  %v767_v0 = vpop.f32.mrb[6].mxu0 }
 0x10a   :  { %v768_v1 = vpop.f32.mrb[7].mxu0 }
 0x10b   :  { %v769_v2 = vadd.f32 %v768_v1, %v767_v0 }
 0x10f   :  { %v792_v3 = vpop.f32.mrb[4].mxu1 }
 0x110   :  { %v793_v4 = vpop.f32.mrb[5].mxu1 }
 0x111   :  { %v794_v5 = vadd.f32 %v793_v4, %v792_v3  ;;  %v795_v6 = vpop.f32.mrb[6].mxu1 }
 0x112   :  { %v796_v7 = vpop.f32.mrb[7].mxu1 }
 0x113   :  { %v671_v8 = vadd.f32 %v794_v5, %v766_v63  ;;  %v797_v9 = vadd.f32 %v796_v7, %v795_v6 }
 0x115   :  { %v683_v10 = vcombine.high %v671_v8, %v671_v8  ;;  %694 = vst.msk [vmem:[%s1031_s2 + $0x10] sm:$0xf] %vm689_vm10, %v671_v8  ;;  %v674_v11 = vadd.f32 %v797_v9, %v769_v2 }
 0x117   :  { %695 = vst.msk [vmem:[%s1031_s2 + $0x14] sm:$0xf] %vm689_vm10, %v683_v10  ;;  %v684_v12 = vcombine.high %v674_v11, %v674_v11  ;;  %696 = vst.msk [vmem:[%s1031_s2 + $0x18] sm:$0xf] %vm689_vm10, %v674_v11 }
 0x119   :  { %697 = vst.msk [vmem:[%s1031_s2 + $0x1c] sm:$0xf] %vm689_vm10, %v684_v12 }

// kernel: vae_encoder_forward.9
= control target key start
LH: loop header
LB: loop body
LE: loop exit
PB: predicated region body
PF: predicated region fallthrough
CT: control target
= control target key end

     0   :  { %v95_v41 = vlaneseq  ;;  %v693_v45 = vmov 1966171168   ;;  %vm573_vm0 = vcmask 517120   ;;  %s848_s1 = inlined_call_operand.vmem [shape: bf16[512,64], index: 1, kind: input, shape index: {}]   ;;  %s849_s0 = inlined_call_operand.vmem [shape: bf16[2,3,3,128], index: 0, kind: input, shape index: {}]   ;;  %s850_s2 = inlined_call_operand.vmem [shape: f32[1,64], index: 2, kind: input, shape index: {}]   ;;  %s851_s3 = inlined_call_operand.vmem [shape: f32[2,2,2,64], index: 3, kind: output, shape index: {}]  }
   0x1   :  { %v661_v0 = vld [vmem:[%s848_s1 + $0x40] sm:$0xff]   ;;  %v665_v4 = vld [vmem:[%s848_s1 + $0x48] sm:$0xff]   ;;  %v669_v8 = vld [vmem:[%s848_s1 + $0x50] sm:$0xff]   ;;  %v93_v46 = vunpack.c.l.s4 %v693_v45 }
   0x2   :  { %v662_v1 = vld [vmem:[%s848_s1 + $0xc0] sm:$0xff]   ;;  %615 = vmatprep.subr.bf16.mxu0 %v661_v0  ;;  %v666_v5 = vld [vmem:[%s848_s1 + $0xc8] sm:$0xff]   ;;  %v670_v9 = vld [vmem:[%s848_s1 + $0xd0] sm:$0xff]   ;;  %v829_v56 = vshrl.u32 %v95_v41, 7 }
   0x3   :  { %v663_v2 = vld [vmem:[%s848_s1] sm:$0xff]   ;;  %637 = vmatprep.subr.bf16.mxu1 %v662_v1  ;;  %v667_v6 = vld [vmem:[%s848_s1 + $0x8] sm:$0xff]   ;;  %v671_v10 = vld [vmem:[%s848_s1 + $0x10] sm:$0xff]   ;;  %v94_v60 = vunpack.c.0.s8 %v93_v46 }
   0x4   :  { %v664_v3 = vld [vmem:[%s848_s1 + $0x80] sm:$0xff]   ;;  %616 = vmatpush3.bf16.msra.mxu0 %v663_v2  ;;  %v668_v7 = vld [vmem:[%s848_s1 + $0x88] sm:$0xff]   ;;  %v672_v11 = vld [vmem:[%s848_s1 + $0x90] sm:$0xff]  }
   0x5   :  { %638 = vmatpush3.bf16.msra.mxu1 %v664_v3  ;;  %617 = vmatprep.subr.bf16.mxu0 %v665_v4  ;;  %v673_v12 = vld [vmem:[%s848_s1 + $0x58] sm:$0xff]   ;;  %v677_v16 = vld [vmem:[%s848_s1 + $0x60] sm:$0xff]   ;;  %v681_v20 = vld [vmem:[%s848_s1 + $0x68] sm:$0xff]  }
   0x6   :  { %639 = vmatprep.subr.bf16.mxu1 %v666_v5  ;;  %v674_v13 = vld [vmem:[%s848_s1 + $0xd8] sm:$0xff]   ;;  %v678_v17 = vld [vmem:[%s848_s1 + $0xe0] sm:$0xff]   ;;  %v682_v21 = vld [vmem:[%s848_s1 + $0xe8] sm:$0xff]  }
   0x7   :  { %v675_v14 = vld [vmem:[%s848_s1 + $0x18] sm:$0xff]   ;;  %v679_v18 = vld [vmem:[%s848_s1 + $0x20] sm:$0xff]   ;;  %v683_v22 = vld [vmem:[%s848_s1 + $0x28] sm:$0xff]  }
   0x8   :  { %618 = vmatpush3.bf16.msra.mxu0 %v667_v6  ;;  %v676_v15 = vld [vmem:[%s848_s1 + $0x98] sm:$0xff]   ;;  %v680_v19 = vld [vmem:[%s848_s1 + $0xa0] sm:$0xff]   ;;  %v684_v23 = vld [vmem:[%s848_s1 + $0xa8] sm:$0xff]  }
   0x9   :  { %640 = vmatpush3.bf16.msra.mxu1 %v668_v7  ;;  %619 = vmatprep.subr.bf16.mxu0 %v669_v8  ;;  %v685_v24 = vld [vmem:[%s848_s1 + $0x70] sm:$0xff]   ;;  %v689_v28 = vld [vmem:[%s848_s1 + $0x78] sm:$0xff]   ;;  %v18_v32 = vld [vmem:[%s849_s0] sm:$0x3] }
   0xa   :  { %641 = vmatprep.subr.bf16.mxu1 %v670_v9  ;;  %v686_v25 = vld [vmem:[%s848_s1 + $0xf0] sm:$0xff]   ;;  %v690_v29 = vld [vmem:[%s848_s1 + $0xf8] sm:$0xff]   ;;  %v19_v33 = vld [vmem:[%s849_s0 + $0x2] sm:$0x3]  ;;  %v24_v38 = vunpack.c.l.bf16 %v18_v32 }
   0xb   :  { %v687_v26 = vld [vmem:[%s848_s1 + $0x30] sm:$0xff]   ;;  %v691_v30 = vld [vmem:[%s848_s1 + $0x38] sm:$0xff]   ;;  %v20_v34 = vld [vmem:[%s849_s0 + $0x4] sm:$0x3]  ;;  %v25_v39 = vunpack.c.l.bf16 %v19_v33 }
   0xc   :  { %620 = vmatpush3.bf16.msra.mxu0 %v671_v10  ;;  %v688_v27 = vld [vmem:[%s848_s1 + $0xb0] sm:$0xff]   ;;  %v692_v31 = vld [vmem:[%s848_s1 + $0xb8] sm:$0xff]   ;;  %v21_v35 = vld [vmem:[%s849_s0 + $0x6] sm:$0x3]  ;;  %v26_v40 = vunpack.c.l.bf16 %v20_v34  ;;  %v30_v47 = vmax.f32 %v24_v38, 0.0 }
   0xd   :  { %642 = vmatpush3.bf16.msra.mxu1 %v672_v11  ;;  %621 = vmatprep.subr.bf16.mxu0 %v673_v12  ;;  %v22_v36 = vld [vmem:[%s849_s0 + $0x8] sm:$0x3]  ;;  %v23_v37 = vld [vmem:[%s849_s0 + $0xa] sm:$0x3]  ;;  %v27_v42 = vunpack.c.l.bf16 %v21_v35  ;;  %v31_v48 = vmax.f32 %v25_v39, 0.0 }
   0xe   :  { %643 = vmatprep.subr.bf16.mxu1 %v674_v13  ;;  %v28_v43 = vunpack.c.l.bf16 %v22_v36  ;;  %v29_v44 = vunpack.c.l.bf16 %v23_v37  ;;  %v32_v49 = vmax.f32 %v26_v40, 0.0  ;;  %v36_v53 = vpack.c.bf16 %v30_v47, %v30_v47 }
   0xf   :  { %v33_v50 = vmax.f32 %v27_v42, 0.0  ;;  %v37_v54 = vpack.c.bf16 %v31_v48, %v31_v48 }
  0x10   :  { %622 = vmatpush3.bf16.msra.mxu0 %v675_v14  ;;  %v34_v51 = vmax.f32 %v28_v43, 0.0  ;;  %v35_v52 = vmax.f32 %v29_v44, 0.0  ;;  %v38_v55 = vpack.c.bf16 %v32_v49, %v32_v49  ;;  %v43_v61 = vshrl.u32 %v36_v53, 16 }
  0x11   :  { %644 = vmatpush3.bf16.msra.mxu1 %v676_v15  ;;  %623 = vmatprep.subr.bf16.mxu0 %v677_v16  ;;  %v39_v57 = vpack.c.bf16 %v33_v50, %v33_v50  ;;  %v45_v62 = vshll.u32 %v36_v53, 16  ;;  %v50_v63 = vshrl.u32 %v37_v54, 16  ;;  %v52_v0 = vshll.u32 %v37_v54, 16 }
  0x12   :  { %645 = vmatprep.subr.bf16.mxu1 %v678_v17  ;;  %v40_v58 = vpack.c.bf16 %v34_v51, %v34_v51  ;;  %v41_v59 = vpack.c.bf16 %v35_v52, %v35_v52  ;;  %v71_v7 = vshrl.u32 %v38_v55, 16  ;;  %v73_v8 = vshll.u32 %v38_v55, 16 }
  0x13   :  { %v57_v1 = vshrl.u32 %v39_v57, 16  ;;  %v59_v2 = vshll.u32 %v39_v57, 16  ;;  %v47_v5 = vrot.slane %v45_v62, 1  ;;  %v54_v6 = vrot.slane %v52_v0, 1 }
  0x14   :  { %624 = vmatpush3.bf16.msra.mxu0 %v679_v18  ;;  %v64_v3 = vshrl.u32 %v40_v58, 16  ;;  %v66_v4 = vshll.u32 %v40_v58, 16  ;;  %v78_v11 = vshrl.u32 %v41_v59, 16  ;;  %v80_v12 = vshll.u32 %v41_v59, 16 }
  0x15   :  { %646 = vmatpush3.bf16.msra.mxu1 %v680_v19  ;;  %625 = vmatprep.subr.bf16.mxu0 %v681_v20  ;;  %v61_v9 = vrot.slane %v59_v2, 1  ;;  %v48_v13 = vor.u32 %v47_v5, %v43_v61  ;;  %v55_v14 = vor.u32 %v54_v6, %v50_v63  ;;  %v75_v15 = vrot.slane %v73_v8, 1 }
  0x16   :  { %647 = vmatprep.subr.bf16.mxu1 %v682_v21  ;;  %v68_v10 = vrot.slane %v66_v4, 1  ;;  %v97_v16 = vsub.s32 %v94_v60, %v829_v56  ;;  %v82_v19 = vrot.slane %v80_v12, 1  ;;  %v694_v52 = vmov 1983009808  }
  0x17   :  { %v62_v17 = vor.u32 %v61_v9, %v57_v1  ;;  %v76_v20 = vor.u32 %v75_v15, %v71_v7  ;;  %v90_v21 = vcombine.low %v36_v53, %v48_v13  ;;  %v554_v53 = vunpack.c.l.s4 %v694_v52 }
  0x18   :  { %626 = vmatpush3.bf16.msra.mxu0 %v683_v22  ;;  %v69_v18 = vor.u32 %v68_v10, %v64_v3  ;;  %v91_v22 = vcombine.low %v37_v54, %v55_v14 }
  0x19   :  { %648 = vmatpush3.bf16.msra.mxu1 %v684_v23  ;;  %627 = vmatprep.subr.bf16.mxu0 %v685_v24  ;;  %v83_v23 = vor.u32 %v82_v19, %v78_v11  ;;  %v130_v24 = vcombine.low %v39_v57, %v62_v17  ;;  %v582_v57 = vld [vmem:[%s850_s2] ss:$0 sm:$0xff] }
  0x1a   :  { %649 = vmatprep.subr.bf16.mxu1 %v686_v25  ;;  %v131_v25 = vcombine.low %v40_v58, %v69_v18 }
  0x1c   :  { %628 = vmatpush3.bf16.msra.mxu0 %v687_v26  ;;  %v98_v26 = vrot.slane %v90_v21, %v97_v16 }
  0x1d   :  { %650 = vmatpush3.bf16.msra.mxu1 %v688_v27  ;;  %629 = vmatprep.subr.bf16.mxu0 %v689_v28  ;;  %v105_v27 = vrot.slane %v91_v22, %v97_v16  ;;  %v114_v28 = vcombine.low %v38_v55, %v76_v20  ;;  %v555_v55 = vunpack.c.0.s8 %v554_v53 }
  0x1e   :  { %651 = vmatprep.subr.bf16.mxu1 %v690_v29  ;;  %v138_v29 = vrot.slane %v130_v24, %v97_v16 }
  0x1f   :  { %v106_v32 = vcombine.low %v98_v26, %v105_v27  ;;  %v121_v33 = vrot.slane %v114_v28, %v97_v16  ;;  %v558_v2 = vsub.s32 %v555_v55, %v829_v56 }
  0x20   :  { %630 = vmatpush3.bf16.msra.mxu0 %v691_v30  ;;  %v145_v30 = vrot.slane %v131_v25, %v97_v16 }
  0x21   :  { %652 = vmatpush3.bf16.msra.mxu1 %v692_v31  ;;  %v154_v31 = vcombine.low %v41_v59, %v83_v23  ;;  %v113_v36 = vrot.slane %v106_v32, %v97_v16  ;;  %v122_v37 = vcombine.low %v105_v27, %v121_v33 }
  0x22   :  { %v146_v34 = vcombine.low %v138_v29, %v145_v30 }
  0x23   :  { %v161_v35 = vrot.slane %v154_v31, %v97_v16  ;;  %v129_v40 = vrot.slane %v122_v37, %v97_v16 }
  0x24   :  { %v153_v38 = vrot.slane %v146_v34, %v97_v16 }
  0x25   :  { %v162_v39 = vcombine.low %v145_v30, %v161_v35  ;;  %v241_v42 = vcombine.low %v113_v36, %v129_v40 }
  0x27   :  { %v169_v41 = vrot.slane %v162_v39, %v97_v16  ;;  %v249_v44 = vrot.slane %v241_v42, %v97_v16 }
  0x29   :  { %v242_v43 = vcombine.low %v153_v38, %v169_v41 }
  0x2b   :  { %v256_v45 = vrot.slane %v242_v43, %v97_v16 }
  0x2d   :  { %v258_v46 = vcombine.high %v249_v44, %v256_v45  ;;  %v257_v47 = vcombine.low %v249_v44, %v256_v45 }
  0x2f   :  { %v272_v48 = vrot.slane %v258_v46, %v97_v16  ;;  %v265_v49 = vrot.slane %v257_v47, %v97_v16 }
  0x31   :  { %503 = vmatprep.mubr.bf16.mxu0 %v272_v48  ;;  %v274_v50 = vcombine.high %v272_v48, %v272_v48  ;;  %v273_v51 = vcombine.high %v265_v49, %v265_v49 }
  0x32   :  { %504 = vmatmul.mubr.bf16.vlgmr.msra.gmra.mrb[0].mxu0 %v265_v49 }
  0x33   :  { %543 = vmatprep.mubr.bf16.mxu1 %v274_v50 }
  0x34   :  { %544 = vmatmul.mubr.bf16.vlgmr.msra.gmra.mrb[0].mxu1 %v273_v51 }
 0x105   :  { %v631_v54 = vpop.f32.mrb[0].mxu0 }
 0x106   :  { %v632_v58 = vpop.f32.mrb[1].mxu0 }
 0x107   :  { %v653_v59 = vpop.f32.mrb[0].mxu1  ;;  %v633_v60 = vadd.f32 %v632_v58, %v631_v54  ;;  %v634_v61 = vpop.f32.mrb[2].mxu0 }
 0x108   :  { %v654_v62 = vpop.f32.mrb[1].mxu1  ;;  %v635_v63 = vpop.f32.mrb[3].mxu0 }
 0x109   :  { %v506_v0 = vadd.f32 %v633_v60, %v582_v57  ;;  %v655_v1 = vadd.f32 %v654_v62, %v653_v59  ;;  %v656_v3 = vpop.f32.mrb[2].mxu1 }
 0x10a   :  { %v657_v4 = vpop.f32.mrb[3].mxu1 }
 0x10b   :  { %v546_v5 = vadd.f32 %v655_v1, %v506_v0 }
 0x10d   :  { %v552_v6 = vcombine.high %v546_v5, %v546_v5  ;;  %v559_v7 = vrot.slane %v546_v5, %v558_v2 }
 0x10f   :  { %v566_v8 = vrot.slane %v552_v6, %v558_v2  ;;  %v567_v9 = vcombine.high %v559_v7, %v559_v7  ;;  %574 = vst.msk [vmem:[%s851_s3] sm:$0x3] %vm573_vm0, %v559_v7 }
 0x111   :  { %v568_v10 = vcombine.high %v566_v8, %v566_v8  ;;  %575 = vst.msk [vmem:[%s851_s3 + $0x2] sm:$0x3] %vm573_vm0, %v567_v9  ;;  %576 = vst.msk [vmem:[%s851_s3 + $0x4] sm:$0x3] %vm573_vm0, %v566_v8 }
 0x113   :  { %577 = vst.msk [vmem:[%s851_s3 + $0x6] sm:$0x3] %vm573_vm0, %v568_v10 }

</bundles_post_ra>
